<compile_context>
chip_gen: v7x
topology: tpu7x:2x2x1
jax: 0.10.0
libtpu: 0.0.40
codegen_flags: <defaults>
</compile_context>

<pallas_src>
import functools

import jax
import jax.numpy as jnp
from jax.experimental import pallas as pl
from jax.experimental.pallas import tpu as pltpu


def _one_hot_argmax(probs):
    """Forward value of hard gumbel-softmax: one-hot of the first argmax.

    Built from max / iota / where / min so it lowers to plain VPU ops.
    """
    e = probs.shape[-1]
    lane = jax.lax.broadcasted_iota(jnp.int32, probs.shape, probs.ndim - 1)
    m = jnp.max(probs, axis=-1, keepdims=True)
    idx = jnp.min(jnp.where(probs >= m, lane, e), axis=-1, keepdims=True)
    return (lane == idx).astype(probs.dtype)


def _make_kernel(*, gate_is_score, fuse_gate, eh, latent, tau, use_gate_proj,
                 use_gate_mlp, use_hard_sample, approx_recip):
    inv_tau = 1.0 / float(tau)

    def kernel(*refs):
        out_ref = refs[-1]
        it = iter(refs[:-1])
        score_ref = next(it)
        gate_ref = score_ref if gate_is_score else next(it)
        gumbel_ref = next(it)
        w1_ref, b1_ref = next(it), next(it)
        w2_ref, b2_ref = next(it), next(it)
        w3_ref, b3_ref = next(it), next(it)
        if not fuse_gate:
            wg_ref, bg_ref = next(it), next(it)
            centers_t_ref = next(it)
        c_sq_ref = next(it)
        wm1_ref, bm1_ref = next(it), next(it)
        wm2_ref, bm2_ref = next(it), next(it)

        cd = score_ref.dtype             # MXU input dtype (f32 or bf16)
        x = score_ref[...]               # (TN, C_score)

        if fuse_gate:
            # One wide matmul produces [expert-h1 preact | gate latent | gl@C^T].
            # Column slices are static and lane-tile aligned for the first two
            # pieces (eh % 128 == 0); the (TN, E) cross slice is tiny.
            y = (jnp.dot(x, w1_ref[...], preferred_element_type=jnp.float32)
                 + b1_ref[...])                               # (TN, EH+L+E) f32
            h1 = jnp.maximum(y[:, :eh], 0.0)                  # (TN, EH)
            gl = y[:, eh:eh + latent]                         # (TN, L)
            cross = y[:, eh + latent:]                        # (TN, E)
        else:
            h1 = jnp.maximum(
                jnp.dot(x, w1_ref[...], preferred_element_type=jnp.float32)
                + b1_ref[...], 0.0)                           # (TN, EH)
            if use_gate_proj:
                gl = (jnp.dot(gate_ref[...], wg_ref[...],
                              preferred_element_type=jnp.float32)
                      + bg_ref[...])                          # (TN, L)
            else:
                gl = gate_ref[...].astype(jnp.float32)
            cross = jnp.dot(gl, centers_t_ref[...],
                            preferred_element_type=jnp.float32)   # (TN, E)

        # ||a-b||^2 = ||a||^2 + ||b||^2 - 2 a.b ; ||b||^2 precomputed on host.
        gl_sq = jnp.sum(gl * gl, axis=-1, keepdims=True)          # (TN, 1)
        logits = -(gl_sq + c_sq_ref[...] - 2.0 * cross)           # (TN, E)

        if use_gate_mlp:
            hm = jnp.maximum(
                jnp.dot(logits, wm1_ref[...], preferred_element_type=jnp.float32)
                + bm1_ref[...], 0.0)
            logits = (jnp.dot(hm, wm2_ref[...],
                              preferred_element_type=jnp.float32)
                      + bm2_ref[...])

        # gumbel-softmax (noise precomputed outside, same distribution as torch)
        z = (logits + gumbel_ref[...].astype(jnp.float32)) * inv_tau
        z = z - jnp.max(z, axis=-1, keepdims=True)
        ez = jnp.exp(z)
        inv_denom = pl.reciprocal(jnp.sum(ez, axis=-1, keepdims=True),
                                  approx=approx_recip)
        probs = ez * inv_denom
        if use_hard_sample:
            probs = _one_hot_argmax(probs)

        # Expert layers 2 & 3 as wide block-diagonal matmuls.
        h2 = jnp.maximum(
            jnp.dot(h1.astype(cd), w2_ref[...],
                    preferred_element_type=jnp.float32) + b2_ref[...], 0.0)
        expert_outputs = (jnp.dot(h2.astype(cd), w3_ref[...],
                                  preferred_element_type=jnp.float32)
                          + b3_ref[...])                          # (TN, E)

        mixed = jnp.sum(expert_outputs * probs, axis=-1, keepdims=True)
        out_ref[...] = jax.nn.sigmoid(mixed).astype(out_ref.dtype)

    return kernel


def _round_up(x, m):
    return (x + m - 1) // m * m


def distance_gated_scoring(score, gumbel, params, *, gate=None,
                           tau=1.0, use_gate_proj=True, use_gate_mlp=True,
                           use_hard_sample=False, tile_n=256,
                           compute_dtype=jnp.float32, vmem_limit_bytes=None):
    """Fused forward pass of DistanceGatedScoringFunction (eval mode).

    gate=None reuses the score stream for the gating branch (matches the
    PyTorch default gate_input=None and avoids DMA'ing the tensor twice).
    compute_dtype=jnp.bfloat16 runs MXU inputs in bf16 (f32 accumulation).
    """
    n, c_score = score.shape
    cd = jnp.dtype(compute_dtype)
    num_experts, latent = params["centers"].shape
    hidden = params["w1"].shape[-1]
    e, h = num_experts, hidden
    eh = e * h
    gate_is_score = gate is None
    # Fuse gate projection + centers cross-term into the first wide matmul
    # only when the gating branch consumes the score stream and the column
    # slices stay lane-tile (128) aligned.
    fuse_gate = bool(use_gate_proj and gate_is_score and eh % 128 == 0)

    # ---- fuse the per-expert MLPs into 3 wide (block-diagonal) matmuls ----
    w1f = jnp.transpose(params["w1"], (1, 0, 2)).reshape(c_score, eh)
    b1f = params["b1"].reshape(1, eh).astype(jnp.float32)
    w2f = jax.scipy.linalg.block_diag(*[params["w2"][i] for i in range(e)])
    b2f = params["b2"].reshape(1, eh).astype(jnp.float32)
    w3f = jax.scipy.linalg.block_diag(*[params["w3"][i] for i in range(e)])
    b3f = params["b3"].reshape(1, e).astype(jnp.float32)

    centers = params["centers"].astype(jnp.float32)
    centers_t = centers.T                                         # (L, E)
    c_sq = jnp.sum(centers * centers, axis=-1)[None, :]           # (1, E)

    wg = params["wg"].astype(jnp.float32)
    bg = params["bg"].astype(jnp.float32)
    wm1 = params["wm1"].astype(jnp.float32)
    bm1 = params["bm1"].astype(jnp.float32)
    wm2 = params["wm2"].astype(jnp.float32)
    bm2 = params["bm2"].astype(jnp.float32)

    if fuse_gate:
        # x @ [W1 | Wg | Wg@C^T] + [b1 | bg | bg@C^T]
        w1_arg = jnp.concatenate(
            [w1f.astype(jnp.float32), wg, wg @ centers_t], axis=1)
        b1_arg = jnp.concatenate([b1f, bg, bg @ centers_t], axis=1)
    else:
        w1_arg, b1_arg = w1f, b1f

    # MXU weight operands in compute dtype; biases / gating MLP stay f32.
    w1c, w2c, w3c = w1_arg.astype(cd), w2f.astype(cd), w3f.astype(cd)
    wgc = wg.astype(cd)

    # ---- row tiling (large tiles to amortize per-step pipeline overhead) --
    sub = 16 if cd == jnp.dtype(jnp.bfloat16) else 8
    tile_n = max(sub, min(int(tile_n), _round_up(n, sub)))
    tile_n = _round_up(tile_n, sub)
    n_pad = _round_up(n, tile_n)

    score_c = score.astype(cd)
    gate_c = None if gate_is_score else gate.astype(cd)
    gumbel_c = gumbel.astype(jnp.float32)
    if n_pad != n:
        pad = ((0, n_pad - n), (0, 0))
        score_c = jnp.pad(score_c, pad)
        if gate_c is not None:
            gate_c = jnp.pad(gate_c, pad)
        gumbel_c = jnp.pad(gumbel_c, pad)

    def row_spec(cols):
        return pl.BlockSpec((tile_n, cols), lambda i: (i, 0))

    def full_spec(a):
        # Whole-array block, constant index map -> resident in VMEM, no
        # per-step re-DMA (block index never changes across the grid).
        return pl.BlockSpec(a.shape, lambda i: (0, 0))

    weight_args = ([w1c, b1_arg, w2c, b2f, w3c, b3f]
                   + ([] if fuse_gate else [wgc, bg, centers_t])
                   + [c_sq, wm1, bm1, wm2, bm2])
    row_inputs = [score_c] + ([] if gate_c is None else [gate_c]) + [gumbel_c]

    in_specs = ([row_spec(a.shape[1]) for a in row_inputs]
                + [full_spec(w) for w in weight_args])

    kernel = _make_kernel(
        gate_is_score=gate_is_score, fuse_gate=fuse_gate,
        eh=eh, latent=int(latent), tau=float(tau),
        use_gate_proj=use_gate_proj, use_gate_mlp=use_gate_mlp,
        use_hard_sample=use_hard_sample,
        approx_recip=(cd != jnp.dtype(jnp.float32)))

    cp_kwargs = dict(dimension_semantics=("parallel",))
    if vmem_limit_bytes is not None:       # only needed for huge row tiles
        cp_kwargs["vmem_limit_bytes"] = int(vmem_limit_bytes)

    out = pl.pallas_call(
        kernel,
        grid=(n_pad // tile_n,),
        in_specs=in_specs,
        out_specs=row_spec(1),
        out_shape=jax.ShapeDtypeStruct((n_pad, 1), jnp.float32),
        compiler_params=pltpu.CompilerParams(**cp_kwargs),
    )(*row_inputs, *weight_args)
    return out[:n]


def _reference(score, gate, gumbel, params, *, tau, use_gate_proj,
               use_gate_mlp, use_hard_sample):
    """Pure-JAX mirror of the PyTorch forward (eval mode)."""
    gl = gate @ params["wg"] + params["bg"] if use_gate_proj else gate
    dist = jnp.sum((gl[:, None, :] - params["centers"][None, :, :]) ** 2, -1)
    logits = -dist
    if use_gate_mlp:
        hh = jax.nn.relu(logits @ params["wm1"] + params["bm1"])
        logits = hh @ params["wm2"] + params["bm2"]
    probs = jax.nn.softmax((logits + gumbel) / tau, axis=-1)
    if use_hard_sample:
        probs = jax.nn.one_hot(jnp.argmax(probs, -1), probs.shape[-1],
                               dtype=probs.dtype)
    outs = []
    for ex in range(params["centers"].shape[0]):
        h1 = jax.nn.relu(score @ params["w1"][ex] + params["b1"][ex])
        h2 = jax.nn.relu(h1 @ params["w2"][ex] + params["b2"][ex])
        outs.append(h2 @ params["w3"][ex])
    expert_outputs = jnp.concatenate(outs, axis=-1) + params["b3"]
    mixed = jnp.sum(expert_outputs * probs, axis=-1, keepdims=True)
    return jax.nn.sigmoid(mixed)


if __name__ == "__main__":
    # Small, module-consistent sizes (enough rows for meaningful tiles and an
    # even number of grid steps so both v7x TensorCores get work).
    N = 512                 # rows (e.g. nodes / samples)
    C_SCORE = 32            # score_in_channels
    C_GATE = 32             # gate_in_channels
    LATENT = 16             # latent_dim
    HIDDEN = 32             # hidden_channels
    E = 4                   # num_experts
    TAU = 1.0

    key = jax.random.PRNGKey(0)
    ks = jax.random.split(key, 16)

    # Deterministic synthetic parameters (PyTorch Linear is x @ W.T + b; we
    # store the already-transposed (in, out) matrices).
    params = {
        "w1": 0.1 * jax.random.normal(ks[0], (E, C_SCORE, HIDDEN), jnp.float32),
        "b1": 0.1 * jax.random.normal(ks[1], (E, 1, HIDDEN), jnp.float32),
        "w2": 0.1 * jax.random.normal(ks[2], (E, HIDDEN, HIDDEN), jnp.float32),
        "b2": 0.1 * jax.random.normal(ks[3], (E, 1, HIDDEN), jnp.float32),
        "w3": 0.1 * jax.random.normal(ks[4], (E, HIDDEN, 1), jnp.float32),
        "b3": 0.1 * jax.random.normal(ks[5], (1, E), jnp.float32),
        "wg": 0.1 * jax.random.normal(ks[6], (C_GATE, LATENT), jnp.float32),
        "bg": 0.1 * jax.random.normal(ks[7], (1, LATENT), jnp.float32),
        "centers": jax.random.normal(ks[8], (E, LATENT), jnp.float32),
        "wm1": 0.1 * jax.random.normal(ks[9], (E, HIDDEN), jnp.float32),
        "bm1": 0.1 * jax.random.normal(ks[10], (1, HIDDEN), jnp.float32),
        "wm2": 0.1 * jax.random.normal(ks[11], (HIDDEN, E), jnp.float32),
        "bm2": 0.1 * jax.random.normal(ks[12], (1, E), jnp.float32),
    }

    score_input = jax.random.normal(ks[13], (N, C_SCORE), jnp.float32)
    gate_explicit = jax.random.normal(ks[15], (N, C_GATE), jnp.float32)

    # Gumbel(0,1) noise for gumbel_softmax (stochastic in torch; sampled here).
    u = jax.random.uniform(ks[14], (N, E), jnp.float32,
                           minval=1e-6, maxval=1.0 - 1e-6)
    gumbel = -jnp.log(-jnp.log(u))

    flags = dict(tau=TAU, use_gate_proj=True, use_gate_mlp=True,
                 use_hard_sample=False)

    # 1) Default path (gate_input=None -> gate=score; fused first matmul), f32.
    ref = _reference(score_input, score_input, gumbel, params, **flags)
    out = distance_gated_scoring(score_input, gumbel, params, gate=None,
                                 tile_n=256, compute_dtype=jnp.float32,
                                 **flags)
    out = jax.block_until_ready(out)
    assert out.shape == (N, 1)
    assert jnp.allclose(out, ref, atol=3e-5, rtol=3e-5), (
        float(jnp.max(jnp.abs(out - ref))))

    # 2) bf16 MXU path (v6e/v7x fast path): looser tolerance.
    out_bf16 = distance_gated_scoring(score_input, gumbel, params, gate=None,
                                      tile_n=256, compute_dtype=jnp.bfloat16,
                                      **flags)
    out_bf16 = jax.block_until_ready(out_bf16)
    assert out_bf16.shape == (N, 1)
    assert jnp.allclose(out_bf16, ref, atol=5e-2), (
        float(jnp.max(jnp.abs(out_bf16 - ref))))

    # 3) Explicit (distinct) gate stream -> exercises the unfused fallback.
    ref_g = _reference(score_input, gate_explicit, gumbel, params, **flags)
    out_g = distance_gated_scoring(score_input, gumbel, params,
                                   gate=gate_explicit, tile_n=256,
                                   compute_dtype=jnp.float32, **flags)
    out_g = jax.block_until_ready(out_g)
    assert out_g.shape == (N, 1)
    assert jnp.allclose(out_g, ref_g, atol=3e-5, rtol=3e-5), (
        float(jnp.max(jnp.abs(out_g - ref_g))))

    print("KERNEL_OK")
</pallas_src>

<mosaic_0001>
module attributes {stable_mosaic.version = 11 : i64} {
  func.func @kernel(%arg0: i32, %arg1: memref<256x32xf32, #tpu.memory_space<vmem>>, %arg2: memref<256x4xf32, #tpu.memory_space<vmem>>, %arg3: memref<32x148xf32, #tpu.memory_space<vmem>>, %arg4: memref<1x148xf32, #tpu.memory_space<vmem>>, %arg5: memref<128x128xf32, #tpu.memory_space<vmem>>, %arg6: memref<1x128xf32, #tpu.memory_space<vmem>>, %arg7: memref<128x4xf32, #tpu.memory_space<vmem>>, %arg8: memref<1x4xf32, #tpu.memory_space<vmem>>, %arg9: memref<1x4xf32, #tpu.memory_space<vmem>>, %arg10: memref<4x32xf32, #tpu.memory_space<vmem>>, %arg11: memref<1x32xf32, #tpu.memory_space<vmem>>, %arg12: memref<32x4xf32, #tpu.memory_space<vmem>>, %arg13: memref<1x4xf32, #tpu.memory_space<vmem>>, %arg14: memref<256x1xf32, #tpu.memory_space<vmem>>) attributes {dimension_semantics = [#tpu.dimension_semantics<parallel>], iteration_bounds = array<i64: 2>, scalar_prefetch = 0 : i64, scratch_operands = 0 : i64, tpu.core_type = #tpu.core_type<tc>, window_params = [{transform_indices = @transform_0, window_bounds = array<i64: 256, 32>}, {transform_indices = @transform_1, window_bounds = array<i64: 256, 4>}, {pipeline_mode = #tpu.pipeline_mode<synchronous>, transform_indices = @transform_2, window_bounds = array<i64: 32, 148>}, {pipeline_mode = #tpu.pipeline_mode<synchronous>, transform_indices = @transform_3, window_bounds = array<i64: 1, 148>}, {pipeline_mode = #tpu.pipeline_mode<synchronous>, transform_indices = @transform_4, window_bounds = array<i64: 128, 128>}, {pipeline_mode = #tpu.pipeline_mode<synchronous>, transform_indices = @transform_5, window_bounds = array<i64: 1, 128>}, {pipeline_mode = #tpu.pipeline_mode<synchronous>, transform_indices = @transform_6, window_bounds = array<i64: 128, 4>}, {pipeline_mode = #tpu.pipeline_mode<synchronous>, transform_indices = @transform_7, window_bounds = array<i64: 1, 4>}, {pipeline_mode = #tpu.pipeline_mode<synchronous>, transform_indices = @transform_8, window_bounds = array<i64: 1, 4>}, {pipeline_mode = #tpu.pipeline_mode<synchronous>, transform_indices = @transform_9, window_bounds = array<i64: 4, 32>}, {pipeline_mode = #tpu.pipeline_mode<synchronous>, transform_indices = @transform_10, window_bounds = array<i64: 1, 32>}, {pipeline_mode = #tpu.pipeline_mode<synchronous>, transform_indices = @transform_11, window_bounds = array<i64: 32, 4>}, {pipeline_mode = #tpu.pipeline_mode<synchronous>, transform_indices = @transform_12, window_bounds = array<i64: 1, 4>}, {transform_indices = @transform_13, window_bounds = array<i64: 256, 1>}]} {
    %c0 = arith.constant 0 : index
    %c0_0 = arith.constant 0 : index
    %0 = vector.load %arg1[%c0, %c0_0] : memref<256x32xf32, #tpu.memory_space<vmem>>, vector<256x32xf32>
    %c0_1 = arith.constant 0 : index
    %c0_2 = arith.constant 0 : index
    %1 = vector.load %arg3[%c0_1, %c0_2] : memref<32x148xf32, #tpu.memory_space<vmem>>, vector<32x148xf32>
    %cst = arith.constant dense<0.000000e+00> : vector<256x148xf32>
    %2 = tpu.matmul %0, %1, %cst {dimension_numbers = #tpu.dot_dimension_numbers<[1], [0], [0], [1], [0, 0, 1, 1], [], []>} : vector<256x32xf32>, vector<32x148xf32>, vector<256x148xf32> -> vector<256x148xf32>
    %c0_3 = arith.constant 0 : index
    %c0_4 = arith.constant 0 : index
    %3 = vector.load %arg4[%c0_3, %c0_4] : memref<1x148xf32, #tpu.memory_space<vmem>>, vector<1x148xf32>
    %4 = vector.broadcast %3 : vector<1x148xf32> to vector<256x148xf32>
    %5 = arith.addf %2, %4 : vector<256x148xf32>
    %6 = vector.extract_strided_slice %5 {offsets = [0, 0], sizes = [256, 128], strides = [1, 1]} : vector<256x148xf32> to vector<256x128xf32>
    %cst_5 = arith.constant 0.000000e+00 : f32
    %7 = vector.broadcast %cst_5 : f32 to vector<256x128xf32>
    %8 = arith.maximumf %6, %7 : vector<256x128xf32>
    %9 = vector.extract_strided_slice %5 {offsets = [0, 128], sizes = [256, 16], strides = [1, 1]} : vector<256x148xf32> to vector<256x16xf32>
    %10 = vector.extract_strided_slice %5 {offsets = [0, 144], sizes = [256, 4], strides = [1, 1]} : vector<256x148xf32> to vector<256x4xf32>
    %11 = arith.mulf %9, %9 : vector<256x16xf32>
    %cst_6 = arith.constant dense<0.000000e+00> : vector<256xf32>
    %12 = vector.multi_reduction <add>, %11, %cst_6 [1] : vector<256x16xf32> to vector<256xf32>
    %13 = vector.shape_cast %12 : vector<256xf32> to vector<256x1xf32>
    %c0_7 = arith.constant 0 : index
    %c0_8 = arith.constant 0 : index
    %14 = vector.load %arg9[%c0_7, %c0_8] : memref<1x4xf32, #tpu.memory_space<vmem>>, vector<1x4xf32>
    %15 = vector.broadcast %13 : vector<256x1xf32> to vector<256x4xf32>
    %16 = vector.broadcast %14 : vector<1x4xf32> to vector<256x4xf32>
    %17 = arith.addf %15, %16 : vector<256x4xf32>
    %cst_9 = arith.constant 2.000000e+00 : f32
    %18 = vector.broadcast %cst_9 : f32 to vector<256x4xf32>
    %19 = arith.mulf %18, %10 : vector<256x4xf32>
    %20 = arith.subf %17, %19 : vector<256x4xf32>
    %cst_10 = arith.constant 0.000000e+00 : f32
    %21 = vector.broadcast %cst_10 : f32 to vector<256x4xf32>
    %22 = arith.subf %21, %20 : vector<256x4xf32>
    %c0_11 = arith.constant 0 : index
    %c0_12 = arith.constant 0 : index
    %23 = vector.load %arg10[%c0_11, %c0_12] : memref<4x32xf32, #tpu.memory_space<vmem>>, vector<4x32xf32>
    %cst_13 = arith.constant dense<0.000000e+00> : vector<256x32xf32>
    %24 = tpu.matmul %22, %23, %cst_13 {dimension_numbers = #tpu.dot_dimension_numbers<[1], [0], [0], [1], [0, 0, 1, 1], [], []>} : vector<256x4xf32>, vector<4x32xf32>, vector<256x32xf32> -> vector<256x32xf32>
    %c0_14 = arith.constant 0 : index
    %c0_15 = arith.constant 0 : index
    %25 = vector.load %arg11[%c0_14, %c0_15] : memref<1x32xf32, #tpu.memory_space<vmem>>, vector<1x32xf32>
    %26 = vector.broadcast %25 : vector<1x32xf32> to vector<256x32xf32>
    %27 = arith.addf %24, %26 : vector<256x32xf32>
    %cst_16 = arith.constant 0.000000e+00 : f32
    %28 = vector.broadcast %cst_16 : f32 to vector<256x32xf32>
    %29 = arith.maximumf %27, %28 : vector<256x32xf32>
    %c0_17 = arith.constant 0 : index
    %c0_18 = arith.constant 0 : index
    %30 = vector.load %arg12[%c0_17, %c0_18] : memref<32x4xf32, #tpu.memory_space<vmem>>, vector<32x4xf32>
    %cst_19 = arith.constant dense<0.000000e+00> : vector<256x4xf32>
    %31 = tpu.matmul %29, %30, %cst_19 {dimension_numbers = #tpu.dot_dimension_numbers<[1], [0], [0], [1], [0, 0, 1, 1], [], []>} : vector<256x32xf32>, vector<32x4xf32>, vector<256x4xf32> -> vector<256x4xf32>
    %c0_20 = arith.constant 0 : index
    %c0_21 = arith.constant 0 : index
    %32 = vector.load %arg13[%c0_20, %c0_21] : memref<1x4xf32, #tpu.memory_space<vmem>>, vector<1x4xf32>
    %33 = vector.broadcast %32 : vector<1x4xf32> to vector<256x4xf32>
    %34 = arith.addf %31, %33 : vector<256x4xf32>
    %c0_22 = arith.constant 0 : index
    %c0_23 = arith.constant 0 : index
    %35 = vector.load %arg2[%c0_22, %c0_23] : memref<256x4xf32, #tpu.memory_space<vmem>>, vector<256x4xf32>
    %36 = arith.addf %34, %35 : vector<256x4xf32>
    %cst_24 = arith.constant 1.000000e+00 : f32
    %37 = vector.broadcast %cst_24 : f32 to vector<256x4xf32>
    %38 = arith.mulf %36, %37 : vector<256x4xf32>
    %cst_25 = arith.constant dense<0xFF800000> : vector<256xf32>
    %39 = vector.multi_reduction <maximumf>, %38, %cst_25 [1] : vector<256x4xf32> to vector<256xf32>
    %40 = vector.shape_cast %39 : vector<256xf32> to vector<256x1xf32>
    %41 = vector.broadcast %40 : vector<256x1xf32> to vector<256x4xf32>
    %42 = arith.subf %38, %41 : vector<256x4xf32>
    %43 = math.exp %42 : vector<256x4xf32>
    %cst_26 = arith.constant dense<0.000000e+00> : vector<256xf32>
    %44 = vector.multi_reduction <add>, %43, %cst_26 [1] : vector<256x4xf32> to vector<256xf32>
    %45 = vector.shape_cast %44 : vector<256xf32> to vector<256x1xf32>
    %46 = tpu.reciprocal %45 : vector<256x1xf32> -> vector<256x1xf32>
    %47 = vector.broadcast %46 : vector<256x1xf32> to vector<256x4xf32>
    %48 = arith.mulf %43, %47 : vector<256x4xf32>
    %c0_27 = arith.constant 0 : index
    %c0_28 = arith.constant 0 : index
    %49 = vector.load %arg5[%c0_27, %c0_28] : memref<128x128xf32, #tpu.memory_space<vmem>>, vector<128x128xf32>
    %cst_29 = arith.constant dense<0.000000e+00> : vector<256x128xf32>
    %50 = tpu.matmul %8, %49, %cst_29 {dimension_numbers = #tpu.dot_dimension_numbers<[1], [0], [0], [1], [0, 0, 1, 1], [], []>} : vector<256x128xf32>, vector<128x128xf32>, vector<256x128xf32> -> vector<256x128xf32>
    %c0_30 = arith.constant 0 : index
    %c0_31 = arith.constant 0 : index
    %51 = vector.load %arg6[%c0_30, %c0_31] : memref<1x128xf32, #tpu.memory_space<vmem>>, vector<1x128xf32>
    %52 = vector.broadcast %51 : vector<1x128xf32> to vector<256x128xf32>
    %53 = arith.addf %50, %52 : vector<256x128xf32>
    %cst_32 = arith.constant 0.000000e+00 : f32
    %54 = vector.broadcast %cst_32 : f32 to vector<256x128xf32>
    %55 = arith.maximumf %53, %54 : vector<256x128xf32>
    %c0_33 = arith.constant 0 : index
    %c0_34 = arith.constant 0 : index
    %56 = vector.load %arg7[%c0_33, %c0_34] : memref<128x4xf32, #tpu.memory_space<vmem>>, vector<128x4xf32>
    %cst_35 = arith.constant dense<0.000000e+00> : vector<256x4xf32>
    %57 = tpu.matmul %55, %56, %cst_35 {dimension_numbers = #tpu.dot_dimension_numbers<[1], [0], [0], [1], [0, 0, 1, 1], [], []>} : vector<256x128xf32>, vector<128x4xf32>, vector<256x4xf32> -> vector<256x4xf32>
    %c0_36 = arith.constant 0 : index
    %c0_37 = arith.constant 0 : index
    %58 = vector.load %arg8[%c0_36, %c0_37] : memref<1x4xf32, #tpu.memory_space<vmem>>, vector<1x4xf32>
    %59 = vector.broadcast %58 : vector<1x4xf32> to vector<256x4xf32>
    %60 = arith.addf %57, %59 : vector<256x4xf32>
    %61 = arith.mulf %60, %48 : vector<256x4xf32>
    %cst_38 = arith.constant dense<0.000000e+00> : vector<256xf32>
    %62 = vector.multi_reduction <add>, %61, %cst_38 [1] : vector<256x4xf32> to vector<256xf32>
    %63 = vector.shape_cast %62 : vector<256xf32> to vector<256x1xf32>
    %64 = arith.negf %63 : vector<256x1xf32>
    %65 = math.exp %64 : vector<256x1xf32>
    %cst_39 = arith.constant 1.000000e+00 : f32
    %66 = vector.broadcast %cst_39 : f32 to vector<256x1xf32>
    %67 = arith.addf %66, %65 : vector<256x1xf32>
    %68 = arith.divf %66, %67 : vector<256x1xf32>
    %c0_40 = arith.constant 0 : index
    %c0_41 = arith.constant 0 : index
    %69 = vector.load %arg14[%c0_40, %c0_41] : memref<256x1xf32, #tpu.memory_space<vmem>>, vector<256x1xf32>
    tpu.vector_store %arg14[%c0_40, %c0_41], %68 {strides = array<i32>} : memref<256x1xf32, #tpu.memory_space<vmem>>, vector<256x1xf32>,
    return
  }
  func.func @transform_0(%arg0: i32) -> (i32, i32) {
    %c0_i32 = arith.constant 0 : i32
    %c0_i32_0 = arith.constant 0 : i32
    return %arg0, %c0_i32 : i32, i32
  }
  func.func @transform_1(%arg0: i32) -> (i32, i32) {
    %c0_i32 = arith.constant 0 : i32
    %c0_i32_0 = arith.constant 0 : i32
    return %arg0, %c0_i32 : i32, i32
  }
  func.func @transform_2(%arg0: i32) -> (i32, i32) {
    %c0_i32 = arith.constant 0 : i32
    %c0_i32_0 = arith.constant 0 : i32
    %c0_i32_1 = arith.constant 0 : i32
    return %c0_i32, %c0_i32_0 : i32, i32
  }
  func.func @transform_3(%arg0: i32) -> (i32, i32) {
    %c0_i32 = arith.constant 0 : i32
    %c0_i32_0 = arith.constant 0 : i32
    %c0_i32_1 = arith.constant 0 : i32
    return %c0_i32, %c0_i32_0 : i32, i32
  }
  func.func @transform_4(%arg0: i32) -> (i32, i32) {
    %c0_i32 = arith.constant 0 : i32
    %c0_i32_0 = arith.constant 0 : i32
    %c0_i32_1 = arith.constant 0 : i32
    return %c0_i32, %c0_i32_0 : i32, i32
  }
  func.func @transform_5(%arg0: i32) -> (i32, i32) {
    %c0_i32 = arith.constant 0 : i32
    %c0_i32_0 = arith.constant 0 : i32
    %c0_i32_1 = arith.constant 0 : i32
    return %c0_i32, %c0_i32_0 : i32, i32
  }
  func.func @transform_6(%arg0: i32) -> (i32, i32) {
    %c0_i32 = arith.constant 0 : i32
    %c0_i32_0 = arith.constant 0 : i32
    %c0_i32_1 = arith.constant 0 : i32
    return %c0_i32, %c0_i32_0 : i32, i32
  }
  func.func @transform_7(%arg0: i32) -> (i32, i32) {
    %c0_i32 = arith.constant 0 : i32
    %c0_i32_0 = arith.constant 0 : i32
    %c0_i32_1 = arith.constant 0 : i32
    return %c0_i32, %c0_i32_0 : i32, i32
  }
  func.func @transform_8(%arg0: i32) -> (i32, i32) {
    %c0_i32 = arith.constant 0 : i32
    %c0_i32_0 = arith.constant 0 : i32
    %c0_i32_1 = arith.constant 0 : i32
    return %c0_i32, %c0_i32_0 : i32, i32
  }
  func.func @transform_9(%arg0: i32) -> (i32, i32) {
    %c0_i32 = arith.constant 0 : i32
    %c0_i32_0 = arith.constant 0 : i32
    %c0_i32_1 = arith.constant 0 : i32
    return %c0_i32, %c0_i32_0 : i32, i32
  }
  func.func @transform_10(%arg0: i32) -> (i32, i32) {
    %c0_i32 = arith.constant 0 : i32
    %c0_i32_0 = arith.constant 0 : i32
    %c0_i32_1 = arith.constant 0 : i32
    return %c0_i32, %c0_i32_0 : i32, i32
  }
  func.func @transform_11(%arg0: i32) -> (i32, i32) {
    %c0_i32 = arith.constant 0 : i32
    %c0_i32_0 = arith.constant 0 : i32
    %c0_i32_1 = arith.constant 0 : i32
    return %c0_i32, %c0_i32_0 : i32, i32
  }
  func.func @transform_12(%arg0: i32) -> (i32, i32) {
    %c0_i32 = arith.constant 0 : i32
    %c0_i32_0 = arith.constant 0 : i32
    %c0_i32_1 = arith.constant 0 : i32
    return %c0_i32, %c0_i32_0 : i32, i32
  }
  func.func @transform_13(%arg0: i32) -> (i32, i32) {
    %c0_i32 = arith.constant 0 : i32
    %c0_i32_0 = arith.constant 0 : i32
    return %arg0, %c0_i32 : i32, i32
  }
}

</mosaic_0001>

<bundles_post_ra>
// kernel: tpu_custom_call.1
= control target key start
LH: loop header
LB: loop body
LE: loop exit
PB: predicated region body
PF: predicated region fallthrough
CT: control target
= control target key end

     0   :  { %s4363_s25 = smov 0   ;;  %s5782_s0 = inlined_call_operand.vmem [shape: f32[512,32], index: 0, kind: input, shape index: {}]   ;;  %s5783_s1 = inlined_call_operand.vmem [shape: f32[512,4], index: 1, kind: input, shape index: {}]   ;;  %s5784_s2 = inlined_call_operand.vmem [shape: f32[32,148], index: 2, kind: input, shape index: {}]   ;;  %s5785_s3 = inlined_call_operand.vmem [shape: f32[1,148], index: 3, kind: input, shape index: {}]   ;;  %s5786_s4 = inlined_call_operand.vmem [shape: f32[128,128], index: 4, kind: input, shape index: {}]   ;;  %s5787_s5 = inlined_call_operand.vmem [shape: f32[1,128], index: 5, kind: input, shape index: {}]   ;;  %s5788_s6 = inlined_call_operand.vmem [shape: f32[128,4], index: 6, kind: input, shape index: {}]   ;;  %s5789_s7 = inlined_call_operand.vmem [shape: f32[1,4], index: 7, kind: input, shape index: {}]   ;;  %s5790_s8 = inlined_call_operand.vmem [shape: f32[1,4], index: 8, kind: input, shape index: {}]   ;;  %s5791_s9 = inlined_call_operand.vmem [shape: f32[4,32], index: 9, kind: input, shape index: {}]   ;;  %s5792_s10 = inlined_call_operand.vmem [shape: f32[1,32], index: 10, kind: input, shape index: {}]   ;;  %s5793_s11 = inlined_call_operand.vmem [shape: f32[32,4], index: 11, kind: input, shape index: {}]   ;;  %s5794_s12 = inlined_call_operand.vmem [shape: f32[1,4], index: 12, kind: input, shape index: {}]   ;;  %s5795_s13 = inlined_call_operand.vmem [shape: f32[512,1], index: 13, kind: output, shape index: {}]  }
   0x1 LB: > { %s3359_s26 = sadd.s32 4294967295, %s4289_s25   ;;  %p3363_p0 = scmp.ge.s32.totalorder %s4289_s25, 1  ;;  %s4289_s25 = sphi %s4363_s25, %s23_s25  }
   0x2   : > { %p399_p1 = scmp.lt.s32.totalorder %s4289_s25, 3 }
   0x4   : > { %p400_p2 = pnand %p3363_p0, %p399_p1 }
   0x6   : > { %403 = sbr.rel (%p400_p2) target bundleno = 1950 (0x79e), region = 72 }
   0xd   : > { %v499_v0 = vld [vmem:[%s5784_s2 + $0x8] sm:$0xff]  ;;  %v501_v1 = vld [vmem:[%s5784_s2 + $0x18] sm:$0xff]  ;;  %v498_v2 = vld [vmem:[%s5784_s2] sm:$0xff]  ;;  %s3364_s16 = sshll.u32 %s3359_s26, 5  ;;  %v4291_v7 = vmov 0.0   ;;  %vm518_vm0 = vcmask 261120   ;;  %v508_v37 = vlaneseq }
   0xe   : > { %v3937_v3 = vpack.c.bf16 %v501_v1, %v499_v0  ;;  %v500_v4 = vld [vmem:[%s5784_s2 + $0x10] sm:$0xff]  ;;  %v503_v5 = vld [vmem:[%s5784_s2 + $0x28] sm:$0xff]  ;;  %v505_v6 = vld [vmem:[%s5784_s2 + $0x38] sm:$0xff]  ;;  %679 = vmatprep.mubr.f32.mxu0 %v4291_v7  ;;  %p449_p3 = scmp.lt.s32.totalorder %s3364_s16, 63  ;;  %vm936_vm1 = vcmask 130048   ;;  %s4292_s17 = smov 112  }
   0xf   : > { %v3939_v8 = vpack.c.bf16 %v500_v4, %v498_v2  ;;  %v3941_v9 = vpack.c.bf16 %v505_v6, %v503_v5  ;;  %v502_v10 = vld [vmem:[%s5784_s2 + $0x20] sm:$0xff]  ;;  %v504_v11 = vld [vmem:[%s5784_s2 + $0x30] sm:$0xff]  ;;  %v4476_v38 = vshrl.u32 %v508_v37, 7  ;;  %vm1401_vm2 = vcmask 1043456  }
  0x10   : > { %3938 = vmatprep.subr.bf16.mxu0 %v3937_v3  ;;  %s5815_s16 = smov (!%p449_p3, %s3364_s16), 63  ;;  %v3943_v12 = vpack.c.bf16 %v504_v11, %v502_v10  ;;  %v4482_v40 = vld [vmem:[%s5785_s3] sm:$0x3]  ;;  %vm1304_vm3 = vcmask 31744   ;;  %vm3258_vm4 = vcmask 7168  }
  0x11   : > { %3940 = vmatpush1.bf16.msra.mxu0 %v3939_v8  ;;  %s4396_s28 = sshll.u32 %s5815_s16, 3  ;;  %v514_v39 = vsub.s32 1, %v4476_v38 }
  0x12   : > { %3942 = vmatprep.subr.bf16.mxu0 %v3941_v9  ;;  %s4402_s14 = scalar_lea.vmem %s5782_s0, %s4396_s28  ;;  %s5101_s26 = scalar_lea.vmem %s5783_s1, %s4396_s28 }
  0x13   : > { %v466_v13 = vld [vmem:[%s4402_s14] sm:$0xff]  ;;  %v467_v14 = vld [vmem:[%s4402_s14 + $0x8] sm:$0xff]  ;;  %v468_v15 = vld [vmem:[%s4402_s14 + $0x10] sm:$0xff]  ;;  %v4485_v41 = vrot.slane %v4482_v40, %v514_v39  ;;  %s5713_s18 = scalar_lea.vmem %s5795_s13, %s4396_s28 }
  0x14   : > { %v469_v16 = vld [vmem:[%s4402_s14 + $0x18] sm:$0xff]  ;;  %v470_v17 = vld [vmem:[%s4402_s14 + $0x20] sm:$0xff]  ;;  %v471_v18 = vld [vmem:[%s4402_s14 + $0x28] sm:$0xff] }
  0x15   : > { %3944 = vmatpush1.bf16.msra.mxu0 %v3943_v12  ;;  %v472_v19 = vld [vmem:[%s4402_s14 + $0x30] sm:$0xff]  ;;  %v473_v20 = vld [vmem:[%s4402_s14 + $0x38] sm:$0xff]  ;;  %v474_v21 = vld [vmem:[%s4402_s14 + $0x40] sm:$0xff] }
  0x16   : > { %v475_v22 = vld [vmem:[%s4402_s14 + $0x48] sm:$0xff]  ;;  %v476_v23 = vld [vmem:[%s4402_s14 + $0x50] sm:$0xff]  ;;  %v477_v24 = vld [vmem:[%s4402_s14 + $0x58] sm:$0xff] }
  0x17   : > { %v478_v25 = vld [vmem:[%s4402_s14 + $0x60] sm:$0xff]  ;;  %v479_v26 = vld [vmem:[%s4402_s14 + $0x68] sm:$0xff]  ;;  %v480_v27 = vld [vmem:[%s4402_s14 + $0x70] sm:$0xff] }
  0x18   : > { %3370 = vmatmul.mubr.msk.f32.vlgmr.msra.gmra.mrb[0].mxu0 %vm518_vm0, %v466_v13  ;;  %v481_v28 = vld [vmem:[%s4402_s14 + $0x78] sm:$0xff]  ;;  %v482_v29 = vld [vmem:[%s4402_s14 + $0x80] sm:$0xff]  ;;  %v483_v30 = vld [vmem:[%s4402_s14 + $0x88] sm:$0xff] }
  0x19   : > { %685 = vmatprep.mubr.f32.mxu0 %v4291_v7  ;;  %v484_v31 = vld [vmem:[%s4402_s14 + $0x90] sm:$0xff]  ;;  %v485_v32 = vld [vmem:[%s4402_s14 + $0x98] sm:$0xff]  ;;  %v486_v33 = vld [vmem:[%s4402_s14 + $0xa0] sm:$0xff] }
  0x1a   : > { %v487_v34 = vld [vmem:[%s4402_s14 + $0xa8] sm:$0xff]  ;;  %v488_v35 = vld [vmem:[%s4402_s14 + $0xb0] sm:$0xff]  ;;  %v489_v36 = vld [vmem:[%s4402_s14 + $0xb8] sm:$0xff] }
  0x1b   : > { %v490_v62 = vld [vmem:[%s4402_s14 + $0xc0] sm:$0xff]  ;;  %v491_v1 = vld [vmem:[%s4402_s14 + $0xc8] sm:$0xff] }
  0x1c   : > { %3371 = vmatmul.mubr.msk.f32.gmra.mrb[2].mxu0 %vm518_vm0, %v467_v14 }
  0x1d   : > { %691 = vmatprep.mubr.f32.mxu0 %v4291_v7 }
  0x20   : > { %3372 = vmatmul.mubr.msk.f32.gmra.mrb[4].mxu0 %vm518_vm0, %v468_v15 }
  0x21   : > { %697 = vmatprep.mubr.f32.mxu0 %v4291_v7 }
  0x24   : > { %3373 = vmatmul.mubr.msk.f32.gmra.mrb[6].mxu0 %vm518_vm0, %v469_v16  ;;  %v1296_v16 = vld [vmem:[%s5791_s9] sm:$0xf] }
  0x25   : > { %703 = vmatprep.mubr.f32.mxu0 %v4291_v7  ;;  %3671 = vmatprep.subr.msk.mxu1 %vm1401_vm2, %v1296_v16 }
  0x26   : > { %3672 = vmatpush3.msk.msra.mxu1 %vm1401_vm2, %v1296_v16 }
  0x28   : > { %3374 = vmatmul.mubr.msk.f32.gmra.mrb[8].mxu0 %vm518_vm0, %v470_v17 }
  0x29   : > { %709 = vmatprep.mubr.f32.mxu0 %v4291_v7 }
  0x2c   : > { %3375 = vmatmul.mubr.msk.f32.gmra.mrb[10].mxu0 %vm518_vm0, %v471_v18 }
  0x2d   : > { %715 = vmatprep.mubr.f32.mxu0 %v4291_v7 }
  0x30   : > { %3376 = vmatmul.mubr.msk.f32.gmra.mrb[12].mxu0 %vm518_vm0, %v472_v19 }
  0x31   : > { %721 = vmatprep.mubr.f32.mxu0 %v4291_v7 }
  0x34   : > { %3377 = vmatmul.mubr.msk.f32.gmra.mrb[14].mxu0 %vm518_vm0, %v473_v20  ;;  %v492_v20 = vld [vmem:[%s4402_s14 + $0xd0] sm:$0xff] }
  0x35   : > { %727 = vmatprep.mubr.f32.mxu0 %v4291_v7 }
  0x38   : > { %3378 = vmatmul.mubr.msk.f32.gmra.mrb[16].mxu0 %vm518_vm0, %v474_v21  ;;  %v493_v21 = vld [vmem:[%s4402_s14 + $0xd8] sm:$0xff] }
  0x39   : > { %733 = vmatprep.mubr.f32.mxu0 %v4291_v7 }
  0x3c   : > { %3379 = vmatmul.mubr.msk.f32.gmra.mrb[18].mxu0 %vm518_vm0, %v475_v22 }
  0x3d   : > { %739 = vmatprep.mubr.f32.mxu0 %v4291_v7 }
  0x40   : > { %3380 = vmatmul.mubr.msk.f32.gmra.mrb[20].mxu0 %vm518_vm0, %v476_v23 }
  0x41   : > { %745 = vmatprep.mubr.f32.mxu0 %v4291_v7 }
  0x44   : > { %3381 = vmatmul.mubr.msk.f32.gmra.mrb[22].mxu0 %vm518_vm0, %v477_v24 }
  0x45   : > { %751 = vmatprep.mubr.f32.mxu0 %v4291_v7 }
  0x48   : > { %3382 = vmatmul.mubr.msk.f32.gmra.mrb[24].mxu0 %vm518_vm0, %v478_v25 }
  0x49   : > { %757 = vmatprep.mubr.f32.mxu0 %v4291_v7 }
  0x4c   : > { %3383 = vmatmul.mubr.msk.f32.gmra.mrb[26].mxu0 %vm518_vm0, %v479_v26 }
  0x4d   : > { %763 = vmatprep.mubr.f32.mxu0 %v4291_v7 }
  0x50   : > { %3384 = vmatmul.mubr.msk.f32.gmra.mrb[28].mxu0 %vm518_vm0, %v480_v27 }
  0x51   : > { %769 = vmatprep.mubr.f32.mxu0 %v4291_v7 }
  0x54   : > { %3385 = vmatmul.mubr.msk.f32.gmra.mrb[30].mxu0 %vm518_vm0, %v481_v28 }
  0x55   : > { %775 = vmatprep.mubr.f32.mxu0 %v4291_v7 }
  0x58   : > { %3386 = vmatmul.mubr.msk.f32.gmra.mrb[32].mxu0 %vm518_vm0, %v482_v29 }
  0x59   : > { %781 = vmatprep.mubr.f32.mxu0 %v4291_v7 }
  0x5c   : > { %3387 = vmatmul.mubr.msk.f32.gmra.mrb[34].mxu0 %vm518_vm0, %v483_v30 }
  0x5d   : > { %787 = vmatprep.mubr.f32.mxu0 %v4291_v7 }
  0x60   : > { %3388 = vmatmul.mubr.msk.f32.gmra.mrb[36].mxu0 %vm518_vm0, %v484_v31 }
  0x61   : > { %793 = vmatprep.mubr.f32.mxu0 %v4291_v7 }
  0x64   : > { %3389 = vmatmul.mubr.msk.f32.gmra.mrb[38].mxu0 %vm518_vm0, %v485_v32 }
  0x65   : > { %799 = vmatprep.mubr.f32.mxu0 %v4291_v7 }
  0x68   : > { %3390 = vmatmul.mubr.msk.f32.gmra.mrb[40].mxu0 %vm518_vm0, %v486_v33 }
  0x69   : > { %805 = vmatprep.mubr.f32.mxu0 %v4291_v7 }
  0x6c   : > { %3391 = vmatmul.mubr.msk.f32.gmra.mrb[42].mxu0 %vm518_vm0, %v487_v34 }
  0x6d   : > { %811 = vmatprep.mubr.f32.mxu0 %v4291_v7 }
  0x70   : > { %3392 = vmatmul.mubr.msk.f32.gmra.mrb[44].mxu0 %vm518_vm0, %v488_v35 }
  0x71   : > { %817 = vmatprep.mubr.f32.mxu0 %v4291_v7 }
  0x74   : > { %3393 = vmatmul.mubr.msk.f32.gmra.mrb[46].mxu0 %vm518_vm0, %v489_v36 }
  0x75   : > { %823 = vmatprep.mubr.f32.mxu0 %v4291_v7 }
  0x78   : > { %3394 = vmatmul.mubr.msk.f32.gmra.mrb[48].mxu0 %vm518_vm0, %v490_v62 }
  0x79   : > { %829 = vmatprep.mubr.f32.mxu0 %v4291_v7 }
  0x7c   : > { %3395 = vmatmul.mubr.msk.f32.gmra.mrb[50].mxu0 %vm518_vm0, %v491_v1 }
  0x7d   : > { %835 = vmatprep.mubr.f32.mxu0 %v4291_v7 }
  0x80   : > { %3396 = vmatmul.mubr.msk.f32.gmra.mrb[52].mxu0 %vm518_vm0, %v492_v20 }
  0x81   : > { %841 = vmatprep.mubr.f32.mxu0 %v4291_v7 }
  0x84   : > { %3397 = vmatmul.mubr.msk.f32.gmra.mrb[54].mxu0 %vm518_vm0, %v493_v21 }
  0x85   : > { %847 = vmatprep.mubr.f32.mxu0 %v4291_v7 }
  0xeb   : > { %v4487_v42 = vpop.f32.mrb[0].mxu0 }
  0xec   : > { %v683_v43 = vpop.f32.mrb[1].mxu0 }
  0xed   : > { %v684_v44 = vadd.f32 %v683_v43, %v4485_v41 }
  0xef   : > { %v1072_v45 = vmul.f32 2.0, %v684_v44  ;;  %v904_v46 = vmul.f32 %v684_v44, %v684_v44  ;;  %v4490_v47 = vpop.f32.mrb[2].mxu0 }
  0xf0   : > { %v689_v48 = vpop.f32.mrb[3].mxu0 }
  0xf1   : > { %1136 = vrot.lane.b32.xlu1 %v1072_v45, %s4292_s17  ;;  %v937_v49 = vsel %vm936_vm1, %v904_v46, 0.0  ;;  %v690_v57 = vadd.f32 %v689_v48, %v4485_v41 }
  0xf2   : > { %938 = vadd.xlane.f32.xlu0 %v937_v49 }
  0xf3   : > { %v4494_v50 = vpop.f32.mrb[4].mxu0  ;;  %v1073_v60 = vmul.f32 2.0, %v690_v57  ;;  %v905_v14 = vmul.f32 %v690_v57, %v690_v57 }
  0xf4   : > { %v695_v51 = vpop.f32.mrb[5].mxu0 }
  0xf5   : > { %v696_v2 = vadd.f32 %v695_v51, %v4485_v41  ;;  %v940_v15 = vsel %vm936_vm1, %v905_v14, 0.0 }
  0xf7   : > { %v4496_v52 = vpop.f32.mrb[6].mxu0  ;;  %v906_v5 = vmul.f32 %v696_v2, %v696_v2  ;;  %v1074_v18 = vmul.f32 2.0, %v696_v2  ;;  %v495_v2 = vld [vmem:[%s4402_s14 + $0xe8] sm:$0xff] }
  0xf8   : > { %v701_v53 = vpop.f32.mrb[7].mxu0 }
  0xf9   : > { %v943_v9 = vsel %vm936_vm1, %v906_v5, 0.0  ;;  %v702_v12 = vadd.f32 %v701_v53, %v4485_v41 }
  0xfb   : > { %v4498_v54 = vpop.f32.mrb[8].mxu0  ;;  %v1075_v13 = vmul.f32 2.0, %v702_v12  ;;  %v907_v25 = vmul.f32 %v702_v12, %v702_v12 }
  0xfc   : > { %v707_v55 = vpop.f32.mrb[9].mxu0 }
  0xfd   : > { %v708_v17 = vadd.f32 %v707_v55, %v4485_v41  ;;  %v946_v29 = vsel %vm936_vm1, %v907_v25, 0.0 }
  0xff   : > { %v4500_v56 = vpop.f32.mrb[10].mxu0  ;;  %v1076_v19 = vmul.f32 2.0, %v708_v17  ;;  %v908_v33 = vmul.f32 %v708_v17, %v708_v17 }
 0x100   : > { %v713_v58 = vpop.f32.mrb[11].mxu0 }
 0x101   : > { %v714_v23 = vadd.f32 %v713_v58, %v4485_v41  ;;  %v949_v34 = vsel %vm936_vm1, %v908_v33, 0.0  ;;  %v494_v58 = vld [vmem:[%s4402_s14 + $0xe0] sm:$0xff] }
 0x102   : > { %3398 = vmatmul.mubr.msk.f32.gmra.mrb[56].mxu0 %vm518_vm0, %v494_v58 }
 0x103   : > { %v4503_v59 = vpop.f32.mrb[12].mxu0  ;;  %v909_v27 = vmul.f32 %v714_v23, %v714_v23  ;;  %v1077_v48 = vmul.f32 2.0, %v714_v23  ;;  %853 = vmatprep.mubr.f32.mxu0 %v4291_v7 }
 0x104   : > { %v719_v61 = vpop.f32.mrb[13].mxu0 }
 0x105   : > { %v952_v30 = vsel %vm936_vm1, %v909_v27, 0.0  ;;  %v720_v31 = vadd.f32 %v719_v61, %v4485_v41 }
 0x106   : > { %3399 = vmatmul.mubr.msk.f32.gmra.mrb[58].mxu0 %vm518_vm0, %v495_v2 }
 0x107   : > { %v4506_v63 = vpop.f32.mrb[14].mxu0  ;;  %v1078_v32 = vmul.f32 2.0, %v720_v31  ;;  %859 = vmatprep.mubr.f32.mxu0 %v4291_v7  ;;  %v910_v20 = vmul.f32 %v720_v31, %v720_v31 }
 0x108   : > { %1138 = vrot.lane.b32.xlu0 %v1073_v60, %s4292_s17  ;;  %v4510_v0 = vpop.f32.mrb[15].mxu0 }
 0x109   : > { %v726_v61 = vadd.f32 %v4510_v0, %v4485_v41  ;;  %v4607_v0 = vld [vmem:[%s5790_s8] ss:$0 sm:$0xff]  ;;  %v955_v25 = vsel %vm936_vm1, %v910_v20, 0.0 }
 0x10b   : > { %v4515_v3 = vpop.f32.mrb[16].mxu0  ;;  %v911_v12 = vmul.f32 %v726_v61, %v726_v61 }
 0x10c   : > { %v4518_v4 = vpop.f32.mrb[17].mxu0 }
 0x10f   : > { %v4521_v6 = vpop.f32.mrb[18].mxu0 }
 0x110   : > { %v4523_v8 = vpop.f32.mrb[19].mxu0 }
 0x113   : > { %v4526_v10 = vpop.f32.mrb[20].mxu0 }
 0x114   : > { %v4528_v11 = vpop.f32.mrb[21].mxu0 }
 0x115   : > { %944 = vadd.xlane.f32.xlu1 %v943_v9  ;;  %v744_v23 = vadd.f32 %v4528_v11, %v4485_v41  ;;  %v497_v11 = vld [vmem:[%s4402_s14 + $0xf8] sm:$0xff] }
 0x117   : > { %v4543_v22 = vpop.f32.mrb[22].mxu0  ;;  %v1082_v27 = vmul.f32 2.0, %v744_v23 }
 0x118   : > { %v4547_v24 = vpop.f32.mrb[23].mxu0 }
 0x11b   : > { %v4550_v26 = vpop.f32.mrb[24].mxu0 }
 0x11c   : > { %v4552_v28 = vpop.f32.mrb[25].mxu0 }
 0x11d   : > { %v4640_v20 = vadd.f32 %v4552_v28, %v4485_v41 }
 0x11f   : > { %v4559_v35 = vpop.f32.mrb[26].mxu0 }
 0x120   : > { %v4561_v36 = vpop.f32.mrb[27].mxu0 }
 0x123   : > { %v4563_v37 = vpop.f32.mrb[28].mxu0 }
 0x124   : > { %v4565_v39 = vpop.f32.mrb[29].mxu0 }
 0x126   : > { %1142 = vrot.lane.b32.xlu1 %v1075_v13, %s4292_s17 }
 0x127   : > { %941 = vadd.xlane.f32.xlu0 %v940_v15  ;;  %v4567_v43 = vpop.f32.mrb[30].mxu0  ;;  %v958_v15 = vsel %vm936_vm1, %v911_v12, 0.0  ;;  %v914_v12 = vmul.f32 %v744_v23, %v744_v23  ;;  %v1084_v23 = vmul.f32 2.0, %v4640_v20 }
 0x128   : > { %v4569_v44 = vpop.f32.mrb[31].mxu0 }
 0x12b   : > { %v4571_v45 = vpop.f32.mrb[32].mxu0 }
 0x12c   : > { %v4573_v46 = vpop.f32.mrb[33].mxu0 }
 0x12f   : > { %v4575_v49 = vpop.f32.mrb[34].mxu0 }
 0x130   : > { %v4577_v51 = vpop.f32.mrb[35].mxu0 }
 0x133   : > { %v4579_v53 = vpop.f32.mrb[36].mxu0 }
 0x134   : > { %v4581_v55 = vpop.f32.mrb[37].mxu0 }
 0x137   : > { %v4584_v57 = vpop.f32.mrb[38].mxu0 }
 0x138   : > { %v4587_v60 = vpop.f32.mrb[39].mxu0 }
 0x13b   : > { %v4592_v62 = vpop.f32.mrb[40].mxu0 }
 0x13c   : > { %v4595_v1 = vpop.f32.mrb[41].mxu0 }
 0x13d   : > { %1140 = vrot.lane.b32.xlu0 %v1074_v18, %s4292_s17 }
 0x13f   : > { %v4598_v5 = vpop.f32.mrb[42].mxu0 }
 0x140   : > { %v4600_v9 = vpop.f32.mrb[43].mxu0 }
 0x141   : > { %1144 = vrot.lane.b32.xlu0 %v1076_v19, %s4292_s17  ;;  %v732_v19 = vadd.f32 %v4518_v4, %v4485_v41 }
 0x143   : > { %v1080_v21 = vmul.f32 2.0, %v732_v19 }
 0x14a   : > { %947 = vadd.xlane.f32.xlu1 %v946_v29  ;;  %v1079_v29 = vmul.f32 2.0, %v726_v61 }
 0x14e   : > { %953 = vadd.xlane.f32.xlu1 %v952_v30  ;;  %v496_v30 = vld [vmem:[%s4402_s14 + $0xf0] sm:$0xff] }
 0x14f   : > { %3400 = vmatmul.mubr.msk.f32.gmra.mrb[60].mxu0 %vm518_vm0, %v496_v30 }
 0x150   : > { %865 = vmatprep.mubr.f32.mxu0 %v4291_v7 }
 0x153   : > { %3401 = vmatmul.mubr.msk.f32.gmra.mrb[62].mxu0 %vm518_vm0, %v497_v11 }
 0x15f   : > { %1148 = vrot.lane.b32.xlu1 %v1078_v32, %s4292_s17  ;;  %v4621_v32 = vpop.f32.mrb[44].mxu0 }
 0x160   : > { %950 = vadd.xlane.f32.xlu0 %v949_v34  ;;  %v4624_v4 = vpop.f32.mrb[45].mxu0 }
 0x161   : > { %v4626_v31 = vpop.f32.mrb[46].mxu0 }
 0x162   : > { %5796 = vst [vmem:[#allocation2_spill] sm:$0xff] %v4626_v31  ;;  %v4630_v33 = vpop.f32.mrb[47].mxu0 }
 0x163   : > { %v1137_v16 = vpop.permute.xlu1 %1136  ;;  %v4649_v28 = vpop.f32.mrb[48].mxu0 }
 0x164   : > { %5797 = vst [vmem:[#allocation3_spill] sm:$0xff] %v4649_v28 }
 0x176   : > { %1146 = vrot.lane.b32.xlu0 %v1077_v48, %s4292_s17 }
 0x17f   : > { %v939_v13 = vpop.xlane.xlu0 %938 }
 0x180   : > { %v1040_v14 = vadd.f32 %v4607_v0, %v939_v13 }
 0x182   : > { %v1232_v17 = vsub.f32 %v1040_v14, %v1137_v16 }
 0x183   : > { %959 = vadd.xlane.f32.xlu1 %v958_v15  ;;  %v1139_v34 = vpop.permute.xlu0 %1138 }
 0x184   : > { %v1264_v18 = vsub.f32 0.0, %v1232_v17  ;;  %v967_v17 = vsel %vm936_vm1, %v914_v12, 0.0  ;;  %v4664_v12 = vadd.f32 %v4569_v44, %v4485_v41 }
 0x186   : > { %3673 = vmatprep.mubr.msk.f32.mxu1 %vm1304_vm3, %v1264_v18  ;;  %v912_v18 = vmul.f32 %v732_v19, %v732_v19 }
 0x194   : > { %1152 = vrot.lane.b32.xlu1 %v1080_v21, %s4292_s17  ;;  %v961_v21 = vsel %vm936_vm1, %v912_v18, 0.0  ;;  %v4675_v18 = vadd.f32 %v4577_v51, %v4485_v41 }
 0x195   : > { %956 = vadd.xlane.f32.xlu0 %v955_v25 }
 0x198   : > { %1156 = vrot.lane.b32.xlu1 %v1082_v27, %s4292_s17 }
 0x1a2   : > { %v945_v48 = vpop.xlane.xlu1 %944 }
 0x1a3   : > { %v1042_v61 = vadd.f32 %v4607_v0, %v945_v48  ;;  %v4651_v48 = vpop.f32.mrb[49].mxu0 }
 0x1a6   : > { %v1143_v25 = vpop.permute.xlu1 %1142 }
 0x1ab   : > { %1150 = vrot.lane.b32.xlu0 %v1079_v29, %s4292_s17  ;;  %v738_v29 = vadd.f32 %v4523_v8, %v4485_v41  ;;  %v4660_v8 = vadd.f32 %v4561_v36, %v4485_v41 }
 0x1ad   : > { %v1081_v19 = vmul.f32 2.0, %v738_v29 }
 0x1b4   : > { %v942_v58 = vpop.xlane.xlu0 %941 }
 0x1b5   : > { %v1041_v2 = vadd.f32 %v4607_v0, %v942_v58  ;;  %v4654_v58 = vpop.f32.mrb[50].mxu0 }
 0x1b6   : > { %5798 = vst [vmem:[#allocation4_spill] sm:$0xff] %v4654_v58 }
 0x1b7   : > { %v1233_v13 = vsub.f32 %v1041_v2, %v1139_v34 }
 0x1b8   : > { %v1141_v14 = vpop.permute.xlu0 %1140 }
 0x1b9   : > { %v1265_v15 = vsub.f32 0.0, %v1233_v13  ;;  %v1234_v16 = vsub.f32 %v1042_v61, %v1141_v14  ;;  %v4656_v61 = vpop.f32.mrb[51].mxu0  ;;  %v917_v13 = vmul.f32 %v4660_v8, %v4660_v8 }
 0x1bb   : > { %v1266_v7 = vsub.f32 0.0, %v1234_v16  ;;  %3674 = vmatmul.mubr.msk.f32.vlgmr.msra.gmra.mrb[0].mxu1 %vm1304_vm3, %v1265_v15  ;;  %v919_v16 = vmul.f32 %v4664_v12, %v4664_v12  ;;  %v976_v36 = vsel %vm936_vm1, %v917_v13, 0.0  ;;  %v913_v13 = vmul.f32 %v738_v29, %v738_v29  ;;  %v4703_v29 = vpop.f32.mrb[52].mxu0 }
 0x1bc   : > { %968 = vadd.xlane.f32.xlu1 %v967_v17  ;;  %v1145_v2 = vpop.permute.xlu0 %1144  ;;  %5799 = vst [vmem:[#allocation5_spill] sm:$0xff] %v4703_v29 }
 0x1bd   : > { %3676 = vmatprep.mubr.msk.f32.mxu1 %vm1304_vm3, %v1266_v7 }
 0x1ca   : > { %962 = vadd.xlane.f32.xlu0 %v961_v21 }
 0x1cd   : > { %1160 = vrot.lane.b32.xlu1 %v1084_v23, %s4292_s17  ;;  %v982_v23 = vsel %vm936_vm1, %v919_v16, 0.0 }
 0x1d7   : > { %v948_v27 = vpop.xlane.xlu1 %947 }
 0x1d8   : > { %v1043_v30 = vadd.f32 %v4607_v0, %v948_v27 }
 0x1da   : > { %v1235_v11 = vsub.f32 %v1043_v30, %v1143_v25  ;;  %v4680_v30 = vadd.f32 %v4587_v60, %v4485_v41 }
 0x1db   : > { %v954_v14 = vpop.xlane.xlu1 %953 }
 0x1dc   : > { %v1267_v34 = vsub.f32 0.0, %v1235_v11  ;;  %v1045_v7 = vadd.f32 %v4607_v0, %v954_v14  ;;  %v921_v11 = vmul.f32 %v4675_v18, %v4675_v18 }
 0x1de   : > { %3677 = vmatmul.mubr.msk.f32.gmra.mrb[2].mxu1 %vm1304_vm3, %v1267_v34  ;;  %v988_v51 = vsel %vm936_vm1, %v921_v11, 0.0  ;;  %v4689_v34 = vadd.f32 %v4600_v9, %v4485_v41  ;;  %v768_v9 = vadd.f32 %v4565_v39, %v4485_v41 }
 0x1e0   : > { %1154 = vrot.lane.b32.xlu0 %v1081_v19, %s4292_s17  ;;  %v925_v14 = vmul.f32 %v4689_v34, %v4689_v34 }
 0x1e2   : > { %v1000_v16 = vsel %vm936_vm1, %v925_v14, 0.0  ;;  %v4718_v14 = vadd.f32 %v4630_v33, %v4485_v41  ;;  %v918_v33 = vmul.f32 %v768_v9, %v768_v9 }
 0x1ed   : > { %v951_v15 = vpop.xlane.xlu0 %950 }
 0x1ee   : > { %v1044_v17 = vadd.f32 %v4607_v0, %v951_v15  ;;  %v964_v15 = vsel %vm936_vm1, %v913_v13, 0.0 }
 0x1f0   : > { %v1236_v44 = vsub.f32 %v1044_v17, %v1145_v2  ;;  %v923_v2 = vmul.f32 %v4680_v30, %v4680_v30  ;;  %v750_v17 = vadd.f32 %v4547_v24, %v4485_v41 }
 0x1f1   : > { %977 = vadd.xlane.f32.xlu1 %v976_v36  ;;  %v1147_v21 = vpop.permute.xlu0 %1146 }
 0x1f2   : > { %v1268_v25 = vsub.f32 0.0, %v1236_v44  ;;  %v1237_v27 = vsub.f32 %v1045_v7, %v1147_v21  ;;  %v994_v60 = vsel %vm936_vm1, %v923_v2, 0.0  ;;  %v1086_v7 = vmul.f32 2.0, %v768_v9  ;;  %v4706_v44 = vpop.f32.mrb[53].mxu0 }
 0x1f3   : > { %v1083_v36 = vmul.f32 2.0, %v750_v17  ;;  %v4708_v21 = vpop.f32.mrb[54].mxu0  ;;  %v840_v58 = vadd.f32 %v4706_v44, %v4485_v41 }
 0x1f4   : > { %v1269_v19 = vsub.f32 0.0, %v1237_v27  ;;  %3679 = vmatprep.mubr.msk.f32.mxu1 %vm1304_vm3, %v1268_v25  ;;  %5800 = vst [vmem:[#allocation6_spill] sm:$0xff] %v4708_v21  ;;  %v1149_v25 = vpop.permute.xlu1 %1148 }
 0x1f5   : > { %983 = vadd.xlane.f32.xlu1 %v982_v23  ;;  %v4710_v23 = vpop.f32.mrb[55].mxu0 }
 0x1f6   : > { %3680 = vmatmul.mubr.msk.f32.gmra.mrb[4].mxu1 %vm1304_vm3, %v1269_v19 }
 0x1f9   : > { %989 = vadd.xlane.f32.xlu1 %v988_v51 }
 0x1fd   : > { %995 = vadd.xlane.f32.xlu1 %v994_v60 }
 0x1ff   : > { %965 = vadd.xlane.f32.xlu0 %v964_v15  ;;  %v915_v15 = vmul.f32 %v750_v17, %v750_v17  ;;  %v792_v17 = vadd.f32 %v4581_v55, %v4485_v41  ;;  %v4738_v55 = vpop.f32.mrb[56].mxu0 }
 0x200   : > { %5801 = vst [vmem:[#allocation7_spill] sm:$0xff] %v4738_v55 }
 0x201   : > { %1001 = vadd.xlane.f32.xlu1 %v1000_v16  ;;  %v927_v16 = vmul.f32 %v4718_v14, %v4718_v14 }
 0x210   : > { %v960_v27 = vpop.xlane.xlu1 %959 }
 0x211   : > { %v1047_v24 = vadd.f32 %v4607_v0, %v960_v27  ;;  %v780_v27 = vadd.f32 %v4573_v46, %v4485_v41 }
 0x212   : > { %1164 = vrot.lane.b32.xlu1 %v1086_v7, %s4292_s17  ;;  %v970_v7 = vsel %vm936_vm1, %v915_v15, 0.0 }
 0x213   : > { %v1088_v9 = vmul.f32 2.0, %v780_v27 }
 0x215   : > { %1158 = vrot.lane.b32.xlu0 %v1083_v36, %s4292_s17  ;;  %v1006_v36 = vsel %vm936_vm1, %v927_v16, 0.0 }
 0x222   : > { %v957_v39 = vpop.xlane.xlu0 %956 }
 0x223   : > { %v1046_v11 = vadd.f32 %v4607_v0, %v957_v39 }
 0x225   : > { %v1238_v19 = vsub.f32 %v1046_v11, %v1149_v25  ;;  %v916_v25 = vmul.f32 %v4640_v20, %v4640_v20  ;;  %v979_v11 = vsel %vm936_vm1, %v918_v33, 0.0  ;;  %v4752_v33 = vadd.f32 %v4656_v61, %v4485_v41 }
 0x226   : > { %v1151_v51 = vpop.permute.xlu0 %1150  ;;  %v510_v61 = vsub.s32 0, %v4476_v38 }
 0x227   : > { %v1270_v2 = vsub.f32 0.0, %v1238_v19  ;;  %v1239_v60 = vsub.f32 %v1047_v24, %v1151_v51  ;;  %v973_v39 = vsel %vm936_vm1, %v916_v25, 0.0  ;;  %v920_v24 = vmul.f32 %v780_v27, %v780_v27 }
 0x228   : > { %v804_v19 = vadd.f32 %v4595_v1, %v4485_v41  ;;  %v922_v51 = vmul.f32 %v792_v17, %v792_v17  ;;  %v1085_v27 = vmul.f32 2.0, %v4660_v8 }
 0x229   : > { %v1271_v13 = vsub.f32 0.0, %v1239_v60  ;;  %3682 = vmatprep.mubr.msk.f32.mxu1 %vm1304_vm3, %v1270_v2  ;;  %v985_v20 = vsel %vm936_vm1, %v920_v24, 0.0 }
 0x22a   : > { %v924_v2 = vmul.f32 %v804_v19, %v804_v19  ;;  %v991_v46 = vsel %vm936_vm1, %v922_v51, 0.0  ;;  %v1090_v51 = vmul.f32 2.0, %v792_v17 }
 0x22b   : > { %3683 = vmatmul.mubr.msk.f32.gmra.mrb[6].mxu1 %vm1304_vm3, %v1271_v13  ;;  %v4740_v13 = vpop.f32.mrb[57].mxu0 }
 0x22c   : > { %v997_v60 = vsel %vm936_vm1, %v924_v2, 0.0  ;;  %v4742_v15 = vpop.f32.mrb[58].mxu0 }
 0x22d   : > { %5802 = vst [vmem:[#allocation8_spill] sm:$0xff] %v4742_v15  ;;  %v4744_v1 = vpop.f32.mrb[59].mxu0 }
 0x234   : > { %971 = vadd.xlane.f32.xlu0 %v970_v7 }
 0x236   : > { %1007 = vadd.xlane.f32.xlu1 %v1006_v36  ;;  %v1153_v36 = vpop.permute.xlu1 %1152 }
 0x238   : > { %974 = vadd.xlane.f32.xlu0 %v973_v39 }
 0x23c   : > { %980 = vadd.xlane.f32.xlu0 %v979_v11  ;;  %v929_v11 = vmul.f32 %v4752_v33, %v4752_v33 }
 0x23e   : > { %v1012_v24 = vsel %vm936_vm1, %v929_v11, 0.0 }
 0x240   : > { %986 = vadd.xlane.f32.xlu0 %v985_v20  ;;  %v4759_v20 = vadd.f32 %v4624_v4, %v4485_v41 }
 0x242   : > { %v926_v8 = vmul.f32 %v4759_v20, %v4759_v20 }
 0x244   : > { %992 = vadd.xlane.f32.xlu0 %v991_v46  ;;  %v1003_v2 = vsel %vm936_vm1, %v926_v8, 0.0  ;;  %v1157_v46 = vpop.permute.xlu1 %1156 }
 0x247   : > { %1168 = vrot.lane.b32.xlu1 %v1088_v9, %s4292_s17  ;;  %v4766_v9 = vpop.f32.mrb[60].mxu0 }
 0x248   : > { %998 = vadd.xlane.f32.xlu0 %v997_v60  ;;  %5803 = vst [vmem:[#allocation9_spill] sm:$0xff] %v4766_v9  ;;  %v4769_v60 = vrot.slane %v4482_v40, %v510_v61 }
 0x257   : > { %v963_v16 = vpop.xlane.xlu0 %962 }
 0x258   : > { %v1048_v7 = vadd.f32 %v4607_v0, %v963_v16  ;;  %v4771_v16 = vpop.f32.mrb[61].mxu0 }
 0x259   : > { %v867_v4 = vpop.f32.mrb[62].mxu0 }
 0x25a   : > { %v1240_v25 = vsub.f32 %v1048_v7, %v1153_v36  ;;  %v4774_v7 = vadd.f32 %v867_v4, %v4769_v60  ;;  %v4776_v17 = vpop.f32.mrb[63].mxu0  ;;  %v969_v36 = vpop.xlane.xlu1 %968  ;;  %v4790_v4 = vadd.f32 %v4710_v23, %v4485_v41 }
 0x25c   : > { %v1272_v39 = vsub.f32 0.0, %v1240_v25  ;;  %5804 = vst [vmem:[#allocation10_spill] sm:$0xff] %v4774_v7  ;;  %v1155_v25 = vpop.permute.xlu0 %1154 }
 0x25e   : > { %1162 = vrot.lane.b32.xlu0 %v1085_v27, %s4292_s17  ;;  %3685 = vmatprep.mubr.msk.f32.mxu1 %vm1304_vm3, %v1272_v39  ;;  %v1050_v27 = vadd.f32 %v4607_v0, %v969_v36 }
 0x260   : > { %v1242_v11 = vsub.f32 %v1050_v27, %v1157_v46  ;;  %v931_v46 = vmul.f32 %v4790_v4, %v4790_v4  ;;  %v1092_v27 = vmul.f32 2.0, %v804_v19  ;;  %v1089_v19 = vmul.f32 2.0, %v4675_v18 }
 0x262   : > { %v1274_v61 = vsub.f32 0.0, %v1242_v11  ;;  %v1018_v36 = vsel %vm936_vm1, %v931_v46, 0.0  ;;  %v1161_v11 = vpop.permute.xlu1 %1160 }
 0x26b   : > { %1013 = vadd.xlane.f32.xlu1 %v1012_v24 }
 0x27c   : > { %1172 = vrot.lane.b32.xlu1 %v1090_v51, %s4292_s17  ;;  %v1087_v51 = vmul.f32 2.0, %v4664_v12  ;;  %v4797_v12 = vadd.f32 %v4651_v48, %v4485_v41 }
 0x27d   : > { %1004 = vadd.xlane.f32.xlu0 %v1003_v2 }
 0x28c   : > { %v966_v39 = vpop.xlane.xlu0 %965 }
 0x28d   : > { %v1049_v38 = vadd.f32 %v4607_v0, %v966_v39 }
 0x28e   : > { %v4780_v24 = vpop.f32.mrb[0].mxu1 }
 0x28f   : > { %v1241_v40 = vsub.f32 %v1049_v38, %v1155_v25  ;;  %v4782_v8 = vpop.f32.mrb[1].mxu1  ;;  %v928_v25 = vmul.f32 %v4797_v12, %v4797_v12 }
 0x291   : > { %v1273_v2 = vsub.f32 0.0, %v1241_v40  ;;  %v1009_v39 = vsel %vm936_vm1, %v928_v25, 0.0  ;;  %v978_v40 = vpop.xlane.xlu1 %977 }
 0x293   : > { %1166 = vrot.lane.b32.xlu0 %v1087_v51, %s4292_s17  ;;  %3686 = vmatmul.mubr.msk.f32.gmra.mrb[8].mxu1 %vm1304_vm3, %v1273_v2  ;;  %v1159_v51 = vpop.permute.xlu0 %1158 }
 0x294   : > { %3688 = vmatprep.mubr.msk.f32.mxu1 %vm1304_vm3, %v1274_v61 }
 0x295   : > { %v984_v2 = vpop.xlane.xlu1 %983 }
 0x299   : > { %v4809_v7 = vpop.xlane.xlu1 %989 }
 0x29d   : > { %v4822_v18 = vpop.xlane.xlu1 %995 }
 0x2a0   : > { %1019 = vadd.xlane.f32.xlu1 %v1018_v36 }
 0x2b1   : > { %1176 = vrot.lane.b32.xlu1 %v1092_v27, %s4292_s17  ;;  %v4803_v23 = vpop.f32.mrb[2].mxu1 }
 0x2b2   : > { %1010 = vadd.xlane.f32.xlu0 %v1009_v39  ;;  %v4805_v38 = vpop.f32.mrb[3].mxu1 }
 0x2c1   : > { %v972_v61 = vpop.xlane.xlu0 %971 }
 0x2c2   : > { %v1051_v48 = vadd.f32 %v4607_v0, %v972_v61 }
 0x2c4   : > { %v1243_v46 = vsub.f32 %v1051_v48, %v1159_v51  ;;  %v4820_v51 = vadd.f32 %v4744_v1, %v4485_v41  ;;  %v1053_v1 = vadd.f32 %v4607_v0, %v978_v40  ;;  %v1091_v40 = vmul.f32 2.0, %v4680_v30 }
 0x2c5   : > { %v975_v36 = vpop.xlane.xlu0 %974 }
 0x2c6   : > { %v1275_v25 = vsub.f32 0.0, %v1243_v46  ;;  %v1052_v27 = vadd.f32 %v4607_v0, %v975_v36  ;;  %v4827_v46 = vpop.xlane.xlu1 %1001 }
 0x2c8   : > { %v1244_v9 = vsub.f32 %v1052_v27, %v1161_v11  ;;  %1170 = vrot.lane.b32.xlu0 %v1089_v19, %s4292_s17  ;;  %3689 = vmatmul.mubr.msk.f32.gmra.mrb[10].mxu1 %vm1304_vm3, %v1275_v25  ;;  %v933_v11 = vmul.f32 %v4820_v51, %v4820_v51 }
 0x2c9   : > { %v4814_v39 = vpop.f32.mrb[4].mxu1  ;;  %v981_v15 = vpop.xlane.xlu0 %980 }
 0x2ca   : > { %v1276_v55 = vsub.f32 0.0, %v1244_v9  ;;  %v4816_v21 = vpop.f32.mrb[5].mxu1  ;;  %v1024_v36 = vsel %vm936_vm1, %v933_v11, 0.0  ;;  %v1054_v9 = vadd.f32 %v4607_v0, %v981_v15  ;;  %v1165_v25 = vpop.permute.xlu1 %1164  ;;  %v930_v11 = vmul.f32 %v840_v58, %v840_v58 }
 0x2cb   : > { %v1094_v15 = vmul.f32 2.0, %v4759_v20 }
 0x2cc   : > { %3691 = vmatprep.mubr.msk.f32.mxu1 %vm1304_vm3, %v1276_v55  ;;  %v1246_v27 = vsub.f32 %v1054_v9, %v1165_v25  ;;  %v1055_v25 = vadd.f32 %v4607_v0, %v984_v2  ;;  %v1093_v2 = vmul.f32 2.0, %v4689_v34 }
 0x2cd   : > { %v987_v61 = vpop.xlane.xlu0 %986 }
 0x2ce   : > { %v1278_v31 = vsub.f32 0.0, %v1246_v27  ;;  %v4853_v20 = vpop.xlane.xlu1 %1007 }
 0x2d1   : > { %v993_v48 = vpop.xlane.xlu0 %992 }
 0x2d2   : > { %v1169_v27 = vpop.permute.xlu1 %1168 }
 0x2d5   : > { %1025 = vadd.xlane.f32.xlu1 %v1024_v36  ;;  %v4831_v19 = vpop.xlane.xlu0 %998  ;;  %v1015_v36 = vsel %vm936_vm1, %v930_v11, 0.0 }
 0x2d9   : > { %v1163_v29 = vpop.permute.xlu0 %1162 }
 0x2da   : > { %v1245_v55 = vsub.f32 %v1053_v1, %v1163_v29  ;;  %v1056_v1 = vadd.f32 %v4607_v0, %v987_v61  ;;  %v1099_v61 = vmul.f32 2.0, %v4790_v4 }
 0x2dc   : > { %v1277_v28 = vsub.f32 0.0, %v1245_v55  ;;  %v1248_v55 = vsub.f32 %v1056_v1, %v1169_v27  ;;  %v1058_v27 = vadd.f32 %v4607_v0, %v993_v48  ;;  %v1095_v48 = vmul.f32 2.0, %v4718_v14 }
 0x2de   : > { %3692 = vmatmul.mubr.msk.f32.gmra.mrb[12].mxu1 %vm1304_vm3, %v1277_v28  ;;  %v4849_v28 = vadd.f32 %v4776_v17, %v4485_v41  ;;  %v852_v17 = vadd.f32 %v4740_v13, %v4485_v41 }
 0x2df   : > { %3694 = vmatprep.mubr.msk.f32.mxu1 %vm1304_vm3, %v1278_v31 }
 0x2e0   : > { %v935_v31 = vmul.f32 %v4849_v28, %v4849_v28 }
 0x2e2   : > { %v1030_v9 = vsel %vm936_vm1, %v935_v31, 0.0  ;;  %v932_v31 = vmul.f32 %v852_v17, %v852_v17 }
 0x2e6   : > { %1180 = vrot.lane.b32.xlu1 %v1094_v15, %s4292_s17 }
 0x2e7   : > { %1016 = vadd.xlane.f32.xlu0 %v1015_v36 }
 0x2f8   : > { %v4869_v1 = vpop.xlane.xlu1 %1013 }
 0x2fd   : > { %1174 = vrot.lane.b32.xlu0 %v1091_v40, %s4292_s17  ;;  %v1280_v40 = vsub.f32 0.0, %v1248_v55  ;;  %v1057_v55 = vadd.f32 %v4607_v0, %v4809_v7 }
 0x2fe   : > { %v4843_v29 = vpop.f32.mrb[6].mxu1 }
 0x2ff   : > { %v4845_v44 = vpop.f32.mrb[7].mxu1 }
 0x30a   : > { %1031 = vadd.xlane.f32.xlu1 %v1030_v9  ;;  %v4857_v30 = vpop.xlane.xlu0 %1004  ;;  %v1021_v9 = vsel %vm936_vm1, %v932_v31, 0.0 }
 0x30e   : > { %v1167_v11 = vpop.permute.xlu0 %1166 }
 0x30f   : > { %v1247_v15 = vsub.f32 %v1055_v25, %v1167_v11  ;;  %v1173_v25 = vpop.permute.xlu1 %1172 }
 0x310   : > { %v1250_v4 = vsub.f32 %v1058_v27, %v1173_v25  ;;  %v1098_v25 = vmul.f32 2.0, %v840_v58  ;;  %v1100_v27 = vmul.f32 2.0, %v852_v17  ;;  %v1662_v17 = vld [vmem:[%s5793_s11] sm:$0xff] }
 0x311   : > { %v1279_v36 = vsub.f32 0.0, %v1247_v15 }
 0x312   : > { %v1282_v34 = vsub.f32 0.0, %v1250_v4  ;;  %v1060_v4 = vadd.f32 %v4607_v0, %v4831_v19  ;;  %v1663_v19 = vld [vmem:[%s5793_s11 + $0x8] sm:$0xff] }
 0x313   : > { %3695 = vmatmul.mubr.msk.f32.gmra.mrb[14].mxu1 %vm1304_vm3, %v1279_v36  ;;  %v864_v36 = vadd.f32 %v4771_v16, %v4485_v41  ;;  %v1096_v41 = vmul.f32 2.0, %v4797_v12  ;;  %v1097_v16 = vmul.f32 2.0, %v4752_v33  ;;  %v1059_v12 = vadd.f32 %v4607_v0, %v4822_v18 }
 0x314   : > { %3697 = vmatprep.mubr.msk.f32.mxu1 %vm1304_vm3, %v1280_v40 }
 0x315   : > { %v934_v31 = vmul.f32 %v864_v36, %v864_v36  ;;  %v1102_v18 = vmul.f32 2.0, %v864_v36 }
 0x31b   : > { %1190 = vrot.lane.b32.xlu1 %v1099_v61, %s4292_s17  ;;  %v1027_v61 = vsel %vm936_vm1, %v934_v31, 0.0  ;;  %v3945_v31 = vpack.c.bf16 %v1663_v19, %v1662_v17 }
 0x31c   : > { %1022 = vadd.xlane.f32.xlu0 %v1021_v9 }
 0x31d   : > { %3946 = vmatprep.subr.bf16.mxu1 %v3945_v31 }
 0x31e   : > { %3948 = vmatpush3.bf16.msra.mxu1 %v3945_v31 }
 0x332   : > { %1178 = vrot.lane.b32.xlu0 %v1093_v2, %s4292_s17  ;;  %v4890_v2 = vpop.xlane.xlu1 %1019 }
 0x33f   : > { %v4871_v13 = vpop.xlane.xlu0 %1010 }
 0x343   : > { %v1171_v11 = vpop.permute.xlu0 %1170 }
 0x344   : > { %v1249_v15 = vsub.f32 %v1057_v55, %v1171_v11  ;;  %v1177_v55 = vpop.permute.xlu1 %1176 }
 0x345   : > { %v1252_v33 = vsub.f32 %v1060_v4, %v1177_v55  ;;  %v1062_v4 = vadd.f32 %v4607_v0, %v4857_v30  ;;  %v1063_v30 = vadd.f32 %v4607_v0, %v4853_v20 }
 0x346   : > { %v1281_v40 = vsub.f32 0.0, %v1249_v15  ;;  %v1101_v15 = vmul.f32 2.0, %v4820_v51  ;;  %v1664_v51 = vld [vmem:[%s5793_s11 + $0x10] sm:$0xff] }
 0x348   : > { %3698 = vmatmul.mubr.msk.f32.gmra.mrb[16].mxu1 %vm1304_vm3, %v1281_v40 }
 0x349   : > { %3700 = vmatprep.mubr.msk.f32.mxu1 %vm1304_vm3, %v1282_v34  ;;  %v1284_v34 = vsub.f32 0.0, %v1252_v33 }
 0x351   : > { %1028 = vadd.xlane.f32.xlu0 %v1027_v61  ;;  %v1665_v61 = vld [vmem:[%s5793_s11 + $0x18] sm:$0xff] }
 0x352   : > { %v3949_v36 = vpack.c.bf16 %v1665_v61, %v1664_v51 }
 0x354   : > { %3950 = vmatprep.subr.bf16.mxu1 %v3949_v36 }
 0x355   : > { %3952 = vmatpush3.bf16.msra.mxu1 %v3949_v36 }
 0x366   : > { %v4882_v9 = vpop.f32.mrb[8].mxu1 }
 0x367   : > { %1182 = vrot.lane.b32.xlu0 %v1095_v48, %s4292_s17  ;;  %v4885_v7 = vpop.f32.mrb[9].mxu1  ;;  %v1103_v48 = vmul.f32 2.0, %v4849_v28 }
 0x36b   : > { %1184 = vrot.lane.b32.xlu0 %v1096_v41, %s4292_s17 }
 0x36f   : > { %1186 = vrot.lane.b32.xlu0 %v1097_v16, %s4292_s17 }
 0x373   : > { %1188 = vrot.lane.b32.xlu0 %v1098_v25, %s4292_s17  ;;  %v1026_v25 = vpop.xlane.xlu1 %1025 }
 0x374   : > { %v4894_v14 = vpop.xlane.xlu0 %1016 }
 0x377   : > { %1192 = vrot.lane.b32.xlu0 %v1100_v27, %s4292_s17  ;;  %v1181_v55 = vpop.permute.xlu1 %1180 }
 0x378   : > { %v1175_v11 = vpop.permute.xlu0 %1174  ;;  %v1254_v33 = vsub.f32 %v1062_v4, %v1181_v55  ;;  %v1065_v4 = vadd.f32 %v4607_v0, %v4869_v1 }
 0x379   : > { %v1251_v40 = vsub.f32 %v1059_v12, %v1175_v11  ;;  %v1061_v12 = vadd.f32 %v4607_v0, %v4827_v46  ;;  %v1064_v46 = vadd.f32 %v4607_v0, %v4871_v13  ;;  %v1067_v13 = vadd.f32 %v4607_v0, %v4890_v2 }
 0x37a   : > { %v1069_v2 = vadd.f32 %v4607_v0, %v1026_v25 }
 0x37b   : > { %v1283_v58 = vsub.f32 0.0, %v1251_v40  ;;  %1194 = vrot.lane.b32.xlu0 %v1101_v15, %s4292_s17  ;;  %v1286_v40 = vsub.f32 0.0, %v1254_v33 }
 0x37d   : > { %3701 = vmatmul.mubr.msk.f32.gmra.mrb[18].mxu1 %vm1304_vm3, %v1283_v58 }
 0x37e   : > { %3703 = vmatprep.mubr.msk.f32.mxu1 %vm1304_vm3, %v1284_v34 }
 0x37f   : > { %1196 = vrot.lane.b32.xlu0 %v1102_v18, %s4292_s17 }
 0x383   : > { %1198 = vrot.lane.b32.xlu0 %v1103_v48, %s4292_s17 }
 0x397   : > { %v1032_v31 = vpop.xlane.xlu1 %1031 }
 0x39b   : > { %v4920_v41 = vpop.f32.mrb[10].mxu1  ;;  %v1191_v33 = vpop.permute.xlu1 %1190 }
 0x39c   : > { %v4922_v16 = vpop.f32.mrb[11].mxu1 }
 0x3a9   : > { %v1023_v27 = vpop.xlane.xlu0 %1022 }
 0x3aa   : > { %v1068_v1 = vadd.f32 %v4607_v0, %v1023_v27  ;;  %v4960_v27 = vld [vmem:[%s5792_s10] ss:$0 sm:$0xff] }
 0x3ad   : > { %v1179_v28 = vpop.permute.xlu0 %1178 }
 0x3ae   : > { %v1253_v11 = vsub.f32 %v1061_v12, %v1179_v28 }
 0x3b0   : > { %v1285_v15 = vsub.f32 0.0, %v1253_v11  ;;  %v1066_v11 = vadd.f32 %v4607_v0, %v4894_v14 }
 0x3b1   : > { %v4928_v58 = vpop.f32.mrb[12].mxu1 }
 0x3b2   : > { %v4930_v34 = vpop.f32.mrb[13].mxu1  ;;  %3704 = vmatmul.mubr.msk.f32.gmra.mrb[20].mxu1 %vm1304_vm3, %v1285_v15 }
 0x3b3   : > { %3706 = vmatprep.mubr.msk.f32.mxu1 %vm1304_vm3, %v1286_v40  ;;  %v1259_v40 = vsub.f32 %v1067_v13, %v1191_v33  ;;  %v1071_v13 = vadd.f32 %v4607_v0, %v1032_v31 }
 0x3de   : > { %v1029_v17 = vpop.xlane.xlu0 %1028 }
 0x3e2   : > { %v1183_v19 = vpop.permute.xlu0 %1182 }
 0x3e3   : > { %v1255_v18 = vsub.f32 %v1063_v30, %v1183_v19 }
 0x3e5   : > { %v1287_v51 = vsub.f32 0.0, %v1255_v18 }
 0x3e6   : > { %v4938_v61 = vpop.f32.mrb[14].mxu1  ;;  %v1185_v48 = vpop.permute.xlu0 %1184 }
 0x3e7   : > { %v1256_v36 = vsub.f32 %v1064_v46, %v1185_v48  ;;  %v4940_v55 = vpop.f32.mrb[15].mxu1  ;;  %3707 = vmatmul.mubr.msk.f32.gmra.mrb[22].mxu1 %vm1304_vm3, %v1287_v51  ;;  %v1291_v46 = vsub.f32 0.0, %v1259_v40 }
 0x3e9   : > { %v1288_v12 = vsub.f32 0.0, %v1256_v36 }
 0x3ea   : > { %v1187_v20 = vpop.permute.xlu0 %1186 }
 0x3eb   : > { %v1257_v28 = vsub.f32 %v1065_v4, %v1187_v20  ;;  %3709 = vmatprep.mubr.msk.f32.mxu1 %vm1304_vm3, %v1288_v12  ;;  %v1070_v12 = vadd.f32 %v4607_v0, %v1029_v17  ;;  %v1477_v17 = vadd.f32 %v4780_v24, %v4960_v27 }
 0x3ed   : > { %v1289_v15 = vsub.f32 0.0, %v1257_v28  ;;  %v1631_v0 = vmax.f32 %v1477_v17, 0.0  ;;  %v2411_v17 = vld [vmem:[%s5786_s4 + $0x8] sm:$0xff] }
 0x3ee   : > { %v1189_v30 = vpop.permute.xlu0 %1188 }
 0x3ef   : > { %v1258_v19 = vsub.f32 %v1066_v11, %v1189_v30  ;;  %3710 = vmatmul.mubr.msk.f32.gmra.mrb[24].mxu1 %vm1304_vm3, %v1289_v15  ;;  %v1472_v11 = vadd.f32 %v4960_v27, %v4782_v8  ;;  %v1487_v8 = vadd.f32 %v4803_v23, %v4960_v27 }
 0x3f1   : > { %v1290_v18 = vsub.f32 0.0, %v1258_v19  ;;  %v1630_v19 = vmax.f32 %v1472_v11, 0.0  ;;  %v1633_v24 = vmax.f32 %v1487_v8, 0.0  ;;  %v2414_v8 = vld [vmem:[%s5786_s4 + $0x20] sm:$0xff] }
 0x3f2   : > { %v1193_v51 = vpop.permute.xlu0 %1192 }
 0x3f3   : > { %v1260_v48 = vsub.f32 %v1068_v1, %v1193_v51  ;;  %3712 = vmatprep.mubr.msk.f32.mxu1 %vm1304_vm3, %v1290_v18  ;;  %v1482_v1 = vadd.f32 %v4960_v27, %v4805_v38  ;;  %v1492_v18 = vadd.f32 %v4960_v27, %v4816_v21  ;;  %v1497_v38 = vadd.f32 %v4814_v39, %v4960_v27 }
 0x3f4   : > { %3713 = vmatmul.mubr.msk.f32.gmra.mrb[26].mxu1 %vm1304_vm3, %v1291_v46  ;;  %v1502_v51 = vadd.f32 %v4960_v27, %v4845_v44  ;;  %v1507_v21 = vadd.f32 %v4843_v29, %v4960_v27  ;;  %v1517_v44 = vadd.f32 %v4882_v9, %v4960_v27 }
 0x3f5   : > { %v1292_v36 = vsub.f32 0.0, %v1260_v48  ;;  %v1632_v31 = vmax.f32 %v1482_v1, 0.0  ;;  %v1634_v46 = vmax.f32 %v1492_v18, 0.0  ;;  %v1635_v23 = vmax.f32 %v1497_v38, 0.0  ;;  %v2413_v1 = vld [vmem:[%s5786_s4 + $0x18] sm:$0xff] }
 0x3f6   : > { %v1195_v14 = vpop.permute.xlu0 %1194  ;;  %v1636_v48 = vmax.f32 %v1502_v51, 0.0  ;;  %v1637_v39 = vmax.f32 %v1507_v21, 0.0  ;;  %v1639_v29 = vmax.f32 %v1517_v44, 0.0  ;;  %v2417_v38 = vld [vmem:[%s5786_s4 + $0x38] sm:$0xff]  ;;  %v2418_v51 = vld [vmem:[%s5786_s4 + $0x40] sm:$0xff] }
 0x3f7   : > { %v1261_v4 = vsub.f32 %v1069_v2, %v1195_v14  ;;  %3715 = vmatprep.mubr.msk.f32.mxu1 %vm1304_vm3, %v1292_v36  ;;  %v1512_v2 = vadd.f32 %v4960_v27, %v4885_v7  ;;  %v1522_v14 = vadd.f32 %v4960_v27, %v4922_v16  ;;  %v1527_v7 = vadd.f32 %v4920_v41, %v4960_v27 }
 0x3f8   : > { %v1537_v16 = vadd.f32 %v4928_v58, %v4960_v27 }
 0x3f9   : > { %v1293_v20 = vsub.f32 0.0, %v1261_v4  ;;  %v1638_v36 = vmax.f32 %v1512_v2, 0.0  ;;  %v1640_v4 = vmax.f32 %v1522_v14, 0.0  ;;  %v1641_v9 = vmax.f32 %v1527_v7, 0.0  ;;  %v2421_v14 = vld [vmem:[%s5786_s4 + $0x58] sm:$0xff] }
 0x3fa   : > { %v1197_v33 = vpop.permute.xlu0 %1196 }
 0x3fb   : > { %v1262_v28 = vsub.f32 %v1070_v12, %v1197_v33  ;;  %3716 = vmatmul.mubr.msk.f32.gmra.mrb[28].mxu1 %vm1304_vm3, %v1293_v20  ;;  %v1532_v12 = vadd.f32 %v4960_v27, %v4930_v34  ;;  %v1542_v33 = vadd.f32 %v4960_v27, %v4940_v55  ;;  %v1547_v34 = vadd.f32 %v4938_v61, %v4960_v27  ;;  %v2410_v61 = vld [vmem:[%s5786_s4] sm:$0xff] }
 0x3fd   : > { %v1294_v25 = vsub.f32 0.0, %v1262_v28  ;;  %v1642_v20 = vmax.f32 %v1532_v12, 0.0  ;;  %v1645_v58 = vmax.f32 %v1547_v34, 0.0  ;;  %v2422_v12 = vld [vmem:[%s5786_s4 + $0x60] sm:$0xff] }
 0x3fe   : > { %v1199_v15 = vpop.permute.xlu0 %1198 }
 0x3ff   : > { %v1263_v40 = vsub.f32 %v1071_v13, %v1199_v15  ;;  %3718 = vmatprep.mubr.msk.f32.mxu1 %vm1304_vm3, %v1294_v25  ;;  %v1643_v13 = vmax.f32 %v1537_v16, 0.0  ;;  %v1644_v25 = vmax.f32 %v1542_v33, 0.0  ;;  %v2425_v33 = vld [vmem:[%s5786_s4 + $0x78] sm:$0xff] }
 0x401   : > { %v1295_v30 = vsub.f32 0.0, %v1263_v40 }
 0x403   : > { %3719 = vmatmul.mubr.msk.f32.gmra.mrb[30].mxu1 %vm1304_vm3, %v1295_v30  ;;  %v3953_v30 = vpack.c.bf16 %v2411_v17, %v2410_v61 }
 0x404   : > { %3729 = vmatprep.mubr.msk.f32.mxu1 %vm518_vm0, %v1630_v19  ;;  %v2412_v19 = vld [vmem:[%s5786_s4 + $0x10] sm:$0xff] }
 0x405   : > { %3954 = vmatprep.subr.bf16.mxu1 %v3953_v30 }
 0x407   : > { %3730 = vmatmul.mubr.msk.f32.vlgmr.msra.gmra.mrb[32].mxu1 %vm518_vm0, %v1631_v0  ;;  %v3957_v0 = vpack.c.bf16 %v2413_v1, %v2412_v19 }
 0x408   : > { %3732 = vmatprep.mubr.msk.f32.mxu1 %vm518_vm0, %v1632_v31  ;;  %3956 = vmatpush3.bf16.msra.mxu1 %v3953_v30  ;;  %v2415_v31 = vld [vmem:[%s5786_s4 + $0x28] sm:$0xff] }
 0x409   : > { %3958 = vmatprep.subr.bf16.mxu1 %v3957_v0  ;;  %v3961_v18 = vpack.c.bf16 %v2415_v31, %v2414_v8 }
 0x40b   : > { %3733 = vmatmul.mubr.msk.f32.gmra.mrb[34].mxu1 %vm518_vm0, %v1633_v24  ;;  %v2416_v24 = vld [vmem:[%s5786_s4 + $0x30] sm:$0xff] }
 0x40c   : > { %3735 = vmatprep.mubr.msk.f32.mxu1 %vm518_vm0, %v1634_v46  ;;  %3960 = vmatpush3.bf16.msra.mxu1 %v3957_v0  ;;  %v3965_v46 = vpack.c.bf16 %v2417_v38, %v2416_v24 }
 0x40d   : > { %3962 = vmatprep.subr.bf16.mxu1 %v3961_v18 }
 0x40f   : > { %3736 = vmatmul.mubr.msk.f32.gmra.mrb[36].mxu1 %vm518_vm0, %v1635_v23  ;;  %v2419_v23 = vld [vmem:[%s5786_s4 + $0x48] sm:$0xff] }
 0x410   : > { %3738 = vmatprep.mubr.msk.f32.mxu1 %vm518_vm0, %v1636_v48  ;;  %3964 = vmatpush3.bf16.msra.mxu1 %v3961_v18  ;;  %v3969_v21 = vpack.c.bf16 %v2419_v23, %v2418_v51 }
 0x411   : > { %3966 = vmatprep.subr.bf16.mxu1 %v3965_v46 }
 0x413   : > { %3739 = vmatmul.mubr.msk.f32.gmra.mrb[38].mxu1 %vm518_vm0, %v1637_v39 }
 0x414   : > { %3741 = vmatprep.mubr.msk.f32.mxu1 %vm518_vm0, %v1638_v36  ;;  %3968 = vmatpush3.bf16.msra.mxu1 %v3965_v46  ;;  %v2420_v36 = vld [vmem:[%s5786_s4 + $0x50] sm:$0xff] }
 0x415   : > { %3970 = vmatprep.subr.bf16.mxu1 %v3969_v21 }
 0x417   : > { %3742 = vmatmul.mubr.msk.f32.gmra.mrb[40].mxu1 %vm518_vm0, %v1639_v29  ;;  %v3973_v29 = vpack.c.bf16 %v2421_v14, %v2420_v36 }
 0x418   : > { %3744 = vmatprep.mubr.msk.f32.mxu1 %vm518_vm0, %v1640_v4  ;;  %3972 = vmatpush3.bf16.msra.mxu1 %v3969_v21 }
 0x419   : > { %3974 = vmatprep.subr.bf16.mxu1 %v3973_v29 }
 0x41b   : > { %v3699_v28 = vpop.f32.mrb[16].mxu1  ;;  %3745 = vmatmul.mubr.msk.f32.gmra.mrb[42].mxu1 %vm518_vm0, %v1641_v9  ;;  %v2423_v9 = vld [vmem:[%s5786_s4 + $0x68] sm:$0xff] }
 0x41c   : > { %v1551_v41 = vpop.f32.mrb[17].mxu1  ;;  %3747 = vmatprep.mubr.msk.f32.mxu1 %vm518_vm0, %v1642_v20  ;;  %v1557_v55 = vadd.f32 %v3699_v28, %v4960_v27  ;;  %3976 = vmatpush3.bf16.msra.mxu1 %v3973_v29  ;;  %v3977_v16 = vpack.c.bf16 %v2423_v9, %v2422_v12  ;;  %v2424_v20 = vld [vmem:[%s5786_s4 + $0x70] sm:$0xff] }
 0x41d   : > { %v1552_v11 = vadd.f32 %v4960_v27, %v1551_v41  ;;  %v3981_v28 = vpack.c.bf16 %v2425_v33, %v2424_v20  ;;  %v682_v20 = vadd.f32 %v4487_v42, %v4769_v60 }
 0x41e   : > { %v1647_v40 = vmax.f32 %v1557_v55, 0.0  ;;  %3978 = vmatprep.subr.bf16.mxu1 %v3977_v16  ;;  %v2690_v55 = vld [vmem:[%s5788_s6] sm:$0xff] }
 0x41f   : > { %3748 = vmatmul.mubr.msk.f32.gmra.mrb[44].mxu1 %vm518_vm0, %v1643_v13  ;;  %v1646_v15 = vmax.f32 %v1552_v11, 0.0  ;;  %v872_v42 = vmax.f32 %v682_v20, 0.0 }
 0x420   : > { %3750 = vmatprep.mubr.msk.f32.mxu1 %vm518_vm0, %v1644_v25  ;;  %3980 = vmatpush3.bf16.msra.mxu1 %v3977_v16 }
 0x421   : > { %3982 = vmatprep.subr.bf16.mxu1 %v3981_v28 }
 0x423   : > { %3751 = vmatmul.mubr.msk.f32.gmra.mrb[46].mxu1 %vm518_vm0, %v1645_v58 }
 0x424   : > { %3753 = vmatprep.mubr.msk.f32.mxu1 %vm518_vm0, %v1646_v15  ;;  %3984 = vmatpush3.bf16.msra.mxu1 %v3981_v28  ;;  %v2691_v15 = vld [vmem:[%s5788_s6 + $0x8] sm:$0xff]  ;;  %v5109_v28 = vld [vmem:[%s5794_s12] ss:$0 sm:$0xff] }
 0x427   : > { %3754 = vmatmul.mubr.msk.f32.gmra.mrb[48].mxu1 %vm518_vm0, %v1647_v40  ;;  %v3985_v40 = vpack.c.bf16 %v2691_v15, %v2690_v55  ;;  %v1994_v15 = vld [vmem:[%s5101_s26] sm:$0xff] }
 0x429   : > { %3986 = vmatprep.subr.bf16.mxu0 %v3985_v40 }
 0x42a   : > { %3988 = vmatpush3.bf16.msra.mxu0 %v3985_v40 }
 0x450   : > { %v3702_v48 = vpop.f32.mrb[18].mxu1 }
 0x451   : > { %v1567_v2 = vadd.f32 %v3702_v48, %v4960_v27  ;;  %v1561_v39 = vpop.f32.mrb[19].mxu1 }
 0x452   : > { %v1562_v44 = vadd.f32 %v4960_v27, %v1561_v39 }
 0x453   : > { %v1649_v4 = vmax.f32 %v1567_v2, 0.0 }
 0x454   : > { %v1648_v7 = vmax.f32 %v1562_v44, 0.0 }
 0x456   : > { %3756 = vmatprep.mubr.msk.f32.mxu1 %vm518_vm0, %v1648_v7 }
 0x457   : > { %3757 = vmatmul.mubr.msk.f32.gmra.mrb[50].mxu1 %vm518_vm0, %v1649_v4 }
 0x485   : > { %v3705_v41 = vpop.f32.mrb[20].mxu1 }
 0x486   : > { %v1577_v13 = vadd.f32 %v3705_v41, %v4960_v27  ;;  %v1571_v34 = vpop.f32.mrb[21].mxu1 }
 0x487   : > { %v1572_v25 = vadd.f32 %v4960_v27, %v1571_v34  ;;  %v1995_v34 = vld [vmem:[%s5101_s26 + $0x8] sm:$0xff] }
 0x488   : > { %v1651_v58 = vmax.f32 %v1577_v13, 0.0 }
 0x489   : > { %v1650_v11 = vmax.f32 %v1572_v25, 0.0  ;;  %v688_v25 = vadd.f32 %v4490_v47, %v4769_v60 }
 0x48b   : > { %3759 = vmatprep.mubr.msk.f32.mxu1 %vm518_vm0, %v1650_v11 }
 0x48c   : > { %3760 = vmatmul.mubr.msk.f32.gmra.mrb[52].mxu1 %vm518_vm0, %v1651_v58 }
 0x4ba   : > { %v3708_v61 = vpop.f32.mrb[22].mxu1 }
 0x4bb   : > { %v1587_v17 = vadd.f32 %v3708_v61, %v4960_v27  ;;  %v1581_v30 = vpop.f32.mrb[23].mxu1 }
 0x4bc   : > { %v1582_v19 = vadd.f32 %v4960_v27, %v1581_v30  ;;  %v1997_v30 = vld [vmem:[%s5101_s26 + $0x18] sm:$0xff] }
 0x4bd   : > { %v1653_v0 = vmax.f32 %v1587_v17, 0.0 }
 0x4be   : > { %v1652_v1 = vmax.f32 %v1582_v19, 0.0  ;;  %v873_v19 = vmax.f32 %v688_v25, 0.0 }
 0x4c0   : > { %3762 = vmatprep.mubr.msk.f32.mxu1 %vm518_vm0, %v1652_v1  ;;  %v700_v1 = vadd.f32 %v4496_v52, %v4769_v60 }
 0x4c1   : > { %3763 = vmatmul.mubr.msk.f32.gmra.mrb[54].mxu1 %vm518_vm0, %v1653_v0 }
 0x4c2   : > { %v3711_v8 = vpop.f32.mrb[24].mxu1 }
 0x4c3   : > { %v1597_v31 = vadd.f32 %v3711_v8, %v4960_v27  ;;  %v1591_v18 = vpop.f32.mrb[25].mxu1 }
 0x4c4   : > { %v1592_v24 = vadd.f32 %v4960_v27, %v1591_v18  ;;  %v706_v18 = vadd.f32 %v4498_v54, %v4769_v60 }
 0x4c5   : > { %v1655_v46 = vmax.f32 %v1597_v31, 0.0 }
 0x4c6   : > { %v1654_v38 = vmax.f32 %v1592_v24, 0.0 }
 0x4c7   : > { %v3714_v51 = vpop.f32.mrb[26].mxu1 }
 0x4c8   : > { %v1607_v23 = vadd.f32 %v3714_v51, %v4960_v27  ;;  %v1601_v21 = vpop.f32.mrb[27].mxu1  ;;  %3765 = vmatprep.mubr.msk.f32.mxu1 %vm518_vm0, %v1654_v38 }
 0x4c9   : > { %v1602_v48 = vadd.f32 %v4960_v27, %v1601_v21  ;;  %3766 = vmatmul.mubr.msk.f32.gmra.mrb[56].mxu1 %vm518_vm0, %v1655_v46  ;;  %v1996_v46 = vld [vmem:[%s5101_s26 + $0x10] sm:$0xff]  ;;  %v712_v21 = vadd.f32 %v4500_v56, %v4769_v60 }
 0x4ca   : > { %v1657_v39 = vmax.f32 %v1607_v23, 0.0  ;;  %v875_v23 = vmax.f32 %v700_v1, 0.0 }
 0x4cb   : > { %v1656_v2 = vmax.f32 %v1602_v48, 0.0 }
 0x4cd   : > { %3768 = vmatprep.mubr.msk.f32.mxu1 %vm518_vm0, %v1656_v2  ;;  %v1998_v2 = vld [vmem:[%s5101_s26 + $0x20] sm:$0xff] }
 0x4ce   : > { %v3717_v44 = vpop.f32.mrb[28].mxu1  ;;  %3769 = vmatmul.mubr.msk.f32.gmra.mrb[58].mxu1 %vm518_vm0, %v1657_v39  ;;  %v876_v39 = vmax.f32 %v706_v18, 0.0  ;;  %v2003_v18 = vld [vmem:[%s5101_s26 + $0x48] sm:$0xff] }
 0x4cf   : > { %v1617_v36 = vadd.f32 %v3717_v44, %v4960_v27  ;;  %v1611_v14 = vpop.f32.mrb[29].mxu1 }
 0x4d0   : > { %v1612_v29 = vadd.f32 %v4960_v27, %v1611_v14 }
 0x4d1   : > { %v1659_v4 = vmax.f32 %v1617_v36, 0.0 }
 0x4d2   : > { %v1658_v7 = vmax.f32 %v1612_v29, 0.0  ;;  %v718_v29 = vadd.f32 %v4503_v59, %v4769_v60  ;;  %v724_v59 = vadd.f32 %v4506_v63, %v4769_v60  ;;  %v730_v63 = vadd.f32 %v4515_v3, %v4769_v60 }
 0x4d4   : > { %3771 = vmatprep.mubr.msk.f32.mxu1 %vm518_vm0, %v1658_v7  ;;  %v1999_v7 = vld [vmem:[%s5101_s26 + $0x28] sm:$0xff] }
 0x4d5   : > { %3772 = vmatmul.mubr.msk.f32.gmra.mrb[60].mxu1 %vm518_vm0, %v1659_v4 }
 0x4d6   : > { %v3720_v12 = vpop.f32.mrb[30].mxu1 }
 0x4d7   : > { %v1627_v9 = vadd.f32 %v3720_v12, %v4960_v27  ;;  %v1621_v16 = vpop.f32.mrb[31].mxu1  ;;  %v2692_v12 = vld [vmem:[%s5788_s6 + $0x10] sm:$0xff] }
 0x4d8   : > { %v1622_v33 = vadd.f32 %v4960_v27, %v1621_v16  ;;  %v694_v27 = vadd.f32 %v4494_v50, %v4769_v60  ;;  %v877_v16 = vmax.f32 %v712_v21, 0.0 }
 0x4d9   : > { %v1661_v11 = vmax.f32 %v1627_v9, 0.0  ;;  %v2693_v9 = vld [vmem:[%s5788_s6 + $0x18] sm:$0xff] }
 0x4da   : > { %v1660_v41 = vmax.f32 %v1622_v33, 0.0  ;;  %v3731_v13 = vpop.f32.mrb[32].mxu1  ;;  %v874_v31 = vmax.f32 %v694_v27, 0.0 }
 0x4db   : > { %v1841_v58 = vadd.f32 %v3731_v13, %v5109_v28  ;;  %v1835_v55 = vpop.f32.mrb[33].mxu1  ;;  %v3989_v13 = vpack.c.bf16 %v2693_v9, %v2692_v12  ;;  %v760_v12 = vadd.f32 %v4559_v35, %v4769_v60  ;;  %v766_v35 = vadd.f32 %v4563_v37, %v4769_v60 }
 0x4dc   : > { %v1836_v40 = vadd.f32 %v5109_v28, %v1835_v55  ;;  %3774 = vmatprep.mubr.msk.f32.mxu1 %vm518_vm0, %v1660_v41  ;;  %v2000_v41 = vld [vmem:[%s5101_s26 + $0x30] sm:$0xff]  ;;  %v2001_v55 = vld [vmem:[%s5101_s26 + $0x38] sm:$0xff] }
 0x4dd   : > { %3775 = vmatmul.mubr.msk.f32.gmra.mrb[62].mxu1 %vm518_vm0, %v1661_v11  ;;  %v5121_v61 = vadd.f32 %v1995_v34, %v1841_v58  ;;  %3990 = vmatprep.subr.bf16.mxu0 %v3989_v13 }
 0x4de   : > { %v3734_v17 = vpop.f32.mrb[34].mxu1  ;;  %3809 = vmatprep.mubr.f32.mxu1 %v872_v42  ;;  %v5123_v47 = vadd.f32 %v1994_v15, %v1836_v40  ;;  %v878_v15 = vmax.f32 %v718_v29, 0.0  ;;  %v879_v40 = vmax.f32 %v724_v59, 0.0  ;;  %3992 = vmatpush3.bf16.msra.mxu0 %v3989_v13  ;;  %v2006_v59 = vld [vmem:[%s5101_s26 + $0x60] sm:$0xff]  ;;  %v2007_v13 = vld [vmem:[%s5101_s26 + $0x68] sm:$0xff] }
 0x4df   : > { %v1851_v50 = vadd.f32 %v3734_v17, %v5109_v28  ;;  %v1845_v0 = vpop.f32.mrb[35].mxu1  ;;  %v2061_v8 = vsel %vm1304_vm3, %v5121_v61, -inf  ;;  %v736_v17 = vadd.f32 %v4521_v6, %v4769_v60  ;;  %v742_v6 = vadd.f32 %v4526_v10, %v4769_v60 }
 0x4e0   : > { %v1846_v24 = vadd.f32 %v5109_v28, %v1845_v0  ;;  %2062 = vmax.xlane.f32.xlu1 %v2061_v8  ;;  %v2058_v38 = vsel %vm1304_vm3, %v5123_v47, -inf }
 0x4e1   : > { %2059 = vmax.xlane.f32.xlu0 %v2058_v38  ;;  %3810 = vmatmul.mubr.f32.vlgmr.msra.gmra.mrb[64].mxu1 %v873_v19  ;;  %v5136_v52 = vadd.f32 %v1997_v30, %v1851_v50  ;;  %v2002_v19 = vld [vmem:[%s5101_s26 + $0x40] sm:$0xff] }
 0x4e2   : > { %v3737_v51 = vpop.f32.mrb[36].mxu1  ;;  %3812 = vmatprep.mubr.f32.mxu1 %v874_v31  ;;  %v5146_v14 = vadd.f32 %v1996_v46, %v1846_v24  ;;  %v880_v31 = vmax.f32 %v730_v63, 0.0  ;;  %v881_v46 = vmax.f32 %v736_v17, 0.0 }
 0x4e3   : > { %v1855_v48 = vpop.f32.mrb[37].mxu1  ;;  %v2067_v54 = vsel %vm1304_vm3, %v5136_v52, -inf  ;;  %v1861_v44 = vadd.f32 %v3737_v51, %v5109_v28  ;;  %v748_v51 = vadd.f32 %v4543_v22, %v4769_v60  ;;  %v754_v22 = vadd.f32 %v4550_v26, %v4769_v60 }
 0x4e4   : > { %v1856_v36 = vadd.f32 %v5109_v28, %v1855_v48  ;;  %v2064_v11 = vsel %vm1304_vm3, %v5146_v14, -inf  ;;  %v2004_v48 = vld [vmem:[%s5101_s26 + $0x50] sm:$0xff] }
 0x4e5   : > { %2068 = vmax.xlane.f32.xlu0 %v2067_v54  ;;  %3813 = vmatmul.mubr.f32.gmra.mrb[66].mxu1 %v875_v23  ;;  %v5168_v58 = vadd.f32 %v1999_v7, %v1861_v44  ;;  %v882_v44 = vmax.f32 %v742_v6, 0.0  ;;  %v784_v6 = vadd.f32 %v4575_v49, %v4769_v60  ;;  %v2011_v49 = vld [vmem:[%s5101_s26 + $0x88] sm:$0xff] }
 0x4e6   : > { %v3740_v56 = vpop.f32.mrb[38].mxu1  ;;  %3815 = vmatprep.mubr.f32.mxu1 %v876_v39  ;;  %v5151_v4 = vadd.f32 %v1998_v2, %v1856_v36  ;;  %v2005_v36 = vld [vmem:[%s5101_s26 + $0x58] sm:$0xff] }
 0x4e7   : > { %v1871_v20 = vadd.f32 %v3740_v56, %v5109_v28  ;;  %v1865_v33 = vpop.f32.mrb[39].mxu1  ;;  %v2073_v8 = vsel %vm1304_vm3, %v5168_v58, -inf  ;;  %v883_v56 = vmax.f32 %v748_v51, 0.0 }
 0x4e8   : > { %v1866_v34 = vadd.f32 %v5109_v28, %v1865_v33  ;;  %v2070_v25 = vsel %vm1304_vm3, %v5151_v4, -inf }
 0x4e9   : > { %2071 = vmax.xlane.f32.xlu1 %v2070_v25  ;;  %2065 = vmax.xlane.f32.xlu0 %v2064_v11  ;;  %v5178_v1 = vadd.f32 %v2001_v55, %v1871_v20  ;;  %v885_v55 = vmax.f32 %v760_v12, 0.0 }
 0x4ea   : > { %3816 = vmatmul.mubr.f32.gmra.mrb[68].mxu1 %v877_v16  ;;  %v3743_v42 = vpop.f32.mrb[40].mxu1  ;;  %v5173_v27 = vadd.f32 %v2000_v41, %v1866_v34  ;;  %v884_v34 = vmax.f32 %v754_v22, 0.0 }
 0x4eb   : > { %3818 = vmatprep.mubr.f32.mxu1 %v878_v15  ;;  %v1875_v30 = vpop.f32.mrb[41].mxu1  ;;  %v1881_v3 = vadd.f32 %v3743_v42, %v5109_v28  ;;  %v2079_v21 = vsel %vm1304_vm3, %v5178_v1, -inf  ;;  %v772_v15 = vadd.f32 %v4567_v43, %v4769_v60  ;;  %v2008_v42 = vld [vmem:[%s5101_s26 + $0x70] sm:$0xff]  ;;  %v778_v43 = vadd.f32 %v4571_v45, %v4769_v60 }
 0x4ec   : > { %v1876_v50 = vadd.f32 %v5109_v28, %v1875_v30  ;;  %v2076_v0 = vsel %vm1304_vm3, %v5173_v27, -inf }
 0x4ed   : > { %2077 = vmax.xlane.f32.xlu1 %v2076_v0  ;;  %2074 = vmax.xlane.f32.xlu0 %v2073_v8  ;;  %v5200_v39 = vadd.f32 %v2003_v18, %v1881_v3  ;;  %v886_v3 = vmax.f32 %v766_v35, 0.0 }
 0x4ee   : > { %3819 = vmatmul.mubr.f32.gmra.mrb[70].mxu1 %v879_v40  ;;  %v3746_v24 = vpop.f32.mrb[42].mxu1  ;;  %v5189_v38 = vadd.f32 %v2002_v19, %v1876_v50  ;;  %v2009_v50 = vld [vmem:[%s5101_s26 + $0x78] sm:$0xff] }
 0x4ef   : > { %3821 = vmatprep.mubr.f32.mxu1 %v880_v31  ;;  %v1885_v23 = vpop.f32.mrb[43].mxu1  ;;  %v1891_v10 = vadd.f32 %v3746_v24, %v5109_v28  ;;  %v2085_v33 = vsel %vm1304_vm3, %v5200_v39, -inf  ;;  %v887_v31 = vmax.f32 %v772_v15, 0.0  ;;  %v5807_v15 = vld [vmem:[#allocation4_spill] sm:$0xff] }
 0x4f0   : > { %v1886_v54 = vadd.f32 %v5109_v28, %v1885_v23  ;;  %v2082_v2 = vsel %vm1304_vm3, %v5189_v38, -inf }
 0x4f1   : > { %2083 = vmax.xlane.f32.xlu1 %v2082_v2  ;;  %2080 = vmax.xlane.f32.xlu0 %v2079_v21  ;;  %v5216_v41 = vadd.f32 %v2005_v36, %v1891_v10  ;;  %v790_v10 = vadd.f32 %v4579_v53, %v4769_v60  ;;  %v889_v2 = vmax.f32 %v784_v6, 0.0  ;;  %v2694_v53 = vld [vmem:[%s5788_s6 + $0x20] sm:$0xff] }
 0x4f2   : > { %3822 = vmatmul.mubr.f32.gmra.mrb[72].mxu1 %v881_v46  ;;  %v3749_v29 = vpop.f32.mrb[44].mxu1  ;;  %v5205_v7 = vadd.f32 %v2004_v48, %v1886_v54  ;;  %v2010_v46 = vld [vmem:[%s5101_s26 + $0x80] sm:$0xff]  ;;  %v888_v48 = vmax.f32 %v778_v43, 0.0  ;;  %v2697_v43 = vld [vmem:[%s5788_s6 + $0x38] sm:$0xff] }
 0x4f3   : > { %v1901_v9 = vadd.f32 %v3749_v29, %v5109_v28  ;;  %3824 = vmatprep.mubr.f32.mxu1 %v882_v44  ;;  %v1895_v16 = vpop.f32.mrb[45].mxu1  ;;  %v2091_v19 = vsel %vm1304_vm3, %v5216_v41, -inf  ;;  %v796_v44 = vadd.f32 %v4584_v57, %v4769_v60  ;;  %v890_v12 = vmax.f32 %v790_v10, 0.0 }
 0x4f4   : > { %v1896_v20 = vadd.f32 %v5109_v28, %v1895_v16  ;;  %v2088_v26 = vsel %vm1304_vm3, %v5205_v7, -inf  ;;  %v802_v57 = vadd.f32 %v4592_v62, %v4769_v60 }
 0x4f5   : > { %2089 = vmax.xlane.f32.xlu1 %v2088_v26  ;;  %2086 = vmax.xlane.f32.xlu0 %v2085_v33  ;;  %v5226_v40 = vadd.f32 %v2007_v13, %v1901_v9  ;;  %v891_v16 = vmax.f32 %v796_v44, 0.0  ;;  %v814_v33 = vadd.f32 %v4621_v32, %v4769_v60  ;;  %v5805_v13 = vld [vmem:[#allocation2_spill] sm:$0xff]  ;;  %v5808_v32 = vld [vmem:[#allocation5_spill] sm:$0xff] }
 0x4f6   : > { %3825 = vmatmul.mubr.f32.gmra.mrb[74].mxu1 %v883_v56  ;;  %v3752_v25 = vpop.f32.mrb[46].mxu1  ;;  %v5221_v11 = vadd.f32 %v2006_v59, %v1896_v20  ;;  %v2695_v56 = vld [vmem:[%s5788_s6 + $0x28] sm:$0xff]  ;;  %v808_v59 = vadd.f32 %v4598_v5, %v4769_v60  ;;  %v892_v26 = vmax.f32 %v802_v57, 0.0  ;;  %v2698_v44 = vld [vmem:[%s5788_s6 + $0x40] sm:$0xff]  ;;  %v2012_v57 = vld [vmem:[%s5101_s26 + $0x90] sm:$0xff] }
 0x4f7   : > { %3827 = vmatprep.mubr.f32.mxu1 %v884_v34  ;;  %v1905_v63 = vpop.f32.mrb[47].mxu1  ;;  %v1911_v17 = vadd.f32 %v3752_v25, %v5109_v28  ;;  %v2097_v24 = vsel %vm1304_vm3, %v5226_v40, -inf  ;;  %v3993_v9 = vpack.c.bf16 %v2695_v56, %v2694_v53  ;;  %v820_v34 = vadd.f32 %v5805_v13, %v4769_v60  ;;  %v5806_v25 = vld [vmem:[#allocation3_spill] sm:$0xff]  ;;  %v2013_v53 = vld [vmem:[%s5101_s26 + $0x98] sm:$0xff] }
 0x4f8   : > { %v1906_v37 = vadd.f32 %v5109_v28, %v1905_v63  ;;  %v2094_v30 = vsel %vm1304_vm3, %v5221_v11, -inf  ;;  %v893_v62 = vmax.f32 %v808_v59, 0.0  ;;  %v894_v35 = vmax.f32 %v814_v33, 0.0 }
 0x4f9   : > { %2095 = vmax.xlane.f32.xlu1 %v2094_v30  ;;  %2092 = vmax.xlane.f32.xlu0 %v2091_v19  ;;  %v5248_v21 = vadd.f32 %v2009_v50, %v1911_v17  ;;  %v895_v5 = vmax.f32 %v820_v34, 0.0  ;;  %v832_v63 = vadd.f32 %v5807_v15, %v4769_v60  ;;  %v838_v17 = vadd.f32 %v5808_v32, %v4769_v60  ;;  %v5809_v30 = vld [vmem:[#allocation6_spill] sm:$0xff] }
 0x4fa   : > { %3828 = vmatmul.mubr.f32.gmra.mrb[76].mxu1 %v885_v55  ;;  %v3755_v0 = vpop.f32.mrb[48].mxu1  ;;  %v5237_v8 = vadd.f32 %v2008_v42, %v1906_v37  ;;  %3994 = vmatprep.subr.bf16.mxu0 %v3993_v9  ;;  %v826_v55 = vadd.f32 %v5806_v25, %v4769_v60  ;;  %v844_v19 = vadd.f32 %v5809_v30, %v4769_v60  ;;  %v2702_v34 = vld [vmem:[%s5788_s6 + $0x60] sm:$0xff] }
 0x4fb   : > { %3830 = vmatprep.mubr.f32.mxu1 %v886_v3  ;;  %v1915_v18 = vpop.f32.mrb[49].mxu1  ;;  %v1921_v45 = vadd.f32 %v3755_v0, %v5109_v28  ;;  %v2103_v36 = vsel %vm1304_vm3, %v5248_v21, -inf  ;;  %3996 = vmatpush3.bf16.msra.mxu0 %v3993_v9  ;;  %v897_v37 = vmax.f32 %v832_v63, 0.0  ;;  %v2696_v3 = vld [vmem:[%s5788_s6 + $0x30] sm:$0xff]  ;;  %v898_v50 = vmax.f32 %v838_v17, 0.0  ;;  %v5810_v0 = vld [vmem:[#allocation7_spill] sm:$0xff] }
 0x4fc   : > { %v1916_v51 = vadd.f32 %v5109_v28, %v1915_v18  ;;  %v2100_v23 = vsel %vm1304_vm3, %v5237_v8, -inf  ;;  %v896_v42 = vmax.f32 %v826_v55, 0.0  ;;  %v3997_v6 = vpack.c.bf16 %v2697_v43, %v2696_v3  ;;  %v2700_v9 = vld [vmem:[%s5788_s6 + $0x50] sm:$0xff] }
 0x4fd   : > { %2101 = vmax.xlane.f32.xlu1 %v2100_v23  ;;  %2098 = vmax.xlane.f32.xlu0 %v2097_v24  ;;  %v5261_v29 = vadd.f32 %v2011_v49, %v1921_v45  ;;  %v899_v18 = vmax.f32 %v844_v19, 0.0  ;;  %v5811_v24 = vld [vmem:[#allocation8_spill] sm:$0xff]  ;;  %v5813_v49 = vld [vmem:[#allocation10_spill] sm:$0xff] }
 0x4fe   : > { %3831 = vmatmul.mubr.f32.gmra.mrb[78].mxu1 %v887_v31  ;;  %v5253_v54 = vadd.f32 %v2010_v46, %v1916_v51  ;;  %v850_v31 = vadd.f32 %v5810_v0, %v4769_v60  ;;  %3998 = vmatprep.subr.bf16.mxu0 %v3997_v6  ;;  %v856_v46 = vadd.f32 %v5811_v24, %v4769_v60  ;;  %v5812_v51 = vld [vmem:[#allocation9_spill] sm:$0xff]  ;;  %v2704_v55 = vld [vmem:[%s5788_s6 + $0x70] sm:$0xff] }
 0x4ff   : > { %3833 = vmatprep.mubr.f32.mxu1 %v888_v48  ;;  %v2109_v20 = vsel %vm1304_vm3, %v5261_v29, -inf  ;;  %4000 = vmatpush3.bf16.msra.mxu0 %v3997_v6  ;;  %v862_v23 = vadd.f32 %v5812_v51, %v4769_v60 }
 0x500   : > { %v2106_v22 = vsel %vm1304_vm3, %v5253_v54, -inf  ;;  %v900_v45 = vmax.f32 %v850_v31, 0.0  ;;  %v901_v48 = vmax.f32 %v856_v46, 0.0 }
 0x501   : > { %2107 = vmax.xlane.f32.xlu1 %v2106_v22  ;;  %2104 = vmax.xlane.f32.xlu0 %v2103_v36  ;;  %v902_v10 = vmax.f32 %v862_v23, 0.0  ;;  %v2699_v22 = vld [vmem:[%s5788_s6 + $0x48] sm:$0xff] }
 0x502   : > { %3834 = vmatmul.mubr.f32.gmra.mrb[80].mxu1 %v889_v2  ;;  %v903_v2 = vmax.f32 %v5813_v49, 0.0  ;;  %v4001_v36 = vpack.c.bf16 %v2699_v22, %v2698_v44 }
 0x503   : > { %3836 = vmatprep.mubr.f32.mxu1 %v890_v12 }
 0x504   : > { %4002 = vmatprep.subr.bf16.mxu0 %v4001_v36 }
 0x505   : > { %2110 = vmax.xlane.f32.xlu0 %v2109_v20  ;;  %4004 = vmatpush3.bf16.msra.mxu0 %v4001_v36  ;;  %v2019_v36 = vld [vmem:[%s5101_s26 + $0xc8] sm:$0xff] }
 0x506   : > { %3837 = vmatmul.mubr.f32.gmra.mrb[82].mxu1 %v891_v16  ;;  %v2701_v16 = vld [vmem:[%s5788_s6 + $0x58] sm:$0xff] }
 0x507   : > { %3839 = vmatprep.mubr.f32.mxu1 %v892_v26  ;;  %v4005_v20 = vpack.c.bf16 %v2701_v16, %v2700_v9 }
 0x509   : > { %4006 = vmatprep.subr.bf16.mxu0 %v4005_v20 }
 0x50a   : > { %3840 = vmatmul.mubr.f32.gmra.mrb[84].mxu1 %v893_v62  ;;  %4008 = vmatpush3.bf16.msra.mxu0 %v4005_v20 }
 0x50b   : > { %3842 = vmatprep.mubr.f32.mxu1 %v894_v35  ;;  %v2703_v35 = vld [vmem:[%s5788_s6 + $0x68] sm:$0xff] }
 0x50c   : > { %v4009_v25 = vpack.c.bf16 %v2703_v35, %v2702_v34 }
 0x50e   : > { %3843 = vmatmul.mubr.f32.gmra.mrb[86].mxu1 %v895_v5  ;;  %4010 = vmatprep.subr.bf16.mxu0 %v4009_v25  ;;  %v2705_v5 = vld [vmem:[%s5788_s6 + $0x78] sm:$0xff] }
 0x50f   : > { %3845 = vmatprep.mubr.f32.mxu1 %v896_v42  ;;  %4012 = vmatpush3.bf16.msra.mxu0 %v4009_v25  ;;  %v4013_v15 = vpack.c.bf16 %v2705_v5, %v2704_v55  ;;  %v2015_v42 = vld [vmem:[%s5101_s26 + $0xa8] sm:$0xff]  ;;  %v2020_v5 = vld [vmem:[%s5101_s26 + $0xd0] sm:$0xff] }
 0x511   : > { %4014 = vmatprep.subr.bf16.mxu0 %v4013_v15 }
 0x512   : > { %3846 = vmatmul.mubr.f32.gmra.mrb[88].mxu1 %v897_v37  ;;  %v2014_v37 = vld [vmem:[%s5101_s26 + $0xa0] sm:$0xff] }
 0x513   : > { %3848 = vmatprep.mubr.f32.mxu1 %v898_v50  ;;  %4016 = vmatpush3.bf16.msra.mxu0 %v4013_v15 }
 0x516   : > { %3849 = vmatmul.mubr.f32.gmra.mrb[90].mxu1 %v899_v18  ;;  %v2017_v18 = vld [vmem:[%s5101_s26 + $0xb8] sm:$0xff] }
 0x517   : > { %3851 = vmatprep.mubr.f32.mxu1 %v900_v45  ;;  %v2016_v45 = vld [vmem:[%s5101_s26 + $0xb0] sm:$0xff] }
 0x51a   : > { %3852 = vmatmul.mubr.f32.gmra.mrb[92].mxu1 %v901_v48 }
 0x51b   : > { %3854 = vmatprep.mubr.f32.mxu1 %v902_v10 }
 0x51e   : > { %3855 = vmatmul.mubr.f32.gmra.mrb[94].mxu1 %v903_v2 }
 0x52a   : > { %v3758_v60 = vpop.f32.mrb[50].mxu1 }
 0x52b   : > { %v1931_v56 = vadd.f32 %v3758_v60, %v5109_v28  ;;  %v1925_v12 = vpop.f32.mrb[51].mxu1 }
 0x52c   : > { %v1926_v59 = vadd.f32 %v5109_v28, %v1925_v12  ;;  %v2018_v12 = vld [vmem:[%s5101_s26 + $0xc0] sm:$0xff] }
 0x52d   : > { %v5316_v26 = vadd.f32 %v2013_v53, %v1931_v56 }
 0x52e   : > { %v5318_v33 = vadd.f32 %v2012_v57, %v1926_v59 }
 0x52f   : > { %v2115_v62 = vsel %vm1304_vm3, %v5316_v26, -inf }
 0x530   : > { %2116 = vmax.xlane.f32.xlu0 %v2115_v62  ;;  %v2112_v13 = vsel %vm1304_vm3, %v5318_v33, -inf  ;;  %v2021_v62 = vld [vmem:[%s5101_s26 + $0xd8] sm:$0xff] }
 0x531   : > { %2113 = vmax.xlane.f32.xlu1 %v2112_v13 }
 0x55f   : > { %v3761_v63 = vpop.f32.mrb[52].mxu1 }
 0x560   : > { %v1941_v32 = vadd.f32 %v3761_v63, %v5109_v28  ;;  %v1935_v17 = vpop.f32.mrb[53].mxu1 }
 0x561   : > { %v1936_v30 = vadd.f32 %v5109_v28, %v1935_v17 }
 0x562   : > { %v5340_v19 = vadd.f32 %v2015_v42, %v1941_v32 }
 0x563   : > { %v5342_v3 = vadd.f32 %v2014_v37, %v1936_v30 }
 0x564   : > { %v2121_v43 = vsel %vm1304_vm3, %v5340_v19, -inf }
 0x565   : > { %2122 = vmax.xlane.f32.xlu0 %v2121_v43  ;;  %v2118_v50 = vsel %vm1304_vm3, %v5342_v3, -inf }
 0x566   : > { %2119 = vmax.xlane.f32.xlu1 %v2118_v50 }
 0x56d   : > { %v2063_v2 = vpop.xlane.xlu1 %2062 }
 0x56e   : > { %v2060_v0 = vpop.xlane.xlu0 %2059  ;;  %v2155_v34 = vsub.f32 %v5121_v61, %v2063_v2 }
 0x56f   : > { %v2154_v17 = vsub.f32 %v5123_v47, %v2060_v0 }
 0x570   : > { %v2188_v37 = vmul.f32 1.442695, %v2155_v34  ;;  %v2024_v34 = vld [vmem:[%s5101_s26 + $0xf0] sm:$0xff] }
 0x572   : > { %v2069_v31 = vpop.xlane.xlu0 %2068  ;;  %4027 = vpow2.f32 %v2188_v37 }
 0x573   : > { %v2157_v30 = vsub.f32 %v5136_v52, %v2069_v31 }
 0x575   : > { %v2192_v52 = vmul.f32 1.442695, %v2157_v30 }
 0x576   : > { %v2066_v23 = vpop.xlane.xlu0 %2065  ;;  %v2072_v57 = vpop.xlane.xlu1 %2071 }
 0x57a   : > { %v2075_v60 = vpop.xlane.xlu0 %2074  ;;  %v2078_v42 = vpop.xlane.xlu1 %2077 }
 0x57e   : > { %v2081_v15 = vpop.xlane.xlu0 %2080  ;;  %v2084_v31 = vpop.xlane.xlu1 %2083 }
 0x594   : > { %v3764_v6 = vpop.f32.mrb[54].mxu1 }
 0x595   : > { %v1951_v24 = vadd.f32 %v3764_v6, %v5109_v28  ;;  %v1945_v46 = vpop.f32.mrb[55].mxu1 }
 0x596   : > { %v1946_v51 = vadd.f32 %v5109_v28, %v1945_v46  ;;  %v2156_v46 = vsub.f32 %v5146_v14, %v2066_v23  ;;  %v2158_v14 = vsub.f32 %v5151_v4, %v2072_v57  ;;  %v2025_v4 = vld [vmem:[%s5101_s26 + $0xf8] sm:$0xff] }
 0x597   : > { %v5352_v48 = vadd.f32 %v2017_v18, %v1951_v24  ;;  %v2023_v18 = vld [vmem:[%s5101_s26 + $0xe8] sm:$0xff]  ;;  %v2186_v24 = vmul.f32 1.442695, %v2154_v17 }
 0x598   : > { %v5354_v10 = vadd.f32 %v2016_v45, %v1946_v51  ;;  %v2087_v45 = vpop.xlane.xlu0 %2086  ;;  %v2022_v51 = vld [vmem:[%s5101_s26 + $0xe0] sm:$0xff]  ;;  %v2190_v23 = vmul.f32 1.442695, %v2156_v46  ;;  %v2194_v57 = vmul.f32 1.442695, %v2158_v14 }
 0x599   : > { %v2127_v49 = vsel %vm1304_vm3, %v5352_v48, -inf  ;;  %4029 = vpow2.f32 %v2186_v24 }
 0x59a   : > { %2128 = vmax.xlane.f32.xlu0 %v2127_v49  ;;  %v2124_v44 = vsel %vm1304_vm3, %v5354_v10, -inf  ;;  %4031 = vpow2.f32 %v2192_v52 }
 0x59b   : > { %2125 = vmax.xlane.f32.xlu1 %v2124_v44  ;;  %v2159_v44 = vsub.f32 %v5168_v58, %v2075_v60  ;;  %v2161_v60 = vsub.f32 %v5178_v1, %v2081_v15  ;;  %4033 = vpow2.f32 %v2190_v23  ;;  %v5415_v1 = vpop.eup %4027  ;;  %v2163_v15 = vsub.f32 %v5200_v39, %v2087_v45 }
 0x59c   : > { %v3767_v22 = vpop.f32.mrb[56].mxu1 }
 0x59d   : > { %v1961_v53 = vadd.f32 %v3767_v22, %v5109_v28  ;;  %v1955_v56 = vpop.f32.mrb[57].mxu1  ;;  %v2196_v58 = vmul.f32 1.442695, %v2159_v44  ;;  %v2204_v46 = vmul.f32 1.442695, %v2163_v15 }
 0x59e   : > { %v1956_v9 = vadd.f32 %v5109_v28, %v1955_v56  ;;  %v2160_v56 = vsub.f32 %v5173_v27, %v2078_v42  ;;  %v5411_v27 = vld [vmem:[%s5787_s5] ss:$0 sm:$0xff] }
 0x59f   : > { %v5364_v16 = vadd.f32 %v2019_v36, %v1961_v53  ;;  %4035 = vpow2.f32 %v2196_v58 }
 0x5a0   : > { %v5366_v59 = vadd.f32 %v2018_v12, %v1956_v9  ;;  %v2093_v12 = vpop.xlane.xlu0 %2092  ;;  %v2090_v9 = vpop.xlane.xlu1 %2089  ;;  %4037 = vpow2.f32 %v2194_v57 }
 0x5a1   : > { %v3770_v20 = vpop.f32.mrb[58].mxu1  ;;  %v2133_v13 = vsel %vm1304_vm3, %v5364_v16, -inf  ;;  %v2165_v45 = vsub.f32 %v5216_v41, %v2093_v12  ;;  %v2164_v52 = vsub.f32 %v5205_v7, %v2090_v9 }
 0x5a2   : > { %v1971_v35 = vadd.f32 %v3770_v20, %v5109_v28  ;;  %v1965_v25 = vpop.f32.mrb[59].mxu1  ;;  %2134 = vmax.xlane.f32.xlu0 %v2133_v13  ;;  %v2130_v55 = vsel %vm1304_vm3, %v5366_v59, -inf }
 0x5a3   : > { %v1966_v63 = vadd.f32 %v5109_v28, %v1965_v25  ;;  %2131 = vmax.xlane.f32.xlu1 %v2130_v55  ;;  %v2198_v25 = vmul.f32 1.442695, %v2160_v56  ;;  %v2208_v7 = vmul.f32 1.442695, %v2165_v45 }
 0x5a4   : > { %v5377_v32 = vadd.f32 %v2021_v62, %v1971_v35  ;;  %v2099_v17 = vpop.xlane.xlu0 %2098 }
 0x5a5   : > { %v5380_v61 = vadd.f32 %v2020_v5, %v1966_v63  ;;  %v2200_v5 = vmul.f32 1.442695, %v2161_v60  ;;  %4039 = vpow2.f32 %v2198_v25  ;;  %v2167_v12 = vsub.f32 %v5226_v40, %v2099_v17 }
 0x5a6   : > { %v2139_v43 = vsel %vm1304_vm3, %v5377_v32, -inf  ;;  %v2206_v60 = vmul.f32 1.442695, %v2164_v52 }
 0x5a7   : > { %2140 = vmax.xlane.f32.xlu0 %v2139_v43  ;;  %v2136_v50 = vsel %vm1304_vm3, %v5380_v61, -inf  ;;  %4041 = vpow2.f32 %v2200_v5 }
 0x5a8   : > { %v3773_v6 = vpop.f32.mrb[60].mxu1  ;;  %2137 = vmax.xlane.f32.xlu1 %v2136_v50  ;;  %v2096_v50 = vpop.xlane.xlu1 %2095  ;;  %4043 = vpow2.f32 %v2204_v46 }
 0x5a9   : > { %v1981_v47 = vadd.f32 %v3773_v6, %v5109_v28  ;;  %v1975_v0 = vpop.f32.mrb[61].mxu1  ;;  %v2166_v9 = vsub.f32 %v5221_v11, %v2096_v50  ;;  %v2212_v11 = vmul.f32 1.442695, %v2167_v12 }
 0x5aa   : > { %v1976_v49 = vadd.f32 %v5109_v28, %v1975_v0 }
 0x5ab   : > { %v5392_v2 = vadd.f32 %v2023_v18, %v1981_v47  ;;  %v5427_v18 = vpop.eup %4029 }
 0x5ac   : > { %v5395_v22 = vadd.f32 %v2022_v51, %v1976_v49  ;;  %v5431_v24 = vpop.eup %4031  ;;  %v2250_v23 = vsel %vm1304_vm3, %v5427_v18, 0.0  ;;  %v2102_v56 = vpop.xlane.xlu1 %2101 }
 0x5ad   : > { %v2145_v36 = vsel %vm1304_vm3, %v5392_v2, -inf  ;;  %v2259_v41 = vsel %vm1304_vm3, %v5431_v24, 0.0  ;;  %v2168_v40 = vsub.f32 %v5237_v8, %v2102_v56 }
 0x5ae   : > { %2146 = vmax.xlane.f32.xlu0 %v2145_v36  ;;  %v2142_v53 = vsel %vm1304_vm3, %v5395_v22, -inf  ;;  %v5439_v36 = vpop.eup %4033 }
 0x5af   : > { %2143 = vmax.xlane.f32.xlu1 %v2142_v53  ;;  %v2105_v53 = vpop.xlane.xlu0 %2104  ;;  %v5445_v57 = vpop.eup %4035 }
 0x5b0   : > { %v3776_v20 = vpop.f32.mrb[62].mxu1  ;;  %v2169_v5 = vsub.f32 %v5248_v21, %v2105_v53  ;;  %v2108_v8 = vpop.xlane.xlu1 %2107 }
 0x5b1   : > { %v1991_v62 = vadd.f32 %v3776_v20, %v5109_v28  ;;  %v1985_v13 = vpop.f32.mrb[63].mxu1 }
 0x5b2   : > { %v1986_v35 = vadd.f32 %v5109_v28, %v1985_v13  ;;  %v2162_v28 = vsub.f32 %v5189_v38, %v2084_v31  ;;  %v2253_v38 = vsel %vm1304_vm3, %v5415_v1, 0.0  ;;  %v2216_v45 = vmul.f32 1.442695, %v2169_v5 }
 0x5b3   : > { %v5413_v55 = vadd.f32 %v2025_v4, %v1991_v62 }
 0x5b4   : > { %v3811_v63 = vpop.f32.mrb[64].mxu1  ;;  %v5418_v42 = vadd.f32 %v2024_v34, %v1986_v35  ;;  %v2202_v51 = vmul.f32 1.442695, %v2162_v28  ;;  %v2256_v34 = vsel %vm1304_vm3, %v5439_v36, 0.0  ;;  %v5450_v35 = vpop.eup %4037 }
 0x5b5   : > { %v2505_v37 = vadd.f32 %v3811_v63, %v5411_v27  ;;  %v2499_v30 = vpop.f32.mrb[65].mxu1  ;;  %v2151_v43 = vsel %vm1304_vm3, %v5413_v55, -inf  ;;  %v5455_v15 = vpop.eup %4039  ;;  %v2210_v63 = vmul.f32 1.442695, %v2166_v9  ;;  %v2262_v21 = vsel %vm1304_vm3, %v5450_v35, 0.0 }
 0x5b6   : > { %v2500_v6 = vadd.f32 %v5411_v27, %v2499_v30  ;;  %2152 = vmax.xlane.f32.xlu0 %v2151_v43  ;;  %v2148_v39 = vsel %vm1304_vm3, %v5418_v42, -inf  ;;  %4045 = vpow2.f32 %v2202_v51  ;;  %v2111_v28 = vpop.xlane.xlu0 %2110  ;;  %v2265_v30 = vsel %vm1304_vm3, %v5445_v57, 0.0  ;;  %v5459_v43 = vpop.eup %4041 }
 0x5b7   : > { %2149 = vmax.xlane.f32.xlu1 %v2148_v39  ;;  %v2659_v31 = vmax.f32 %v2505_v37, 0.0  ;;  %4047 = vpow2.f32 %v2208_v7 }
 0x5b8   : > { %v2658_v47 = vmax.f32 %v2500_v6, 0.0  ;;  %v3814_v0 = vpop.f32.mrb[66].mxu1  ;;  %4049 = vpow2.f32 %v2206_v60 }
 0x5b9   : > { %v2515_v49 = vadd.f32 %v3814_v0, %v5411_v27  ;;  %v2509_v44 = vpop.f32.mrb[67].mxu1  ;;  %4051 = vpow2.f32 %v2212_v11  ;;  %v2170_v0 = vsub.f32 %v5253_v54, %v2108_v8 }
 0x5ba   : > { %v2510_v14 = vadd.f32 %v5411_v27, %v2509_v44  ;;  %2254 = vadd.xlane.f32.xlu0 %v2253_v38  ;;  %3889 = vmatprep.mubr.f32.mxu0 %v2658_v47  ;;  %v2214_v38 = vmul.f32 1.442695, %v2168_v40  ;;  %v2171_v47 = vsub.f32 %v5261_v29, %v2111_v28  ;;  %4053 = vpow2.f32 %v2210_v63  ;;  %v5469_v44 = vpop.eup %4043 }
 0x5bb   : > { %2251 = vadd.xlane.f32.xlu1 %v2250_v23  ;;  %3890 = vmatmul.mubr.f32.vlgmr.msra.gmra.mrb[64].mxu0 %v2659_v31  ;;  %v2661_v20 = vmax.f32 %v2515_v49, 0.0  ;;  %v2271_v49 = vsel %vm1304_vm3, %v5459_v43, 0.0  ;;  %v2268_v29 = vsel %vm1304_vm3, %v5455_v15, 0.0 }
 0x5bc   : > { %v2660_v58 = vmax.f32 %v2510_v14, 0.0  ;;  %4055 = vpow2.f32 %v2214_v38  ;;  %v2220_v56 = vmul.f32 1.442695, %v2171_v47 }
 0x5bd   : > { %v3817_v4 = vpop.f32.mrb[68].mxu1  ;;  %v2117_v51 = vpop.xlane.xlu0 %2116  ;;  %4057 = vpow2.f32 %v2216_v45 }
 0x5be   : > { %v2525_v62 = vadd.f32 %v3817_v4, %v5411_v27  ;;  %v2519_v13 = vpop.f32.mrb[69].mxu1  ;;  %2260 = vadd.xlane.f32.xlu0 %v2259_v41  ;;  %3892 = vmatprep.mubr.f32.mxu0 %v2660_v58  ;;  %v2114_v14 = vpop.xlane.xlu1 %2113  ;;  %v2173_v12 = vsub.f32 %v5316_v26, %v2117_v51  ;;  %v2218_v58 = vmul.f32 1.442695, %v2170_v0  ;;  %v2277_v4 = vsel %vm1304_vm3, %v5469_v44, 0.0 }
 0x5bf   : > { %v2520_v25 = vadd.f32 %v5411_v27, %v2519_v13  ;;  %2257 = vadd.xlane.f32.xlu1 %v2256_v34  ;;  %3893 = vmatmul.mubr.f32.gmra.mrb[66].mxu0 %v2661_v20  ;;  %v2172_v60 = vsub.f32 %v5318_v33, %v2114_v14  ;;  %4059 = vpow2.f32 %v2220_v56 }
 0x5c0   : > { %v2663_v50 = vmax.f32 %v2525_v62, 0.0  ;;  %v5474_v7 = vpop.eup %4045  ;;  %v2224_v33 = vmul.f32 1.442695, %v2173_v12  ;;  %4061 = vpow2.f32 %v2218_v58 }
 0x5c1   : > { %v2662_v17 = vmax.f32 %v2520_v25, 0.0  ;;  %v3820_v37 = vpop.f32.mrb[70].mxu1  ;;  %v5481_v62 = vpop.eup %4047  ;;  %v2274_v25 = vsel %vm1304_vm3, %v5474_v7, 0.0  ;;  %v2222_v5 = vmul.f32 1.442695, %v2172_v60 }
 0x5c2   : > { %v2535_v6 = vadd.f32 %v3820_v37, %v5411_v27  ;;  %v2529_v39 = vpop.f32.mrb[71].mxu1  ;;  %2266 = vadd.xlane.f32.xlu0 %v2265_v30  ;;  %v5486_v26 = vpop.eup %4049  ;;  %4063 = vpow2.f32 %v2224_v33 }
 0x5c3   : > { %v2530_v46 = vadd.f32 %v5411_v27, %v2529_v39  ;;  %3895 = vmatprep.mubr.f32.mxu0 %v2662_v17  ;;  %2263 = vadd.xlane.f32.xlu1 %v2262_v21  ;;  %v2283_v17 = vsel %vm1304_vm3, %v5481_v62, 0.0  ;;  %v5491_v37 = vpop.eup %4051  ;;  %4065 = vpow2.f32 %v2222_v5 }
 0x5c4   : > { %3896 = vmatmul.mubr.f32.gmra.mrb[68].mxu0 %v2663_v50  ;;  %v2665_v23 = vmax.f32 %v2535_v6, 0.0  ;;  %v2280_v6 = vsel %vm1304_vm3, %v5486_v26, 0.0  ;;  %v5496_v39 = vpop.eup %4053  ;;  %v2289_v47 = vsel %vm1304_vm3, %v5491_v37, 0.0 }
 0x5c5   : > { %v2664_v52 = vmax.f32 %v2530_v46, 0.0  ;;  %v3823_v31 = vpop.f32.mrb[72].mxu1 }
 0x5c6   : > { %v2545_v53 = vadd.f32 %v3823_v31, %v5411_v27  ;;  %v2539_v41 = vpop.f32.mrb[73].mxu1  ;;  %2272 = vadd.xlane.f32.xlu0 %v2271_v49  ;;  %v5499_v38 = vpop.eup %4055  ;;  %v2286_v49 = vsel %vm1304_vm3, %v5496_v39, 0.0 }
 0x5c7   : > { %v2540_v54 = vadd.f32 %v5411_v27, %v2539_v41  ;;  %3898 = vmatprep.mubr.f32.mxu0 %v2664_v52  ;;  %2269 = vadd.xlane.f32.xlu1 %v2268_v29  ;;  %v5503_v0 = vpop.eup %4057  ;;  %v2292_v58 = vsel %vm1304_vm3, %v5499_v38, 0.0 }
 0x5c8   : > { %3899 = vmatmul.mubr.f32.gmra.mrb[70].mxu0 %v2665_v23  ;;  %v2667_v13 = vmax.f32 %v2545_v53, 0.0  ;;  %v2295_v41 = vsel %vm1304_vm3, %v5503_v0, 0.0 }
 0x5c9   : > { %v2666_v9 = vmax.f32 %v2540_v54, 0.0  ;;  %v3826_v20 = vpop.f32.mrb[74].mxu1  ;;  %v5511_v29 = vpop.eup %4059 }
 0x5ca   : > { %v2555_v34 = vadd.f32 %v3826_v20, %v5411_v27  ;;  %v2549_v40 = vpop.f32.mrb[75].mxu1  ;;  %2278 = vadd.xlane.f32.xlu0 %v2277_v4  ;;  %v5516_v60 = vpop.eup %4061 }
 0x5cb   : > { %v2550_v11 = vadd.f32 %v5411_v27, %v2549_v40  ;;  %3901 = vmatprep.mubr.f32.mxu0 %v2666_v9  ;;  %2275 = vadd.xlane.f32.xlu1 %v2274_v25  ;;  %v2298_v33 = vsel %vm1304_vm3, %v5516_v60, 0.0 }
 0x5cc   : > { %3902 = vmatmul.mubr.f32.gmra.mrb[72].mxu0 %v2667_v13  ;;  %v2669_v30 = vmax.f32 %v2555_v34, 0.0  ;;  %v2301_v13 = vsel %vm1304_vm3, %v5511_v29, 0.0  ;;  %v5521_v34 = vpop.eup %4063 }
 0x5cd   : > { %v2668_v63 = vmax.f32 %v2550_v11, 0.0  ;;  %v3829_v28 = vpop.f32.mrb[76].mxu1  ;;  %v5526_v5 = vpop.eup %4065 }
 0x5ce   : > { %v2565_v8 = vadd.f32 %v3829_v28, %v5411_v27  ;;  %v2559_v50 = vpop.f32.mrb[77].mxu1  ;;  %2284 = vadd.xlane.f32.xlu0 %v2283_v17 }
 0x5cf   : > { %v2560_v21 = vadd.f32 %v5411_v27, %v2559_v50  ;;  %3904 = vmatprep.mubr.f32.mxu0 %v2668_v63  ;;  %2281 = vadd.xlane.f32.xlu1 %v2280_v6 }
 0x5d0   : > { %3905 = vmatmul.mubr.f32.gmra.mrb[74].mxu0 %v2669_v30  ;;  %v2671_v51 = vmax.f32 %v2565_v8, 0.0  ;;  %v2307_v30 = vsel %vm1304_vm3, %v5521_v34, 0.0 }
 0x5d1   : > { %v2670_v46 = vmax.f32 %v2560_v21, 0.0  ;;  %v3832_v45 = vpop.f32.mrb[78].mxu1  ;;  %v2304_v21 = vsel %vm1304_vm3, %v5526_v5, 0.0 }
 0x5d2   : > { %v2575_v52 = vadd.f32 %v3832_v45, %v5411_v27  ;;  %v2569_v31 = vpop.f32.mrb[79].mxu1  ;;  %2290 = vadd.xlane.f32.xlu0 %v2289_v47 }
 0x5d3   : > { %v2570_v14 = vadd.f32 %v5411_v27, %v2569_v31  ;;  %3907 = vmatprep.mubr.f32.mxu0 %v2670_v46  ;;  %2287 = vadd.xlane.f32.xlu1 %v2286_v49 }
 0x5d4   : > { %3908 = vmatmul.mubr.f32.gmra.mrb[76].mxu0 %v2671_v51  ;;  %v2673_v54 = vmax.f32 %v2575_v52, 0.0 }
 0x5d5   : > { %v2672_v23 = vmax.f32 %v2570_v14, 0.0  ;;  %v3835_v53 = vpop.f32.mrb[80].mxu1 }
 0x5d6   : > { %v2585_v56 = vadd.f32 %v3835_v53, %v5411_v27  ;;  %v2579_v12 = vpop.f32.mrb[81].mxu1  ;;  %2296 = vadd.xlane.f32.xlu0 %v2295_v41 }
 0x5d7   : > { %v2580_v9 = vadd.f32 %v5411_v27, %v2579_v12  ;;  %3910 = vmatprep.mubr.f32.mxu0 %v2672_v23  ;;  %2293 = vadd.xlane.f32.xlu1 %v2292_v58 }
 0x5d8   : > { %3911 = vmatmul.mubr.f32.gmra.mrb[78].mxu0 %v2673_v54  ;;  %v2675_v40 = vmax.f32 %v2585_v56, 0.0 }
 0x5d9   : > { %v2674_v20 = vmax.f32 %v2580_v9, 0.0  ;;  %v3838_v4 = vpop.f32.mrb[82].mxu1 }
 0x5da   : > { %v2595_v25 = vadd.f32 %v3838_v4, %v5411_v27  ;;  %v2589_v11 = vpop.f32.mrb[83].mxu1  ;;  %2302 = vadd.xlane.f32.xlu0 %v2301_v13 }
 0x5db   : > { %v2590_v63 = vadd.f32 %v5411_v27, %v2589_v11  ;;  %3913 = vmatprep.mubr.f32.mxu0 %v2674_v20  ;;  %2299 = vadd.xlane.f32.xlu1 %v2298_v33 }
 0x5dc   : > { %3914 = vmatmul.mubr.f32.gmra.mrb[80].mxu0 %v2675_v40  ;;  %v2677_v8 = vmax.f32 %v2595_v25, 0.0 }
 0x5dd   : > { %v2676_v28 = vmax.f32 %v2590_v63, 0.0  ;;  %v3841_v17 = vpop.f32.mrb[84].mxu1 }
 0x5de   : > { %v2605_v50 = vadd.f32 %v3841_v17, %v5411_v27  ;;  %v2599_v6 = vpop.f32.mrb[85].mxu1  ;;  %2308 = vadd.xlane.f32.xlu0 %v2307_v30 }
 0x5df   : > { %v2600_v46 = vadd.f32 %v5411_v27, %v2599_v6  ;;  %3916 = vmatprep.mubr.f32.mxu0 %v2676_v28  ;;  %2305 = vadd.xlane.f32.xlu1 %v2304_v21 }
 0x5e0   : > { %3917 = vmatmul.mubr.f32.gmra.mrb[82].mxu0 %v2677_v8  ;;  %v2679_v51 = vmax.f32 %v2605_v50, 0.0 }
 0x5e1   : > { %v2678_v45 = vmax.f32 %v2600_v46, 0.0  ;;  %v3844_v47 = vpop.f32.mrb[86].mxu1 }
 0x5e2   : > { %v2615_v52 = vadd.f32 %v3844_v47, %v5411_v27  ;;  %v2609_v31 = vpop.f32.mrb[87].mxu1 }
 0x5e3   : > { %v2610_v49 = vadd.f32 %v5411_v27, %v2609_v31  ;;  %3919 = vmatprep.mubr.f32.mxu0 %v2678_v45 }
 0x5e4   : > { %3920 = vmatmul.mubr.f32.gmra.mrb[84].mxu0 %v2679_v51  ;;  %v2681_v53 = vmax.f32 %v2615_v52, 0.0 }
 0x5e5   : > { %v2680_v14 = vmax.f32 %v2610_v49, 0.0  ;;  %v3847_v23 = vpop.f32.mrb[88].mxu1 }
 0x5e6   : > { %v2625_v41 = vadd.f32 %v3847_v23, %v5411_v27  ;;  %v2619_v54 = vpop.f32.mrb[89].mxu1 }
 0x5e7   : > { %v2620_v56 = vadd.f32 %v5411_v27, %v2619_v54  ;;  %3922 = vmatprep.mubr.f32.mxu0 %v2680_v14 }
 0x5e8   : > { %3923 = vmatmul.mubr.f32.gmra.mrb[86].mxu0 %v2681_v53  ;;  %v2683_v9 = vmax.f32 %v2625_v41, 0.0 }
 0x5e9   : > { %v2682_v12 = vmax.f32 %v2620_v56, 0.0  ;;  %v3850_v58 = vpop.f32.mrb[90].mxu1 }
 0x5ea   : > { %v2635_v20 = vadd.f32 %v3850_v58, %v5411_v27  ;;  %v2629_v4 = vpop.f32.mrb[91].mxu1 }
 0x5eb   : > { %v2630_v13 = vadd.f32 %v5411_v27, %v2629_v4  ;;  %3925 = vmatprep.mubr.f32.mxu0 %v2682_v12 }
 0x5ec   : > { %3926 = vmatmul.mubr.f32.gmra.mrb[88].mxu0 %v2683_v9  ;;  %v2685_v11 = vmax.f32 %v2635_v20, 0.0 }
 0x5ed   : > { %v2684_v40 = vmax.f32 %v2630_v13, 0.0  ;;  %v3853_v25 = vpop.f32.mrb[92].mxu1 }
 0x5ee   : > { %v2645_v33 = vadd.f32 %v3853_v25, %v5411_v27  ;;  %v2639_v63 = vpop.f32.mrb[93].mxu1 }
 0x5ef   : > { %v2640_v28 = vadd.f32 %v5411_v27, %v2639_v63  ;;  %3928 = vmatprep.mubr.f32.mxu0 %v2684_v40 }
 0x5f0   : > { %3929 = vmatmul.mubr.f32.gmra.mrb[90].mxu0 %v2685_v11  ;;  %v2687_v8 = vmax.f32 %v2645_v33, 0.0 }
 0x5f1   : > { %v2686_v17 = vmax.f32 %v2640_v28, 0.0  ;;  %v3856_v30 = vpop.f32.mrb[94].mxu1 }
 0x5f2   : > { %v2655_v50 = vadd.f32 %v3856_v30, %v5411_v27  ;;  %v2649_v6 = vpop.f32.mrb[95].mxu1  ;;  %v2123_v21 = vpop.xlane.xlu0 %2122 }
 0x5f3   : > { %v2650_v46 = vadd.f32 %v5411_v27, %v2649_v6  ;;  %v2175_v45 = vsub.f32 %v5340_v19, %v2123_v21  ;;  %3931 = vmatprep.mubr.f32.mxu0 %v2686_v17  ;;  %v2120_v47 = vpop.xlane.xlu1 %2119 }
 0x5f4   : > { %v2174_v51 = vsub.f32 %v5342_v3, %v2120_v47  ;;  %3932 = vmatmul.mubr.f32.gmra.mrb[92].mxu0 %v2687_v8  ;;  %v2689_v49 = vmax.f32 %v2655_v50, 0.0 }
 0x5f5   : > { %v2688_v52 = vmax.f32 %v2650_v46, 0.0  ;;  %v2228_v31 = vmul.f32 1.442695, %v2175_v45 }
 0x5f6   : > { %v2226_v14 = vmul.f32 1.442695, %v2174_v51 }
 0x5f7   : > { %4067 = vpow2.f32 %v2228_v31  ;;  %3934 = vmatprep.mubr.f32.mxu0 %v2688_v52 }
 0x5f8   : > { %4069 = vpow2.f32 %v2226_v14  ;;  %3935 = vmatmul.mubr.f32.gmra.mrb[94].mxu0 %v2689_v49 }
 0x601   : > { %v5547_v23 = vpop.eup %4067 }
 0x602   : > { %v5549_v53 = vpop.eup %4069  ;;  %v2313_v19 = vsel %vm1304_vm3, %v5547_v23, 0.0 }
 0x603   : > { %2314 = vadd.xlane.f32.xlu0 %v2313_v19  ;;  %v2310_v3 = vsel %vm1304_vm3, %v5549_v53, 0.0 }
 0x604   : > { %2311 = vadd.xlane.f32.xlu1 %v2310_v3 }
 0x627   : > { %v2129_v27 = vpop.xlane.xlu0 %2128 }
 0x628   : > { %v2177_v41 = vsub.f32 %v5352_v48, %v2129_v27  ;;  %v2126_v54 = vpop.xlane.xlu1 %2125 }
 0x629   : > { %v2176_v56 = vsub.f32 %v5354_v10, %v2126_v54 }
 0x62a   : > { %v2232_v12 = vmul.f32 1.442695, %v2177_v41 }
 0x62b   : > { %v2230_v58 = vmul.f32 1.442695, %v2176_v56 }
 0x62c   : > { %4071 = vpow2.f32 %v2232_v12 }
 0x62d   : > { %4073 = vpow2.f32 %v2230_v58 }
 0x62f   : > { %v2135_v9 = vpop.xlane.xlu0 %2134 }
 0x630   : > { %v2179_v20 = vsub.f32 %v5364_v16, %v2135_v9  ;;  %v2132_v4 = vpop.xlane.xlu1 %2131 }
 0x631   : > { %v2178_v13 = vsub.f32 %v5366_v59, %v2132_v4 }
 0x632   : > { %v2236_v40 = vmul.f32 1.442695, %v2179_v20 }
 0x633   : > { %v2234_v25 = vmul.f32 1.442695, %v2178_v13 }
 0x634   : > { %4075 = vpow2.f32 %v2236_v40  ;;  %v2141_v11 = vpop.xlane.xlu0 %2140 }
 0x635   : > { %4077 = vpow2.f32 %v2234_v25  ;;  %v2181_v48 = vsub.f32 %v5377_v32, %v2141_v11  ;;  %v2138_v33 = vpop.xlane.xlu1 %2137 }
 0x636   : > { %v5560_v63 = vpop.eup %4071  ;;  %v2180_v10 = vsub.f32 %v5380_v61, %v2138_v33 }
 0x637   : > { %v5563_v28 = vpop.eup %4073  ;;  %v2240_v17 = vmul.f32 1.442695, %v2181_v48  ;;  %v2319_v16 = vsel %vm1304_vm3, %v5560_v63, 0.0 }
 0x638   : > { %v2238_v30 = vmul.f32 1.442695, %v2180_v10  ;;  %2320 = vadd.xlane.f32.xlu0 %v2319_v16  ;;  %v2316_v59 = vsel %vm1304_vm3, %v5563_v28, 0.0 }
 0x639   : > { %4079 = vpow2.f32 %v2240_v17  ;;  %2317 = vadd.xlane.f32.xlu1 %v2316_v59 }
 0x63a   : > { %4081 = vpow2.f32 %v2238_v30 }
 0x63b   : > { %v2147_v32 = vpop.xlane.xlu0 %2146 }
 0x63c   : > { %v2183_v8 = vsub.f32 %v5392_v2, %v2147_v32  ;;  %v2144_v50 = vpop.xlane.xlu1 %2143  ;;  %v5608_v32 = vld [vmem:[%s5789_s7] ss:$0 sm:$0xff] }
 0x63d   : > { %v2182_v61 = vsub.f32 %v5395_v22, %v2144_v50 }
 0x63e   : > { %v5571_v6 = vpop.eup %4075  ;;  %v2244_v21 = vmul.f32 1.442695, %v2183_v8 }
 0x63f   : > { %v5573_v46 = vpop.eup %4077  ;;  %v2242_v45 = vmul.f32 1.442695, %v2182_v61  ;;  %v2325_v47 = vsel %vm1304_vm3, %v5571_v6, 0.0 }
 0x640   : > { %4083 = vpow2.f32 %v2244_v21  ;;  %2326 = vadd.xlane.f32.xlu0 %v2325_v47  ;;  %v2322_v51 = vsel %vm1304_vm3, %v5573_v46, 0.0 }
 0x641   : > { %4085 = vpow2.f32 %v2242_v45  ;;  %2323 = vadd.xlane.f32.xlu1 %v2322_v51 }
 0x643   : > { %v5579_v2 = vpop.eup %4079  ;;  %v2153_v52 = vpop.xlane.xlu0 %2152 }
 0x644   : > { %v5581_v22 = vpop.eup %4081  ;;  %v2185_v31 = vsub.f32 %v5413_v55, %v2153_v52  ;;  %v2150_v49 = vpop.xlane.xlu1 %2149  ;;  %v2331_v14 = vsel %vm1304_vm3, %v5579_v2, 0.0 }
 0x645   : > { %v2184_v19 = vsub.f32 %v5418_v42, %v2150_v49  ;;  %2332 = vadd.xlane.f32.xlu0 %v2331_v14  ;;  %v2328_v3 = vsel %vm1304_vm3, %v5581_v22, 0.0 }
 0x646   : > { %v2248_v27 = vmul.f32 1.442695, %v2185_v31  ;;  %2329 = vadd.xlane.f32.xlu1 %v2328_v3 }
 0x647   : > { %v2246_v41 = vmul.f32 1.442695, %v2184_v19  ;;  %v2255_v4 = vpop.xlane.xlu0 %2254 }
 0x648   : > { %4087 = vpow2.f32 %v2248_v27  ;;  %v2252_v13 = vpop.xlane.xlu1 %2251 }
 0x649   : > { %4089 = vpow2.f32 %v2246_v41 }
 0x64a   : > { %v5589_v54 = vpop.eup %4083  ;;  %4091 = vrcp.f32 %v2255_v4 }
 0x64b   : > { %v5591_v56 = vpop.eup %4085  ;;  %v2337_v55 = vsel %vm1304_vm3, %v5589_v54, 0.0  ;;  %v2261_v40 = vpop.xlane.xlu0 %2260  ;;  %4093 = vrcp.f32 %v2252_v13 }
 0x64c   : > { %2338 = vadd.xlane.f32.xlu0 %v2337_v55  ;;  %v2334_v42 = vsel %vm1304_vm3, %v5591_v56, 0.0  ;;  %v2258_v25 = vpop.xlane.xlu1 %2257  ;;  %4095 = vrcp.f32 %v2261_v40 }
 0x64d   : > { %2335 = vadd.xlane.f32.xlu1 %v2334_v42  ;;  %4097 = vrcp.f32 %v2258_v25 }
 0x64f   : > { %v2267_v11 = vpop.xlane.xlu0 %2266 }
 0x650   : > { %v2264_v48 = vpop.xlane.xlu1 %2263  ;;  %4099 = vrcp.f32 %v2267_v11 }
 0x651   : > { %4101 = vrcp.f32 %v2264_v48 }
 0x652   : > { %v5597_v12 = vpop.eup %4087 }
 0x653   : > { %v5599_v58 = vpop.eup %4089  ;;  %v2343_v9 = vsel %vm1304_vm3, %v5597_v12, 0.0  ;;  %v2273_v33 = vpop.xlane.xlu0 %2272 }
 0x654   : > { %2344 = vadd.xlane.f32.xlu0 %v2343_v9  ;;  %v2340_v20 = vsel %vm1304_vm3, %v5599_v58, 0.0  ;;  %v2270_v10 = vpop.xlane.xlu1 %2269  ;;  %v4092_v30 = vpop.eup %4091  ;;  %4103 = vrcp.f32 %v2273_v33 }
 0x655   : > { %2341 = vadd.xlane.f32.xlu1 %v2340_v20  ;;  %v4094_v8 = vpop.eup %4093  ;;  %v2379_v21 = vmul.f32 %v4092_v30, %v5415_v1  ;;  %4105 = vrcp.f32 %v2270_v10 }
 0x656   : > { %v4096_v51 = vpop.eup %4095  ;;  %v2378_v52 = vmul.f32 %v4094_v8, %v5427_v18 }
 0x657   : > { %v2279_v17 = vpop.xlane.xlu0 %2278  ;;  %v4098_v49 = vpop.eup %4097  ;;  %v2381_v55 = vmul.f32 %v4096_v51, %v5431_v24 }
 0x658   : > { %v2276_v16 = vpop.xlane.xlu1 %2275  ;;  %4107 = vrcp.f32 %v2279_v17  ;;  %v2380_v20 = vmul.f32 %v4098_v49, %v5439_v36 }
 0x659   : > { %4109 = vrcp.f32 %v2276_v16 }
 0x65a   : > { %v4100_v13 = vpop.eup %4099 }
 0x65b   : > { %v2285_v59 = vpop.xlane.xlu0 %2284  ;;  %v4102_v25 = vpop.eup %4101  ;;  %v2383_v10 = vmul.f32 %v4100_v13, %v5445_v57 }
 0x65c   : > { %v2282_v50 = vpop.xlane.xlu1 %2281  ;;  %4111 = vrcp.f32 %v2285_v59 }
 0x65d   : > { %4113 = vrcp.f32 %v2282_v50 }
 0x65e   : > { %v4104_v30 = vpop.eup %4103 }
 0x65f   : > { %v2291_v19 = vpop.xlane.xlu0 %2290  ;;  %v4106_v59 = vpop.eup %4105  ;;  %v2385_v57 = vmul.f32 %v4104_v30, %v5459_v43 }
 0x660   : > { %v2288_v41 = vpop.xlane.xlu1 %2287  ;;  %4115 = vrcp.f32 %v2291_v19 }
 0x661   : > { %4117 = vrcp.f32 %v2288_v41 }
 0x662   : > { %v4108_v49 = vpop.eup %4107 }
 0x663   : > { %v2297_v33 = vpop.xlane.xlu0 %2296 }
 0x664   : > { %v2294_v8 = vpop.xlane.xlu1 %2293  ;;  %4119 = vrcp.f32 %v2297_v33 }
 0x665   : > { %4121 = vrcp.f32 %v2294_v8 }
 0x667   : > { %v2303_v19 = vpop.xlane.xlu0 %2302 }
 0x668   : > { %v2300_v41 = vpop.xlane.xlu1 %2299  ;;  %4123 = vrcp.f32 %v2303_v19 }
 0x669   : > { %4125 = vrcp.f32 %v2300_v41 }
 0x68e   : > { %v3891_v61 = vpop.f32.mrb[64].mxu0 }
 0x68f   : > { %v2785_v45 = vadd.f32 %v3891_v61, %v5608_v32  ;;  %v2779_v47 = vpop.f32.mrb[65].mxu0  ;;  %v2382_v61 = vmul.f32 %v4102_v25, %v5450_v35 }
 0x690   : > { %v2780_v31 = vadd.f32 %v5608_v32, %v2779_v47 }
 0x691   : > { %v2939_v14 = vmul.f32 %v2785_v45, %v2379_v21 }
 0x692   : > { %v2938_v3 = vmul.f32 %v2780_v31, %v2378_v52  ;;  %v3894_v27 = vpop.f32.mrb[66].mxu0 }
 0x693   : > { %v2795_v1 = vadd.f32 %v3894_v27, %v5608_v32  ;;  %v2789_v42 = vpop.f32.mrb[67].mxu0  ;;  %v2973_v9 = vsel %vm1304_vm3, %v2939_v14, 0.0  ;;  %v2384_v14 = vmul.f32 %v4106_v59, %v5455_v15  ;;  %v4110_v27 = vpop.eup %4109 }
 0x694   : > { %v2790_v18 = vadd.f32 %v5608_v32, %v2789_v42  ;;  %2974 = vadd.xlane.f32.xlu0 %v2973_v9  ;;  %v2970_v4 = vsel %vm1304_vm3, %v2938_v3, 0.0  ;;  %v2387_v42 = vmul.f32 %v4108_v49, %v5469_v44  ;;  %v2309_v44 = vpop.xlane.xlu0 %2308 }
 0x695   : > { %v2941_v40 = vmul.f32 %v2795_v1, %v2381_v55  ;;  %2971 = vadd.xlane.f32.xlu1 %v2970_v4  ;;  %v2386_v4 = vmul.f32 %v4110_v27, %v5474_v7  ;;  %4127 = vrcp.f32 %v2309_v44 }
 0x696   : > { %v2940_v11 = vmul.f32 %v2790_v18, %v2380_v20  ;;  %v4112_v18 = vpop.eup %4111 }
 0x697   : > { %v3897_v24 = vpop.f32.mrb[68].mxu0  ;;  %v2979_v48 = vsel %vm1304_vm3, %v2941_v40, 0.0  ;;  %v4114_v25 = vpop.eup %4113  ;;  %v2389_v33 = vmul.f32 %v4112_v18, %v5481_v62 }
 0x698   : > { %v2805_v36 = vadd.f32 %v3897_v24, %v5608_v32  ;;  %v2799_v17 = vpop.f32.mrb[69].mxu0  ;;  %2980 = vadd.xlane.f32.xlu0 %v2979_v48  ;;  %v2976_v16 = vsel %vm1304_vm3, %v2940_v11, 0.0  ;;  %v2388_v30 = vmul.f32 %v4114_v25, %v5486_v26 }
 0x699   : > { %v2800_v21 = vadd.f32 %v5608_v32, %v2799_v17  ;;  %2977 = vadd.xlane.f32.xlu1 %v2976_v16  ;;  %v4116_v17 = vpop.eup %4115  ;;  %v2306_v16 = vpop.xlane.xlu1 %2305 }
 0x69a   : > { %v2943_v45 = vmul.f32 %v2805_v36, %v2383_v10  ;;  %4129 = vrcp.f32 %v2306_v16 }
 0x69b   : > { %v2942_v50 = vmul.f32 %v2800_v21, %v2382_v61  ;;  %v3900_v47 = vpop.f32.mrb[70].mxu0  ;;  %v4118_v21 = vpop.eup %4117 }
 0x69c   : > { %v2815_v51 = vadd.f32 %v3900_v47, %v5608_v32  ;;  %v2809_v52 = vpop.f32.mrb[71].mxu0  ;;  %v2985_v31 = vsel %vm1304_vm3, %v2943_v45, 0.0  ;;  %v2391_v47 = vmul.f32 %v4116_v17, %v5491_v37  ;;  %v2390_v49 = vmul.f32 %v4118_v21, %v5496_v39 }
 0x69d   : > { %v2810_v35 = vadd.f32 %v5608_v32, %v2809_v52  ;;  %2986 = vadd.xlane.f32.xlu0 %v2985_v31  ;;  %v2982_v3 = vsel %vm1304_vm3, %v2942_v50, 0.0  ;;  %v2315_v50 = vpop.xlane.xlu0 %2314  ;;  %v4120_v52 = vpop.eup %4119 }
 0x69e   : > { %v2945_v55 = vmul.f32 %v2815_v51, %v2385_v57  ;;  %2983 = vadd.xlane.f32.xlu1 %v2982_v3  ;;  %v2312_v31 = vpop.xlane.xlu1 %2311  ;;  %v4122_v3 = vpop.eup %4121  ;;  %4131 = vrcp.f32 %v2315_v50 }
 0x69f   : > { %v2944_v43 = vmul.f32 %v2810_v35, %v2384_v14  ;;  %v3903_v1 = vpop.f32.mrb[72].mxu0  ;;  %4133 = vrcp.f32 %v2312_v31  ;;  %v4124_v39 = vpop.eup %4123 }
 0x6a0   : > { %v2825_v9 = vadd.f32 %v3903_v1, %v5608_v32  ;;  %v2819_v20 = vpop.f32.mrb[73].mxu0  ;;  %v2991_v15 = vsel %vm1304_vm3, %v2945_v55, 0.0  ;;  %v2393_v55 = vmul.f32 %v4120_v52, %v5503_v0  ;;  %v2395_v0 = vmul.f32 %v4124_v39, %v5511_v29 }
 0x6a1   : > { %v2820_v13 = vadd.f32 %v5608_v32, %v2819_v20  ;;  %2992 = vadd.xlane.f32.xlu0 %v2991_v15  ;;  %v2988_v40 = vsel %vm1304_vm3, %v2944_v43, 0.0  ;;  %v4126_v15 = vpop.eup %4125 }
 0x6a2   : > { %v2947_v11 = vmul.f32 %v2825_v9, %v2387_v42  ;;  %2989 = vadd.xlane.f32.xlu1 %v2988_v40  ;;  %v2392_v42 = vmul.f32 %v4122_v3, %v5499_v38  ;;  %v2394_v38 = vmul.f32 %v4126_v15, %v5516_v60 }
 0x6a3   : > { %v2946_v24 = vmul.f32 %v2820_v13, %v2386_v4  ;;  %v3906_v48 = vpop.f32.mrb[74].mxu0 }
 0x6a4   : > { %v2835_v10 = vadd.f32 %v3906_v48, %v5608_v32  ;;  %v2829_v36 = vpop.f32.mrb[75].mxu0  ;;  %v2997_v7 = vsel %vm1304_vm3, %v2947_v11, 0.0 }
 0x6a5   : > { %v2830_v8 = vadd.f32 %v5608_v32, %v2829_v36  ;;  %2998 = vadd.xlane.f32.xlu0 %v2997_v7  ;;  %v2994_v61 = vsel %vm1304_vm3, %v2946_v24, 0.0  ;;  %v4128_v24 = vpop.eup %4127 }
 0x6a6   : > { %v2949_v59 = vmul.f32 %v2835_v10, %v2389_v33  ;;  %2995 = vadd.xlane.f32.xlu1 %v2994_v61  ;;  %v4130_v33 = vpop.eup %4129  ;;  %v2397_v29 = vmul.f32 %v4128_v24, %v5521_v34 }
 0x6a7   : > { %v2948_v45 = vmul.f32 %v2830_v8, %v2388_v30  ;;  %v3909_v62 = vpop.f32.mrb[76].mxu0  ;;  %v2396_v60 = vmul.f32 %v4130_v33, %v5526_v5 }
 0x6a8   : > { %v2845_v57 = vadd.f32 %v3909_v62, %v5608_v32  ;;  %v2839_v51 = vpop.f32.mrb[77].mxu0  ;;  %v3003_v26 = vsel %vm1304_vm3, %v2949_v59, 0.0  ;;  %v4132_v8 = vpop.eup %4131 }
 0x6a9   : > { %v2840_v14 = vadd.f32 %v5608_v32, %v2839_v51  ;;  %3004 = vadd.xlane.f32.xlu0 %v3003_v26  ;;  %v3000_v35 = vsel %vm1304_vm3, %v2948_v45, 0.0  ;;  %v4134_v59 = vpop.eup %4133  ;;  %v2399_v34 = vmul.f32 %v4132_v8, %v5547_v23 }
 0x6aa   : > { %v2951_v27 = vmul.f32 %v2845_v57, %v2391_v47  ;;  %3001 = vadd.xlane.f32.xlu1 %v3000_v35  ;;  %v2398_v26 = vmul.f32 %v4134_v59, %v5549_v53 }
 0x6ab   : > { %v2950_v19 = vmul.f32 %v2840_v14, %v2390_v49  ;;  %v3912_v37 = vpop.f32.mrb[78].mxu0 }
 0x6ac   : > { %v2855_v41 = vadd.f32 %v3912_v37, %v5608_v32  ;;  %v2849_v43 = vpop.f32.mrb[79].mxu0  ;;  %v3009_v1 = vsel %vm1304_vm3, %v2951_v27, 0.0 }
 0x6ad   : > { %v2850_v9 = vadd.f32 %v5608_v32, %v2849_v43  ;;  %3010 = vadd.xlane.f32.xlu0 %v3009_v1  ;;  %v3006_v20 = vsel %vm1304_vm3, %v2950_v19, 0.0 }
 0x6ae   : > { %v2953_v18 = vmul.f32 %v2855_v41, %v2393_v55  ;;  %3007 = vadd.xlane.f32.xlu1 %v3006_v20 }
 0x6af   : > { %v2952_v4 = vmul.f32 %v2850_v9, %v2392_v42  ;;  %v3915_v13 = vpop.f32.mrb[80].mxu0 }
 0x6b0   : > { %v2865_v40 = vadd.f32 %v3915_v13, %v5608_v32  ;;  %v2859_v25 = vpop.f32.mrb[81].mxu0  ;;  %v3015_v11 = vsel %vm1304_vm3, %v2953_v18, 0.0 }
 0x6b1   : > { %v2860_v48 = vadd.f32 %v5608_v32, %v2859_v25  ;;  %3016 = vadd.xlane.f32.xlu0 %v3015_v11  ;;  %v3012_v44 = vsel %vm1304_vm3, %v2952_v4, 0.0 }
 0x6b2   : > { %v2955_v10 = vmul.f32 %v2865_v40, %v2395_v0  ;;  %3013 = vadd.xlane.f32.xlu1 %v3012_v44 }
 0x6b3   : > { %v2954_v36 = vmul.f32 %v2860_v48, %v2394_v38  ;;  %v3918_v7 = vpop.f32.mrb[82].mxu0 }
 0x6b4   : > { %v2875_v17 = vadd.f32 %v3918_v7, %v5608_v32  ;;  %v2869_v16 = vpop.f32.mrb[83].mxu0  ;;  %v3021_v30 = vsel %vm1304_vm3, %v2955_v10, 0.0 }
 0x6b5   : > { %v2870_v61 = vadd.f32 %v5608_v32, %v2869_v16  ;;  %3022 = vadd.xlane.f32.xlu0 %v3021_v30  ;;  %v3018_v21 = vsel %vm1304_vm3, %v2954_v36, 0.0 }
 0x6b6   : > { %v2957_v45 = vmul.f32 %v2875_v17, %v2397_v29  ;;  %3019 = vadd.xlane.f32.xlu1 %v3018_v21 }
 0x6b7   : > { %v2956_v62 = vmul.f32 %v2870_v61, %v2396_v60  ;;  %v3921_v50 = vpop.f32.mrb[84].mxu0 }
 0x6b8   : > { %v2885_v47 = vadd.f32 %v3921_v50, %v5608_v32  ;;  %v2879_v57 = vpop.f32.mrb[85].mxu0  ;;  %v3027_v51 = vsel %vm1304_vm3, %v2957_v45, 0.0 }
 0x6b9   : > { %v2880_v5 = vadd.f32 %v5608_v32, %v2879_v57  ;;  %3028 = vadd.xlane.f32.xlu0 %v3027_v51  ;;  %v3024_v52 = vsel %vm1304_vm3, %v2956_v62, 0.0 }
 0x6ba   : > { %v2959_v31 = vmul.f32 %v2885_v47, %v2399_v34  ;;  %3025 = vadd.xlane.f32.xlu1 %v3024_v52 }
 0x6bb   : > { %v2958_v49 = vmul.f32 %v2880_v5, %v2398_v26  ;;  %v3924_v14 = vpop.f32.mrb[86].mxu0 }
 0x6bc   : > { %v2895_v35 = vadd.f32 %v3924_v14, %v5608_v32  ;;  %v2889_v3 = vpop.f32.mrb[87].mxu0  ;;  %v3033_v23 = vsel %vm1304_vm3, %v2959_v31, 0.0 }
 0x6bd   : > { %v2890_v27 = vadd.f32 %v5608_v32, %v2889_v3  ;;  %3034 = vadd.xlane.f32.xlu0 %v3033_v23  ;;  %v3030_v19 = vsel %vm1304_vm3, %v2958_v49, 0.0 }
 0x6be   : > { %3031 = vadd.xlane.f32.xlu1 %v3030_v19 }
 0x6bf   : > { %v3927_v53 = vpop.f32.mrb[88].mxu0 }
 0x6c0   : > { %v2905_v37 = vadd.f32 %v3927_v53, %v5608_v32  ;;  %v2899_v55 = vpop.f32.mrb[89].mxu0 }
 0x6c1   : > { %v2900_v41 = vadd.f32 %v5608_v32, %v2899_v55 }
 0x6c3   : > { %v3930_v43 = vpop.f32.mrb[90].mxu0 }
 0x6c4   : > { %v2915_v1 = vadd.f32 %v3930_v43, %v5608_v32  ;;  %v2909_v39 = vpop.f32.mrb[91].mxu0 }
 0x6c5   : > { %v2910_v42 = vadd.f32 %v5608_v32, %v2909_v39  ;;  %v2321_v9 = vpop.xlane.xlu0 %2320 }
 0x6c6   : > { %4135 = vrcp.f32 %v2321_v9  ;;  %v2318_v20 = vpop.xlane.xlu1 %2317 }
 0x6c7   : > { %4137 = vrcp.f32 %v2318_v20  ;;  %v3933_v15 = vpop.f32.mrb[92].mxu0 }
 0x6c8   : > { %v2925_v18 = vadd.f32 %v3933_v15, %v5608_v32  ;;  %v2919_v4 = vpop.f32.mrb[93].mxu0 }
 0x6c9   : > { %v2920_v13 = vadd.f32 %v5608_v32, %v2919_v4 }
 0x6cb   : > { %v3936_v0 = vpop.f32.mrb[94].mxu0 }
 0x6cc   : > { %v5685_v40 = vadd.f32 %v3936_v0, %v5608_v32  ;;  %v2929_v25 = vpop.f32.mrb[95].mxu0 }
 0x6cd   : > { %v2930_v11 = vadd.f32 %v5608_v32, %v2929_v25  ;;  %v2327_v24 = vpop.xlane.xlu0 %2326 }
 0x6ce   : > { %4139 = vrcp.f32 %v2327_v24  ;;  %v2324_v38 = vpop.xlane.xlu1 %2323 }
 0x6cf   : > { %4141 = vrcp.f32 %v2324_v38 }
 0x6d0   : > { %v4136_v48 = vpop.eup %4135 }
 0x6d1   : > { %v4138_v44 = vpop.eup %4137  ;;  %v2401_v33 = vmul.f32 %v4136_v48, %v5560_v63 }
 0x6d2   : > { %v2333_v10 = vpop.xlane.xlu0 %2332  ;;  %v2400_v36 = vmul.f32 %v4138_v44, %v5563_v28 }
 0x6d3   : > { %4143 = vrcp.f32 %v2333_v10  ;;  %v2330_v7 = vpop.xlane.xlu1 %2329  ;;  %v2961_v29 = vmul.f32 %v2895_v35, %v2401_v33 }
 0x6d4   : > { %4145 = vrcp.f32 %v2330_v7  ;;  %v2960_v17 = vmul.f32 %v2890_v27, %v2400_v36 }
 0x6d5   : > { %v3039_v16 = vsel %vm1304_vm3, %v2961_v29, 0.0 }
 0x6d6   : > { %3040 = vadd.xlane.f32.xlu0 %v3039_v16  ;;  %v3036_v32 = vsel %vm1304_vm3, %v2960_v17, 0.0 }
 0x6d7   : > { %3037 = vadd.xlane.f32.xlu1 %v3036_v32 }
 0x6d8   : > { %v4140_v30 = vpop.eup %4139 }
 0x6d9   : > { %v4142_v8 = vpop.eup %4141  ;;  %v2339_v60 = vpop.xlane.xlu0 %2338  ;;  %v2403_v61 = vmul.f32 %v4140_v30, %v5571_v6 }
 0x6da   : > { %4147 = vrcp.f32 %v2339_v60  ;;  %v2336_v63 = vpop.xlane.xlu1 %2335  ;;  %v2402_v28 = vmul.f32 %v4142_v8, %v5573_v46 }
 0x6db   : > { %4149 = vrcp.f32 %v2336_v63  ;;  %v2963_v21 = vmul.f32 %v2905_v37, %v2403_v61 }
 0x6dc   : > { %v2962_v59 = vmul.f32 %v2900_v41, %v2402_v28 }
 0x6dd   : > { %v4144_v45 = vpop.eup %4143  ;;  %v3045_v62 = vsel %vm1304_vm3, %v2963_v21, 0.0 }
 0x6de   : > { %v4146_v50 = vpop.eup %4145  ;;  %3046 = vadd.xlane.f32.xlu0 %v3045_v62  ;;  %v3042_v34 = vsel %vm1304_vm3, %v2962_v59, 0.0  ;;  %v2405_v47 = vmul.f32 %v4144_v45, %v5579_v2 }
 0x6df   : > { %3043 = vadd.xlane.f32.xlu1 %v3042_v34  ;;  %v2404_v57 = vmul.f32 %v4146_v50, %v5581_v22 }
 0x6e0   : > { %v2965_v6 = vmul.f32 %v2915_v1, %v2405_v47 }
 0x6e1   : > { %v2345_v51 = vpop.xlane.xlu0 %2344  ;;  %v2964_v26 = vmul.f32 %v2910_v42, %v2404_v57 }
 0x6e2   : > { %4151 = vrcp.f32 %v2345_v51  ;;  %v2342_v46 = vpop.xlane.xlu1 %2341  ;;  %v3051_v5 = vsel %vm1304_vm3, %v2965_v6, 0.0 }
 0x6e3   : > { %4153 = vrcp.f32 %v2342_v46  ;;  %3052 = vadd.xlane.f32.xlu0 %v3051_v5  ;;  %v3048_v52 = vsel %vm1304_vm3, %v2964_v26, 0.0 }
 0x6e4   : > { %v4148_v31 = vpop.eup %4147  ;;  %3049 = vadd.xlane.f32.xlu1 %v3048_v52 }
 0x6e5   : > { %v4150_v49 = vpop.eup %4149  ;;  %v2407_v14 = vmul.f32 %v4148_v31, %v5589_v54 }
 0x6e6   : > { %v2406_v2 = vmul.f32 %v4150_v49, %v5591_v56 }
 0x6e7   : > { %v2967_v35 = vmul.f32 %v2925_v18, %v2407_v14 }
 0x6e8   : > { %v2966_v22 = vmul.f32 %v2920_v13, %v2406_v2 }
 0x6e9   : > { %v3057_v3 = vsel %vm1304_vm3, %v2967_v35, 0.0 }
 0x6ea   : > { %3058 = vadd.xlane.f32.xlu0 %v3057_v3  ;;  %v3054_v23 = vsel %vm1304_vm3, %v2966_v22, 0.0 }
 0x6eb   : > { %3055 = vadd.xlane.f32.xlu1 %v3054_v23 }
 0x6ec   : > { %v4152_v27 = vpop.eup %4151 }
 0x6ed   : > { %v4154_v19 = vpop.eup %4153  ;;  %v2409_v53 = vmul.f32 %v4152_v27, %v5597_v12 }
 0x6ee   : > { %v2408_v37 = vmul.f32 %v4154_v19, %v5599_v58 }
 0x6ef   : > { %v2969_v55 = vmul.f32 %v5685_v40, %v2409_v53 }
 0x6f0   : > { %v2968_v41 = vmul.f32 %v2930_v11, %v2408_v37 }
 0x6f1   : > { %v3063_v54 = vsel %vm1304_vm3, %v2969_v55, 0.0 }
 0x6f2   : > { %3064 = vadd.xlane.f32.xlu0 %v3063_v54  ;;  %v3060_v56 = vsel %vm1304_vm3, %v2968_v41, 0.0 }
 0x6f3   : > { %3061 = vadd.xlane.f32.xlu1 %v3060_v56 }
 0x721   : > { %v2975_v43 = vpop.xlane.xlu0 %2974 }
 0x722   : > { %v3473_v1 = vmul.f32 -1.442695, %v2975_v43  ;;  %v2972_v39 = vpop.xlane.xlu1 %2971 }
 0x723   : > { %v3472_v42 = vmul.f32 -1.442695, %v2972_v39 }
 0x724   : > { %4155 = vpow2.f32 %v3473_v1 }
 0x725   : > { %4157 = vpow2.f32 %v3472_v42  ;;  %v2981_v9 = vpop.xlane.xlu0 %2980 }
 0x726   : > { %v3475_v20 = vmul.f32 -1.442695, %v2981_v9  ;;  %v2978_v12 = vpop.xlane.xlu1 %2977 }
 0x727   : > { %v3474_v15 = vmul.f32 -1.442695, %v2978_v12 }
 0x728   : > { %4159 = vpow2.f32 %v3475_v20 }
 0x729   : > { %4161 = vpow2.f32 %v3474_v15 }
 0x72a   : > { %v2987_v58 = vpop.xlane.xlu0 %2986 }
 0x72b   : > { %v3477_v18 = vmul.f32 -1.442695, %v2987_v58  ;;  %v2984_v4 = vpop.xlane.xlu1 %2983 }
 0x72c   : > { %v3476_v13 = vmul.f32 -1.442695, %v2984_v4 }
 0x72d   : > { %4163 = vpow2.f32 %v3477_v18 }
 0x72e   : > { %v4156_v0 = vpop.eup %4155  ;;  %4165 = vpow2.f32 %v3476_v13  ;;  %v2993_v40 = vpop.xlane.xlu0 %2992 }
 0x72f   : > { %v4158_v25 = vpop.eup %4157  ;;  %v3163_v11 = vadd.f32 1.0, %v4156_v0  ;;  %v3479_v24 = vmul.f32 -1.442695, %v2993_v40  ;;  %v2990_v38 = vpop.xlane.xlu1 %2989 }
 0x730   : > { %v3162_v48 = vadd.f32 1.0, %v4158_v25  ;;  %v3478_v44 = vmul.f32 -1.442695, %v2990_v38 }
 0x731   : > { %4167 = vrcp.f32 %v3163_v11 }
 0x732   : > { %v4160_v33 = vpop.eup %4159  ;;  %4169 = vrcp.f32 %v3162_v48  ;;  %v2999_v10 = vpop.xlane.xlu0 %2998 }
 0x733   : > { %v4162_v36 = vpop.eup %4161  ;;  %v3165_v7 = vadd.f32 1.0, %v4160_v33  ;;  %4171 = vpow2.f32 %v3479_v24  ;;  %v3481_v29 = vmul.f32 -1.442695, %v2999_v10  ;;  %v2996_v17 = vpop.xlane.xlu1 %2995 }
 0x734   : > { %v3164_v16 = vadd.f32 1.0, %v4162_v36  ;;  %4173 = vpow2.f32 %v3478_v44  ;;  %v3480_v32 = vmul.f32 -1.442695, %v2996_v17 }
 0x735   : > { %4175 = vrcp.f32 %v3165_v7 }
 0x736   : > { %4177 = vrcp.f32 %v3164_v16  ;;  %v3005_v30 = vpop.xlane.xlu0 %3004 }
 0x737   : > { %v4164_v8 = vpop.eup %4163  ;;  %4179 = vpow2.f32 %v3481_v29  ;;  %v3483_v60 = vmul.f32 -1.442695, %v3005_v30  ;;  %v3002_v61 = vpop.xlane.xlu1 %3001 }
 0x738   : > { %v4166_v63 = vpop.eup %4165  ;;  %v3167_v28 = vadd.f32 1.0, %v4164_v8  ;;  %4181 = vpow2.f32 %v3480_v32  ;;  %v3482_v21 = vmul.f32 -1.442695, %v3002_v61 }
 0x739   : > { %v3166_v59 = vadd.f32 1.0, %v4166_v63  ;;  %4183 = vpow2.f32 %v3483_v60 }
 0x73a   : > { %4185 = vrcp.f32 %v3167_v28  ;;  %v3011_v45 = vpop.xlane.xlu0 %3010 }
 0x73b   : > { %v4168_v62 = vpop.eup %4167  ;;  %4187 = vrcp.f32 %v3166_v59  ;;  %v3485_v50 = vmul.f32 -1.442695, %v3011_v45  ;;  %v3008_v34 = vpop.xlane.xlu1 %3007 }
 0x73c   : > { %v4170_v47 = vpop.eup %4169  ;;  %3260 = vst.msk [vmem:[%s5713_s18 + $0x8] sm:$0xff] %vm3258_vm4, %v4168_v62  ;;  %4189 = vpow2.f32 %v3482_v21  ;;  %v3484_v57 = vmul.f32 -1.442695, %v3008_v34 }
 0x73d   : > { %v4172_v6 = vpop.eup %4171  ;;  %3259 = vst.msk [vmem:[%s5713_s18] sm:$0xff] %vm3258_vm4, %v4170_v47  ;;  %4191 = vpow2.f32 %v3485_v50 }
 0x73e   : > { %v4174_v51 = vpop.eup %4173  ;;  %v3169_v26 = vadd.f32 1.0, %v4172_v6  ;;  %4193 = vpow2.f32 %v3484_v57  ;;  %v3017_v46 = vpop.xlane.xlu0 %3016 }
 0x73f   : > { %v4176_v5 = vpop.eup %4175  ;;  %v3168_v52 = vadd.f32 1.0, %v4174_v51  ;;  %v3487_v31 = vmul.f32 -1.442695, %v3017_v46  ;;  %v3014_v49 = vpop.xlane.xlu1 %3013 }
 0x740   : > { %v4178_v14 = vpop.eup %4177  ;;  %3262 = vst.msk [vmem:[%s5713_s18 + $0x18] sm:$0xff] %vm3258_vm4, %v4176_v5  ;;  %4195 = vrcp.f32 %v3169_v26  ;;  %v3486_v2 = vmul.f32 -1.442695, %v3014_v49 }
 0x741   : > { %v4180_v35 = vpop.eup %4179  ;;  %3261 = vst.msk [vmem:[%s5713_s18 + $0x10] sm:$0xff] %vm3258_vm4, %v4178_v14  ;;  %4197 = vrcp.f32 %v3168_v52 }
 0x742   : > { %v4182_v22 = vpop.eup %4181  ;;  %v3171_v3 = vadd.f32 1.0, %v4180_v35  ;;  %4199 = vpow2.f32 %v3487_v31  ;;  %v3023_v23 = vpop.xlane.xlu0 %3022 }
 0x743   : > { %v4184_v27 = vpop.eup %4183  ;;  %v3170_v19 = vadd.f32 1.0, %v4182_v22  ;;  %4201 = vpow2.f32 %v3486_v2  ;;  %v3489_v53 = vmul.f32 -1.442695, %v3023_v23  ;;  %v3020_v37 = vpop.xlane.xlu1 %3019 }
 0x744   : > { %v4186_v55 = vpop.eup %4185  ;;  %4203 = vrcp.f32 %v3171_v3  ;;  %v3173_v41 = vadd.f32 1.0, %v4184_v27  ;;  %v3488_v54 = vmul.f32 -1.442695, %v3020_v37 }
 0x745   : > { %v4188_v56 = vpop.eup %4187  ;;  %3264 = vst.msk [vmem:[%s5713_s18 + $0x28] sm:$0xff] %vm3258_vm4, %v4186_v55  ;;  %4205 = vrcp.f32 %v3170_v19 }
 0x746   : > { %v4190_v43 = vpop.eup %4189  ;;  %3263 = vst.msk [vmem:[%s5713_s18 + $0x20] sm:$0xff] %vm3258_vm4, %v4188_v56  ;;  %4207 = vrcp.f32 %v3173_v41  ;;  %v3029_v1 = vpop.xlane.xlu0 %3028 }
 0x747   : > { %v4192_v39 = vpop.eup %4191  ;;  %v3172_v42 = vadd.f32 1.0, %v4190_v43  ;;  %4209 = vpow2.f32 %v3489_v53  ;;  %v3026_v9 = vpop.xlane.xlu1 %3025  ;;  %v3491_v15 = vmul.f32 -1.442695, %v3029_v1 }
 0x748   : > { %v4194_v20 = vpop.eup %4193  ;;  %v3175_v12 = vadd.f32 1.0, %v4192_v39  ;;  %4211 = vpow2.f32 %v3488_v54  ;;  %v3490_v18 = vmul.f32 -1.442695, %v3026_v9 }
 0x749   : > { %4213 = vrcp.f32 %v3172_v42  ;;  %v3174_v58 = vadd.f32 1.0, %v4194_v20 }
 0x74a   : > { %v4196_v4 = vpop.eup %4195  ;;  %4215 = vrcp.f32 %v3175_v12  ;;  %v3035_v13 = vpop.xlane.xlu0 %3034 }
 0x74b   : > { %v4198_v0 = vpop.eup %4197  ;;  %3266 = vst.msk [vmem:[%s5713_s18 + $0x38] sm:$0xff] %vm3258_vm4, %v4196_v4  ;;  %4217 = vrcp.f32 %v3174_v58  ;;  %v3493_v40 = vmul.f32 -1.442695, %v3035_v13  ;;  %v3032_v25 = vpop.xlane.xlu1 %3031 }
 0x74c   : > { %v4200_v11 = vpop.eup %4199  ;;  %3265 = vst.msk [vmem:[%s5713_s18 + $0x30] sm:$0xff] %vm3258_vm4, %v4198_v0  ;;  %4219 = vpow2.f32 %v3491_v15  ;;  %v3492_v48 = vmul.f32 -1.442695, %v3032_v25 }
 0x74d   : > { %v4202_v24 = vpop.eup %4201  ;;  %v3177_v38 = vadd.f32 1.0, %v4200_v11  ;;  %4221 = vpow2.f32 %v3490_v18 }
 0x74e   : > { %v4204_v44 = vpop.eup %4203  ;;  %v3176_v33 = vadd.f32 1.0, %v4202_v24  ;;  %4223 = vpow2.f32 %v3493_v40 }
 0x74f   : > { %v4206_v10 = vpop.eup %4205  ;;  %3268 = vst.msk [vmem:[%s5713_s18 + $0x48] sm:$0xff] %vm3258_vm4, %v4204_v44  ;;  %4225 = vrcp.f32 %v3177_v38 }
 0x750   : > { %v4208_v36 = vpop.eup %4207  ;;  %3267 = vst.msk [vmem:[%s5713_s18 + $0x40] sm:$0xff] %vm3258_vm4, %v4206_v10  ;;  %4227 = vrcp.f32 %v3176_v33 }
 0x751   : > { %v4210_v7 = vpop.eup %4209  ;;  %3270 = vst.msk [vmem:[%s5713_s18 + $0x58] sm:$0xff] %vm3258_vm4, %v4208_v36  ;;  %4229 = vpow2.f32 %v3492_v48 }
 0x752   : > { %v4212_v29 = vpop.eup %4211  ;;  %v3179_v17 = vadd.f32 1.0, %v4210_v7 }
 0x753   : > { %v4214_v16 = vpop.eup %4213  ;;  %v3178_v32 = vadd.f32 1.0, %v4212_v29 }
 0x754   : > { %v4216_v30 = vpop.eup %4215  ;;  %3269 = vst.msk [vmem:[%s5713_s18 + $0x50] sm:$0xff] %vm3258_vm4, %v4214_v16  ;;  %4231 = vrcp.f32 %v3179_v17 }
 0x755   : > { %v4218_v8 = vpop.eup %4217  ;;  %3272 = vst.msk [vmem:[%s5713_s18 + $0x68] sm:$0xff] %vm3258_vm4, %v4216_v30  ;;  %4233 = vrcp.f32 %v3178_v32 }
 0x756   : > { %v4220_v60 = vpop.eup %4219  ;;  %3271 = vst.msk [vmem:[%s5713_s18 + $0x60] sm:$0xff] %vm3258_vm4, %v4218_v8 }
 0x757   : > { %v4222_v61 = vpop.eup %4221  ;;  %v3181_v63 = vadd.f32 1.0, %v4220_v60 }
 0x758   : > { %v4224_v28 = vpop.eup %4223  ;;  %v3180_v21 = vadd.f32 1.0, %v4222_v61 }
 0x759   : > { %v4226_v59 = vpop.eup %4225  ;;  %4235 = vrcp.f32 %v3181_v63  ;;  %v3183_v45 = vadd.f32 1.0, %v4224_v28 }
 0x75a   : > { %v4228_v62 = vpop.eup %4227  ;;  %3274 = vst.msk [vmem:[%s5713_s18 + $0x78] sm:$0xff] %vm3258_vm4, %v4226_v59  ;;  %4237 = vrcp.f32 %v3180_v21 }
 0x75b   : > { %v4230_v50 = vpop.eup %4229  ;;  %3273 = vst.msk [vmem:[%s5713_s18 + $0x70] sm:$0xff] %vm3258_vm4, %v4228_v62  ;;  %4239 = vrcp.f32 %v3183_v45 }
 0x75c   : > { %v3182_v34 = vadd.f32 1.0, %v4230_v50 }
 0x75e   : > { %v4232_v47 = vpop.eup %4231  ;;  %4241 = vrcp.f32 %v3182_v34 }
 0x75f   : > { %v4234_v57 = vpop.eup %4233  ;;  %3276 = vst.msk [vmem:[%s5713_s18 + $0x88] sm:$0xff] %vm3258_vm4, %v4232_v47 }
 0x760   : > { %3275 = vst.msk [vmem:[%s5713_s18 + $0x80] sm:$0xff] %vm3258_vm4, %v4234_v57 }
 0x763   : > { %v4236_v6 = vpop.eup %4235  ;;  %v3041_v51 = vpop.xlane.xlu0 %3040 }
 0x764   : > { %v4238_v26 = vpop.eup %4237  ;;  %3278 = vst.msk [vmem:[%s5713_s18 + $0x98] sm:$0xff] %vm3258_vm4, %v4236_v6  ;;  %v3495_v46 = vmul.f32 -1.442695, %v3041_v51  ;;  %v3038_v5 = vpop.xlane.xlu1 %3037 }
 0x765   : > { %v4240_v52 = vpop.eup %4239  ;;  %3277 = vst.msk [vmem:[%s5713_s18 + $0x90] sm:$0xff] %vm3258_vm4, %v4238_v26  ;;  %v3494_v31 = vmul.f32 -1.442695, %v3038_v5 }
 0x766   : > { %3280 = vst.msk [vmem:[%s5713_s18 + $0xa8] sm:$0xff] %vm3258_vm4, %v4240_v52  ;;  %4243 = vpow2.f32 %v3495_v46 }
 0x767   : > { %4245 = vpow2.f32 %v3494_v31 }
 0x768   : > { %v4242_v49 = vpop.eup %4241 }
 0x769   : > { %3279 = vst.msk [vmem:[%s5713_s18 + $0xa0] sm:$0xff] %vm3258_vm4, %v4242_v49 }
 0x76b   : > { %v3047_v14 = vpop.xlane.xlu0 %3046 }
 0x76c   : > { %v3497_v2 = vmul.f32 -1.442695, %v3047_v14  ;;  %v3044_v35 = vpop.xlane.xlu1 %3043 }
 0x76d   : > { %v3496_v22 = vmul.f32 -1.442695, %v3044_v35 }
 0x76e   : > { %4247 = vpow2.f32 %v3497_v2 }
 0x76f   : > { %4249 = vpow2.f32 %v3496_v22 }
 0x770   : > { %v4244_v3 = vpop.eup %4243  ;;  %v3053_v23 = vpop.xlane.xlu0 %3052 }
 0x771   : > { %v4246_v27 = vpop.eup %4245  ;;  %v3185_v19 = vadd.f32 1.0, %v4244_v3  ;;  %v3499_v53 = vmul.f32 -1.442695, %v3053_v23  ;;  %v3050_v37 = vpop.xlane.xlu1 %3049 }
 0x772   : > { %v3184_v55 = vadd.f32 1.0, %v4246_v27  ;;  %v3498_v41 = vmul.f32 -1.442695, %v3050_v37 }
 0x773   : > { %4251 = vrcp.f32 %v3185_v19 }
 0x774   : > { %4253 = vrcp.f32 %v3184_v55 }
 0x775   : > { %4255 = vpow2.f32 %v3499_v53 }
 0x776   : > { %4257 = vpow2.f32 %v3498_v41 }
 0x777   : > { %v3059_v54 = vpop.xlane.xlu0 %3058 }
 0x778   : > { %v4248_v56 = vpop.eup %4247  ;;  %v3501_v43 = vmul.f32 -1.442695, %v3059_v54  ;;  %v3056_v1 = vpop.xlane.xlu1 %3055 }
 0x779   : > { %v4250_v39 = vpop.eup %4249  ;;  %v3187_v42 = vadd.f32 1.0, %v4248_v56  ;;  %v3500_v9 = vmul.f32 -1.442695, %v3056_v1 }
 0x77a   : > { %v3186_v20 = vadd.f32 1.0, %v4250_v39  ;;  %4259 = vpow2.f32 %v3501_v43 }
 0x77b   : > { %4261 = vrcp.f32 %v3187_v42 }
 0x77c   : > { %4263 = vrcp.f32 %v3186_v20 }
 0x77d   : > { %v4252_v12 = vpop.eup %4251  ;;  %4265 = vpow2.f32 %v3500_v9 }
 0x77e   : > { %v4254_v15 = vpop.eup %4253  ;;  %3282 = vst.msk [vmem:[%s5713_s18 + $0xb8] sm:$0xff] %vm3258_vm4, %v4252_v12 }
 0x77f   : > { %v4256_v58 = vpop.eup %4255  ;;  %3281 = vst.msk [vmem:[%s5713_s18 + $0xb0] sm:$0xff] %vm3258_vm4, %v4254_v15  ;;  %v3065_v18 = vpop.xlane.xlu0 %3064 }
 0x780   : > { %v4258_v4 = vpop.eup %4257  ;;  %v3189_v13 = vadd.f32 1.0, %v4256_v58  ;;  %v3503_v0 = vmul.f32 -1.442695, %v3065_v18  ;;  %v3062_v40 = vpop.xlane.xlu1 %3061 }
 0x781   : > { %v3188_v25 = vadd.f32 1.0, %v4258_v4  ;;  %v3502_v11 = vmul.f32 -1.442695, %v3062_v40 }
 0x782   : > { %4267 = vrcp.f32 %v3189_v13 }
 0x783   : > { %4269 = vrcp.f32 %v3188_v25 }
 0x784   : > { %v4260_v24 = vpop.eup %4259  ;;  %4271 = vpow2.f32 %v3503_v0 }
 0x785   : > { %v4262_v38 = vpop.eup %4261  ;;  %v3191_v48 = vadd.f32 1.0, %v4260_v24  ;;  %4273 = vpow2.f32 %v3502_v11 }
 0x786   : > { %v4264_v44 = vpop.eup %4263  ;;  %3284 = vst.msk [vmem:[%s5713_s18 + $0xc8] sm:$0xff] %vm3258_vm4, %v4262_v38 }
 0x787   : > { %v4266_v33 = vpop.eup %4265  ;;  %3283 = vst.msk [vmem:[%s5713_s18 + $0xc0] sm:$0xff] %vm3258_vm4, %v4264_v44  ;;  %4275 = vrcp.f32 %v3191_v48 }
 0x788   : > { %v3190_v10 = vadd.f32 1.0, %v4266_v33 }
 0x78a   : > { %4277 = vrcp.f32 %v3190_v10 }
 0x78c   : > { %v4268_v36 = vpop.eup %4267 }
 0x78d   : > { %v4270_v7 = vpop.eup %4269  ;;  %3286 = vst.msk [vmem:[%s5713_s18 + $0xd8] sm:$0xff] %vm3258_vm4, %v4268_v36 }
 0x78e   : > { %v4272_v29 = vpop.eup %4271  ;;  %3285 = vst.msk [vmem:[%s5713_s18 + $0xd0] sm:$0xff] %vm3258_vm4, %v4270_v7 }
 0x78f   : > { %v4274_v17 = vpop.eup %4273  ;;  %v3193_v16 = vadd.f32 1.0, %v4272_v29 }
 0x790   : > { %v3192_v32 = vadd.f32 1.0, %v4274_v17 }
 0x791   : > { %v4276_v30 = vpop.eup %4275  ;;  %4279 = vrcp.f32 %v3193_v16 }
 0x792   : > { %3288 = vst.msk [vmem:[%s5713_s18 + $0xe8] sm:$0xff] %vm3258_vm4, %v4276_v30  ;;  %4281 = vrcp.f32 %v3192_v32 }
 0x794   : > { %v4278_v8 = vpop.eup %4277 }
 0x795   : > { %3287 = vst.msk [vmem:[%s5713_s18 + $0xe0] sm:$0xff] %vm3258_vm4, %v4278_v8 }
 0x79b   : > { %v4280_v60 = vpop.eup %4279 }
 0x79c   : > { %v4282_v61 = vpop.eup %4281  ;;  %3290 = vst.msk [vmem:[%s5713_s18 + $0xf8] sm:$0xff] %vm3258_vm4, %v4280_v60 }
 0x79d   : > { %3289 = vst.msk [vmem:[%s5713_s18 + $0xf0] sm:$0xff] %vm3258_vm4, %v4282_v61 }
 0x79e PF: > { %s23_s25 = sadd.s32 1, %s4289_s25  }
 0x79f   : > { %p20_p4 = scmp.ge.s32.totalorder %s23_s25, 4  }
 0x7a1   :  { %22 = sbr.rel (!%p20_p4) target bundleno = 1 (0x1), region = 105 }

</bundles_post_ra>
